<compile_context>
chip_gen: v7x
topology: tpu7x:2x2x1
jax: 0.10.0
libtpu: 0.0.40
codegen_flags: <defaults>
</compile_context>

<pallas_src>
import math
import numpy as np
import jax
import jax.numpy as jnp
from jax.experimental import pallas as pl
from jax.experimental.pallas import tpu as pltpu

# ---------------- small, self-consistent config (scaled-down BERT) -----------
d_model = 32
maxlen = 8
n_segments = 2
d_k = d_v = 8
n_heads = 4
d_ff = 64
n_layers = 2
vocab_size = 32
batch_size = 2
seq_len = 8
n_masked = 3
LN_EPS = 1e-5  # PyTorch nn.LayerNorm default

_INV_SQRT2 = np.float32(1.0 / math.sqrt(2.0))
_SM_SCALE = np.float32(1.0 / math.sqrt(d_k))
_NEG_BIG = np.float32(-1e9)  # matches reference masked_fill_(-1e9)

assert d_k == d_v, "fused QKV weight assumes d_k == d_v"
HD = n_heads * d_k


# --------------------------- in-kernel helpers --------------------------------
def _erf_f32(x):
    # float32-accurate erf (Abramowitz & Stegun 7.1.26, |abs err| <= 1.5e-7):
    # only exp/abs/where -> lowers cleanly inside Mosaic (EUP + VPU).
    sgn = jnp.where(x < 0.0, jnp.float32(-1.0), jnp.float32(1.0))
    a = jnp.abs(x)
    t = 1.0 / (1.0 + jnp.float32(0.3275911) * a)
    poly = t * (jnp.float32(0.254829592)
                + t * (jnp.float32(-0.284496736)
                       + t * (jnp.float32(1.421413741)
                              + t * (jnp.float32(-1.453152027)
                                     + t * jnp.float32(1.061405429)))))
    return sgn * (1.0 - poly * jnp.exp(-a * a))


def _gelu(x):
    # TODO(synk): exact torch.erf GELU is approximated by the A&S polynomial
    # above (~1.5e-7 abs error); kept over the tanh form for numerical fidelity.
    return x * 0.5 * (1.0 + _erf_f32(x * _INV_SQRT2))


def _layernorm(x, g, b):
    mu = jnp.mean(x, axis=-1, keepdims=True)
    var = jnp.mean((x - mu) ** 2, axis=-1, keepdims=True)
    return (x - mu) * jax.lax.rsqrt(var + LN_EPS) * g + b


# ----------------------------- the fused kernel --------------------------------
def _bert_fused_kernel(
    emb_ref, bias_ref, gcls_ref, gmsk_ref,        # activations / gather helpers
    eg_ref, eb_ref,                               # embedding LN
    wqkv_ref, bqkv_ref, wo_ref, bo_ref,           # encoder (stacked over layers)
    lng_ref, lnb_ref, w1_ref, b1_ref, w2_ref, b2_ref,
    fcw_ref, fcb_ref, cw_ref, cb_ref,             # pooler + classifier
    linw_ref, linb_ref, mg_ref, mb_ref,           # MLM head
    tokemb_ref, decb_ref,                         # tied decoder
    clsf_ref, lm_ref,                             # outputs
    ctx_ref,                                      # VMEM scratch (B*S, H*dv)
):
    # ---- embedding LayerNorm (tok+pos+seg already summed outside) ----
    x = _layernorm(emb_ref[...], eg_ref[...], eb_ref[...])        # (B*S, D)

    # ---- encoder layers, fully unrolled in-kernel ----
    for l in range(n_layers):
        # fused QKV projection over the whole batch: (B*S, 3*H*dk)
        qkv = (jnp.dot(x, wqkv_ref[l], preferred_element_type=jnp.float32)
               + bqkv_ref[l])

        for b in range(batch_size):
            rs = b * seq_len
            qkv_b = qkv[rs:rs + seq_len, :]                        # (S, 3*HD)
            bias_b = bias_ref[b]                                   # (1, S) additive
            for h in range(n_heads):
                qh = qkv_b[:, h * d_k:(h + 1) * d_k]
                kh = qkv_b[:, HD + h * d_k:HD + (h + 1) * d_k]
                vh = qkv_b[:, 2 * HD + h * d_v:2 * HD + (h + 1) * d_v]
                s = jax.lax.dot_general(
                    qh, kh, (((1,), (1,)), ((), ())),
                    preferred_element_type=jnp.float32)            # (S, S)
                s = s * _SM_SCALE + bias_b                         # additive pad bias
                m = jnp.max(s, axis=-1, keepdims=True)
                e = jnp.exp(s - m)
                p = e * pl.reciprocal(jnp.sum(e, axis=-1, keepdims=True),
                                      approx=True)
                # write context straight into its lane slice (no concat)
                ctx_ref[rs:rs + seq_len, h * d_v:(h + 1) * d_v] = jnp.dot(
                    p, vh, preferred_element_type=jnp.float32)

        # output projection + residual add + LayerNorm (whole batch at once)
        attn_out = (jnp.dot(ctx_ref[...], wo_ref[l],
                            preferred_element_type=jnp.float32) + bo_ref[l])
        y = _layernorm(attn_out + x, lng_ref[l], lnb_ref[l])

        # position-wise FFN with GELU (no residual/LN after FFN, matching ref)
        h1 = _gelu(jnp.dot(y, w1_ref[l], preferred_element_type=jnp.float32)
                   + b1_ref[l])
        x = (jnp.dot(h1, w2_ref[l], preferred_element_type=jnp.float32)
             + b2_ref[l])

    # ---- heads (all in the same kernel; x never leaves VMEM) ----
    # CLS-token and masked-position gathers as tiny one-hot matmuls
    cls = jnp.dot(gcls_ref[...], x, preferred_element_type=jnp.float32)  # (B, D)
    hm = jnp.dot(gmsk_ref[...], x, preferred_element_type=jnp.float32)   # (B*M, D)

    # NSP head: pooler(tanh) + classifier  -> tiny (B,2) side output
    pooled = jnp.tanh(
        jnp.dot(cls, fcw_ref[...], preferred_element_type=jnp.float32)
        + fcb_ref[...])
    clsf_ref[...] = (jnp.dot(pooled, cw_ref[...],
                             preferred_element_type=jnp.float32) + cb_ref[...])

    # Masked-LM head: linear -> GELU -> LayerNorm -> tied decoder (+ bias)
    hm = (jnp.dot(hm, linw_ref[...], preferred_element_type=jnp.float32)
          + linb_ref[...])
    hm = _layernorm(_gelu(hm), mg_ref[...], mb_ref[...])
    # decoder weight == tok_embed (V, D): contract on D, no materialized .T
    lm_ref[...] = (jax.lax.dot_general(
        hm, tokemb_ref[...], (((1,), (1,)), ((), ())),
        preferred_element_type=jnp.float32) + decb_ref[...])


# ----------------------------- params / forward -------------------------------
def init_params(key):
    keys = iter(jax.random.split(key, 32))

    def nrm(shape, scale=0.02):
        return scale * jax.random.normal(next(keys), shape, dtype=jnp.float32)

    L = n_layers
    return {
        "tok_embed": nrm((vocab_size, d_model)),
        "pos_embed": nrm((maxlen, d_model)),
        "seg_embed": nrm((n_segments, d_model)),
        "emb_ln_g": jnp.ones((1, d_model), jnp.float32),
        "emb_ln_b": jnp.zeros((1, d_model), jnp.float32),
        # encoder layer weights, stacked along a leading layer axis
        "Wqkv": nrm((L, d_model, 3 * HD)),            # fused [Wq | Wk | Wv]
        "bqkv": jnp.zeros((L, 1, 3 * HD), jnp.float32),
        "Wo": nrm((L, HD, d_model)),
        "bo": jnp.zeros((L, 1, d_model), jnp.float32),
        "attn_ln_g": jnp.ones((L, 1, d_model), jnp.float32),
        "attn_ln_b": jnp.zeros((L, 1, d_model), jnp.float32),
        "W1": nrm((L, d_model, d_ff)),
        "b1": jnp.zeros((L, 1, d_ff), jnp.float32),
        "W2": nrm((L, d_ff, d_model)),
        "b2": jnp.zeros((L, 1, d_model), jnp.float32),
        # heads
        "fc_w": nrm((d_model, d_model)),
        "fc_b": jnp.zeros((1, d_model), jnp.float32),
        "clsf_w": nrm((d_model, 2)),
        "clsf_b": jnp.zeros((1, 2), jnp.float32),
        "lin_w": nrm((d_model, d_model)),
        "lin_b": jnp.zeros((1, d_model), jnp.float32),
        "mlm_ln_g": jnp.ones((1, d_model), jnp.float32),
        "mlm_ln_b": jnp.zeros((1, d_model), jnp.float32),
        "decoder_bias": jnp.zeros((1, vocab_size), jnp.float32),
    }


def bert_forward(params, input_ids, segment_ids, masked_pos):
    B, S = input_ids.shape

    # ---- JAX glue: embedding gathers + sum (LN happens inside the kernel) ----
    tok_e = params["tok_embed"][input_ids]                         # (B, S, D)
    pos_e = params["pos_embed"][:S]                                # (S, D)
    seg_e = params["seg_embed"][segment_ids]                       # (B, S, D)
    emb_sum = (tok_e + pos_e[None, :, :] + seg_e).reshape(B * S, d_model)

    # additive pad-key bias: -1e9 where key token id == 0 (B, 1, S)
    neg_bias = jnp.where(input_ids == 0, _NEG_BIG,
                         jnp.float32(0.0)).astype(jnp.float32).reshape(B, 1, S)

    # one-hot gather matrices for CLS tokens and masked positions
    cls_rows = jnp.arange(B, dtype=jnp.int32) * S                  # (B,)
    msk_rows = (masked_pos.astype(jnp.int32)
                + jnp.arange(B, dtype=jnp.int32)[:, None] * S).reshape(-1)
    g_cls = jax.nn.one_hot(cls_rows, B * S, dtype=jnp.float32)     # (B, B*S)
    g_msk = jax.nn.one_hot(msk_rows, B * S, dtype=jnp.float32)     # (B*M, B*S)

    logits_clsf, logits_lm2 = pl.pallas_call(
        _bert_fused_kernel,
        out_shape=(jax.ShapeDtypeStruct((B, 2), jnp.float32),
                   jax.ShapeDtypeStruct((B * n_masked, vocab_size), jnp.float32)),
        scratch_shapes=[pltpu.VMEM((B * S, HD), jnp.float32)],
    )(emb_sum, neg_bias, g_cls, g_msk,
      params["emb_ln_g"], params["emb_ln_b"],
      params["Wqkv"], params["bqkv"], params["Wo"], params["bo"],
      params["attn_ln_g"], params["attn_ln_b"],
      params["W1"], params["b1"], params["W2"], params["b2"],
      params["fc_w"], params["fc_b"], params["clsf_w"], params["clsf_b"],
      params["lin_w"], params["lin_b"], params["mlm_ln_g"], params["mlm_ln_b"],
      params["tok_embed"], params["decoder_bias"])

    logits_lm = logits_lm2.reshape(B, n_masked, vocab_size)
    return logits_lm, logits_clsf


if __name__ == "__main__":
    key = jax.random.PRNGKey(0)
    pkey, ikey, mkey = jax.random.split(key, 3)

    params = init_params(pkey)
    input_ids = jax.random.randint(
        ikey, (batch_size, seq_len), 1, vocab_size, dtype=jnp.int32
    )
    # add a couple of pad tokens (id 0) to exercise the attention pad mask
    input_ids = input_ids.at[:, -2:].set(0)
    segment_ids = jnp.concatenate(
        [
            jnp.zeros((batch_size, seq_len // 2), jnp.int32),
            jnp.ones((batch_size, seq_len - seq_len // 2), jnp.int32),
        ],
        axis=1,
    )
    masked_pos = jax.random.randint(
        mkey, (batch_size, n_masked), 0, seq_len, dtype=jnp.int32
    )

    fwd = jax.jit(bert_forward)
    logits_lm, logits_clsf = fwd(params, input_ids, segment_ids, masked_pos)
    jax.block_until_ready((logits_lm, logits_clsf))

    assert logits_lm.shape == (batch_size, n_masked, vocab_size)
    assert logits_clsf.shape == (batch_size, 2)
    assert bool(jnp.all(jnp.isfinite(logits_lm))) and bool(
        jnp.all(jnp.isfinite(logits_clsf))
    )
    print("KERNEL_OK")
</pallas_src>

<mosaic_0001>
module attributes {stable_mosaic.version = 11 : i64} {
  func.func @_bert_fused_kernel(%arg0: memref<16x32xf32, #tpu.memory_space<vmem>>, %arg1: memref<2x1x8xf32, #tpu.memory_space<vmem>>, %arg2: memref<2x16xf32, #tpu.memory_space<vmem>>, %arg3: memref<6x16xf32, #tpu.memory_space<vmem>>, %arg4: memref<1x32xf32, #tpu.memory_space<vmem>>, %arg5: memref<1x32xf32, #tpu.memory_space<vmem>>, %arg6: memref<2x32x96xf32, #tpu.memory_space<vmem>>, %arg7: memref<2x1x96xf32, #tpu.memory_space<vmem>>, %arg8: memref<2x32x32xf32, #tpu.memory_space<vmem>>, %arg9: memref<2x1x32xf32, #tpu.memory_space<vmem>>, %arg10: memref<2x1x32xf32, #tpu.memory_space<vmem>>, %arg11: memref<2x1x32xf32, #tpu.memory_space<vmem>>, %arg12: memref<2x32x64xf32, #tpu.memory_space<vmem>>, %arg13: memref<2x1x64xf32, #tpu.memory_space<vmem>>, %arg14: memref<2x64x32xf32, #tpu.memory_space<vmem>>, %arg15: memref<2x1x32xf32, #tpu.memory_space<vmem>>, %arg16: memref<32x32xf32, #tpu.memory_space<vmem>>, %arg17: memref<1x32xf32, #tpu.memory_space<vmem>>, %arg18: memref<32x2xf32, #tpu.memory_space<vmem>>, %arg19: memref<1x2xf32, #tpu.memory_space<vmem>>, %arg20: memref<32x32xf32, #tpu.memory_space<vmem>>, %arg21: memref<1x32xf32, #tpu.memory_space<vmem>>, %arg22: memref<1x32xf32, #tpu.memory_space<vmem>>, %arg23: memref<1x32xf32, #tpu.memory_space<vmem>>, %arg24: memref<32x32xf32, #tpu.memory_space<vmem>>, %arg25: memref<1x32xf32, #tpu.memory_space<vmem>>, %arg26: memref<2x2xf32, #tpu.memory_space<vmem>>, %arg27: memref<6x32xf32, #tpu.memory_space<vmem>>, %arg28: memref<16x32xf32, #tpu.memory_space<vmem>>) attributes {dimension_semantics = [], scalar_prefetch = 0 : i64, scratch_operands = 1 : i64, tpu.core_type = #tpu.core_type<tc>} {
    %c0 = arith.constant 0 : index
    %c0_0 = arith.constant 0 : index
    %0 = vector.load %arg0[%c0, %c0_0] : memref<16x32xf32, #tpu.memory_space<vmem>>, vector<16x32xf32>
    %c0_1 = arith.constant 0 : index
    %c0_2 = arith.constant 0 : index
    %1 = vector.load %arg4[%c0_1, %c0_2] : memref<1x32xf32, #tpu.memory_space<vmem>>, vector<1x32xf32>
    %c0_3 = arith.constant 0 : index
    %c0_4 = arith.constant 0 : index
    %2 = vector.load %arg5[%c0_3, %c0_4] : memref<1x32xf32, #tpu.memory_space<vmem>>, vector<1x32xf32>
    %cst = arith.constant dense<0.000000e+00> : vector<16xf32>
    %3 = vector.multi_reduction <add>, %0, %cst [1] : vector<16x32xf32> to vector<16xf32>
    %4 = vector.shape_cast %3 : vector<16xf32> to vector<16x1xf32>
    %cst_5 = arith.constant 3.200000e+01 : f32
    %5 = vector.broadcast %cst_5 : f32 to vector<16x1xf32>
    %6 = arith.divf %4, %5 : vector<16x1xf32>
    %7 = vector.broadcast %6 : vector<16x1xf32> to vector<16x32xf32>
    %8 = arith.subf %0, %7 : vector<16x32xf32>
    %9 = arith.mulf %8, %8 : vector<16x32xf32>
    %cst_6 = arith.constant dense<0.000000e+00> : vector<16xf32>
    %10 = vector.multi_reduction <add>, %9, %cst_6 [1] : vector<16x32xf32> to vector<16xf32>
    %11 = vector.shape_cast %10 : vector<16xf32> to vector<16x1xf32>
    %cst_7 = arith.constant 3.200000e+01 : f32
    %12 = vector.broadcast %cst_7 : f32 to vector<16x1xf32>
    %13 = arith.divf %11, %12 : vector<16x1xf32>
    %14 = vector.broadcast %6 : vector<16x1xf32> to vector<16x32xf32>
    %15 = arith.subf %0, %14 : vector<16x32xf32>
    %cst_8 = arith.constant 9.99999974E-6 : f32
    %16 = vector.broadcast %cst_8 : f32 to vector<16x1xf32>
    %17 = arith.addf %13, %16 : vector<16x1xf32>
    %18 = math.rsqrt %17 : vector<16x1xf32>
    %19 = vector.broadcast %18 : vector<16x1xf32> to vector<16x32xf32>
    %20 = arith.mulf %15, %19 : vector<16x32xf32>
    %21 = vector.broadcast %1 : vector<1x32xf32> to vector<16x32xf32>
    %22 = arith.mulf %20, %21 : vector<16x32xf32>
    %23 = vector.broadcast %2 : vector<1x32xf32> to vector<16x32xf32>
    %24 = arith.addf %22, %23 : vector<16x32xf32>
    %c0_9 = arith.constant 0 : index
    %c0_10 = arith.constant 0 : index
    %c0_11 = arith.constant 0 : index
    %25 = vector.load %arg6[%c0_9, %c0_10, %c0_11] : memref<2x32x96xf32, #tpu.memory_space<vmem>>, vector<1x32x96xf32>
    %26 = vector.shape_cast %25 : vector<1x32x96xf32> to vector<32x96xf32>
    %cst_12 = arith.constant dense<0.000000e+00> : vector<16x96xf32>
    %27 = tpu.matmul %24, %26, %cst_12 {dimension_numbers = #tpu.dot_dimension_numbers<[1], [0], [0], [1], [0, 0, 1, 1], [], []>} : vector<16x32xf32>, vector<32x96xf32>, vector<16x96xf32> -> vector<16x96xf32>
    %c0_13 = arith.constant 0 : index
    %c0_14 = arith.constant 0 : index
    %c0_15 = arith.constant 0 : index
    %28 = vector.load %arg7[%c0_13, %c0_14, %c0_15] : memref<2x1x96xf32, #tpu.memory_space<vmem>>, vector<1x1x96xf32>
    %29 = vector.shape_cast %28 : vector<1x1x96xf32> to vector<1x96xf32>
    %30 = vector.broadcast %29 : vector<1x96xf32> to vector<16x96xf32>
    %31 = arith.addf %27, %30 : vector<16x96xf32>
    %32 = vector.extract_strided_slice %31 {offsets = [0, 0], sizes = [8, 96], strides = [1, 1]} : vector<16x96xf32> to vector<8x96xf32>
    %c0_16 = arith.constant 0 : index
    %c0_17 = arith.constant 0 : index
    %c0_18 = arith.constant 0 : index
    %33 = vector.load %arg1[%c0_16, %c0_17, %c0_18] : memref<2x1x8xf32, #tpu.memory_space<vmem>>, vector<1x1x8xf32>
    %34 = vector.shape_cast %33 : vector<1x1x8xf32> to vector<1x8xf32>
    %35 = vector.extract_strided_slice %32 {offsets = [0, 0], sizes = [8, 8], strides = [1, 1]} : vector<8x96xf32> to vector<8x8xf32>
    %36 = vector.extract_strided_slice %32 {offsets = [0, 32], sizes = [8, 8], strides = [1, 1]} : vector<8x96xf32> to vector<8x8xf32>
    %37 = vector.extract_strided_slice %32 {offsets = [0, 64], sizes = [8, 8], strides = [1, 1]} : vector<8x96xf32> to vector<8x8xf32>
    %cst_19 = arith.constant dense<0.000000e+00> : vector<8x8xf32>
    %38 = tpu.matmul %35, %36, %cst_19 {dimension_numbers = #tpu.dot_dimension_numbers<[1], [1], [0], [0], [0, 0, 1, 0], [], []>} : vector<8x8xf32>, vector<8x8xf32>, vector<8x8xf32> -> vector<8x8xf32>
    %cst_20 = arith.constant 0.353553385 : f32
    %39 = vector.broadcast %cst_20 : f32 to vector<8x8xf32>
    %40 = arith.mulf %38, %39 : vector<8x8xf32>
    %41 = vector.broadcast %34 : vector<1x8xf32> to vector<8x8xf32>
    %42 = arith.addf %40, %41 : vector<8x8xf32>
    %cst_21 = arith.constant dense<0xFF800000> : vector<8xf32>
    %43 = vector.multi_reduction <maximumf>, %42, %cst_21 [1] : vector<8x8xf32> to vector<8xf32>
    %44 = vector.shape_cast %43 : vector<8xf32> to vector<8x1xf32>
    %45 = vector.broadcast %44 : vector<8x1xf32> to vector<8x8xf32>
    %46 = arith.subf %42, %45 : vector<8x8xf32>
    %47 = math.exp %46 : vector<8x8xf32>
    %cst_22 = arith.constant dense<0.000000e+00> : vector<8xf32>
    %48 = vector.multi_reduction <add>, %47, %cst_22 [1] : vector<8x8xf32> to vector<8xf32>
    %49 = vector.shape_cast %48 : vector<8xf32> to vector<8x1xf32>
    %50 = tpu.reciprocal %49 {approx = true} : vector<8x1xf32> -> vector<8x1xf32>
    %51 = vector.broadcast %50 : vector<8x1xf32> to vector<8x8xf32>
    %52 = arith.mulf %47, %51 : vector<8x8xf32>
    %cst_23 = arith.constant dense<0.000000e+00> : vector<8x8xf32>
    %53 = tpu.matmul %52, %37, %cst_23 {dimension_numbers = #tpu.dot_dimension_numbers<[1], [0], [0], [1], [0, 0, 1, 1], [], []>} : vector<8x8xf32>, vector<8x8xf32>, vector<8x8xf32> -> vector<8x8xf32>
    %c0_24 = arith.constant 0 : index
    %c0_25 = arith.constant 0 : index
    %54 = vector.load %arg28[%c0_24, %c0_25] : memref<16x32xf32, #tpu.memory_space<vmem>>, vector<8x8xf32>
    tpu.vector_store %arg28[%c0_24, %c0_25], %53 {strides = array<i32>} : memref<16x32xf32, #tpu.memory_space<vmem>>, vector<8x8xf32>,
    %55 = vector.extract_strided_slice %32 {offsets = [0, 8], sizes = [8, 8], strides = [1, 1]} : vector<8x96xf32> to vector<8x8xf32>
    %56 = vector.extract_strided_slice %32 {offsets = [0, 40], sizes = [8, 8], strides = [1, 1]} : vector<8x96xf32> to vector<8x8xf32>
    %57 = vector.extract_strided_slice %32 {offsets = [0, 72], sizes = [8, 8], strides = [1, 1]} : vector<8x96xf32> to vector<8x8xf32>
    %cst_26 = arith.constant dense<0.000000e+00> : vector<8x8xf32>
    %58 = tpu.matmul %55, %56, %cst_26 {dimension_numbers = #tpu.dot_dimension_numbers<[1], [1], [0], [0], [0, 0, 1, 0], [], []>} : vector<8x8xf32>, vector<8x8xf32>, vector<8x8xf32> -> vector<8x8xf32>
    %cst_27 = arith.constant 0.353553385 : f32
    %59 = vector.broadcast %cst_27 : f32 to vector<8x8xf32>
    %60 = arith.mulf %58, %59 : vector<8x8xf32>
    %61 = vector.broadcast %34 : vector<1x8xf32> to vector<8x8xf32>
    %62 = arith.addf %60, %61 : vector<8x8xf32>
    %cst_28 = arith.constant dense<0xFF800000> : vector<8xf32>
    %63 = vector.multi_reduction <maximumf>, %62, %cst_28 [1] : vector<8x8xf32> to vector<8xf32>
    %64 = vector.shape_cast %63 : vector<8xf32> to vector<8x1xf32>
    %65 = vector.broadcast %64 : vector<8x1xf32> to vector<8x8xf32>
    %66 = arith.subf %62, %65 : vector<8x8xf32>
    %67 = math.exp %66 : vector<8x8xf32>
    %cst_29 = arith.constant dense<0.000000e+00> : vector<8xf32>
    %68 = vector.multi_reduction <add>, %67, %cst_29 [1] : vector<8x8xf32> to vector<8xf32>
    %69 = vector.shape_cast %68 : vector<8xf32> to vector<8x1xf32>
    %70 = tpu.reciprocal %69 {approx = true} : vector<8x1xf32> -> vector<8x1xf32>
    %71 = vector.broadcast %70 : vector<8x1xf32> to vector<8x8xf32>
    %72 = arith.mulf %67, %71 : vector<8x8xf32>
    %cst_30 = arith.constant dense<0.000000e+00> : vector<8x8xf32>
    %73 = tpu.matmul %72, %57, %cst_30 {dimension_numbers = #tpu.dot_dimension_numbers<[1], [0], [0], [1], [0, 0, 1, 1], [], []>} : vector<8x8xf32>, vector<8x8xf32>, vector<8x8xf32> -> vector<8x8xf32>
    %c0_31 = arith.constant 0 : index
    %c8 = arith.constant 8 : index
    %74 = vector.load %arg28[%c0_31, %c8] : memref<16x32xf32, #tpu.memory_space<vmem>>, vector<8x8xf32>
    tpu.vector_store %arg28[%c0_31, %c8], %73 {strides = array<i32>} : memref<16x32xf32, #tpu.memory_space<vmem>>, vector<8x8xf32>,
    %75 = vector.extract_strided_slice %32 {offsets = [0, 16], sizes = [8, 8], strides = [1, 1]} : vector<8x96xf32> to vector<8x8xf32>
    %76 = vector.extract_strided_slice %32 {offsets = [0, 48], sizes = [8, 8], strides = [1, 1]} : vector<8x96xf32> to vector<8x8xf32>
    %77 = vector.extract_strided_slice %32 {offsets = [0, 80], sizes = [8, 8], strides = [1, 1]} : vector<8x96xf32> to vector<8x8xf32>
    %cst_32 = arith.constant dense<0.000000e+00> : vector<8x8xf32>
    %78 = tpu.matmul %75, %76, %cst_32 {dimension_numbers = #tpu.dot_dimension_numbers<[1], [1], [0], [0], [0, 0, 1, 0], [], []>} : vector<8x8xf32>, vector<8x8xf32>, vector<8x8xf32> -> vector<8x8xf32>
    %cst_33 = arith.constant 0.353553385 : f32
    %79 = vector.broadcast %cst_33 : f32 to vector<8x8xf32>
    %80 = arith.mulf %78, %79 : vector<8x8xf32>
    %81 = vector.broadcast %34 : vector<1x8xf32> to vector<8x8xf32>
    %82 = arith.addf %80, %81 : vector<8x8xf32>
    %cst_34 = arith.constant dense<0xFF800000> : vector<8xf32>
    %83 = vector.multi_reduction <maximumf>, %82, %cst_34 [1] : vector<8x8xf32> to vector<8xf32>
    %84 = vector.shape_cast %83 : vector<8xf32> to vector<8x1xf32>
    %85 = vector.broadcast %84 : vector<8x1xf32> to vector<8x8xf32>
    %86 = arith.subf %82, %85 : vector<8x8xf32>
    %87 = math.exp %86 : vector<8x8xf32>
    %cst_35 = arith.constant dense<0.000000e+00> : vector<8xf32>
    %88 = vector.multi_reduction <add>, %87, %cst_35 [1] : vector<8x8xf32> to vector<8xf32>
    %89 = vector.shape_cast %88 : vector<8xf32> to vector<8x1xf32>
    %90 = tpu.reciprocal %89 {approx = true} : vector<8x1xf32> -> vector<8x1xf32>
    %91 = vector.broadcast %90 : vector<8x1xf32> to vector<8x8xf32>
    %92 = arith.mulf %87, %91 : vector<8x8xf32>
    %cst_36 = arith.constant dense<0.000000e+00> : vector<8x8xf32>
    %93 = tpu.matmul %92, %77, %cst_36 {dimension_numbers = #tpu.dot_dimension_numbers<[1], [0], [0], [1], [0, 0, 1, 1], [], []>} : vector<8x8xf32>, vector<8x8xf32>, vector<8x8xf32> -> vector<8x8xf32>
    %c0_37 = arith.constant 0 : index
    %c16 = arith.constant 16 : index
    %94 = vector.load %arg28[%c0_37, %c16] : memref<16x32xf32, #tpu.memory_space<vmem>>, vector<8x8xf32>
    tpu.vector_store %arg28[%c0_37, %c16], %93 {strides = array<i32>} : memref<16x32xf32, #tpu.memory_space<vmem>>, vector<8x8xf32>,
    %95 = vector.extract_strided_slice %32 {offsets = [0, 24], sizes = [8, 8], strides = [1, 1]} : vector<8x96xf32> to vector<8x8xf32>
    %96 = vector.extract_strided_slice %32 {offsets = [0, 56], sizes = [8, 8], strides = [1, 1]} : vector<8x96xf32> to vector<8x8xf32>
    %97 = vector.extract_strided_slice %32 {offsets = [0, 88], sizes = [8, 8], strides = [1, 1]} : vector<8x96xf32> to vector<8x8xf32>
    %cst_38 = arith.constant dense<0.000000e+00> : vector<8x8xf32>
    %98 = tpu.matmul %95, %96, %cst_38 {dimension_numbers = #tpu.dot_dimension_numbers<[1], [1], [0], [0], [0, 0, 1, 0], [], []>} : vector<8x8xf32>, vector<8x8xf32>, vector<8x8xf32> -> vector<8x8xf32>
    %cst_39 = arith.constant 0.353553385 : f32
    %99 = vector.broadcast %cst_39 : f32 to vector<8x8xf32>
    %100 = arith.mulf %98, %99 : vector<8x8xf32>
    %101 = vector.broadcast %34 : vector<1x8xf32> to vector<8x8xf32>
    %102 = arith.addf %100, %101 : vector<8x8xf32>
    %cst_40 = arith.constant dense<0xFF800000> : vector<8xf32>
    %103 = vector.multi_reduction <maximumf>, %102, %cst_40 [1] : vector<8x8xf32> to vector<8xf32>
    %104 = vector.shape_cast %103 : vector<8xf32> to vector<8x1xf32>
    %105 = vector.broadcast %104 : vector<8x1xf32> to vector<8x8xf32>
    %106 = arith.subf %102, %105 : vector<8x8xf32>
    %107 = math.exp %106 : vector<8x8xf32>
    %cst_41 = arith.constant dense<0.000000e+00> : vector<8xf32>
    %108 = vector.multi_reduction <add>, %107, %cst_41 [1] : vector<8x8xf32> to vector<8xf32>
    %109 = vector.shape_cast %108 : vector<8xf32> to vector<8x1xf32>
    %110 = tpu.reciprocal %109 {approx = true} : vector<8x1xf32> -> vector<8x1xf32>
    %111 = vector.broadcast %110 : vector<8x1xf32> to vector<8x8xf32>
    %112 = arith.mulf %107, %111 : vector<8x8xf32>
    %cst_42 = arith.constant dense<0.000000e+00> : vector<8x8xf32>
    %113 = tpu.matmul %112, %97, %cst_42 {dimension_numbers = #tpu.dot_dimension_numbers<[1], [0], [0], [1], [0, 0, 1, 1], [], []>} : vector<8x8xf32>, vector<8x8xf32>, vector<8x8xf32> -> vector<8x8xf32>
    %c0_43 = arith.constant 0 : index
    %c24 = arith.constant 24 : index
    %114 = vector.load %arg28[%c0_43, %c24] : memref<16x32xf32, #tpu.memory_space<vmem>>, vector<8x8xf32>
    tpu.vector_store %arg28[%c0_43, %c24], %113 {strides = array<i32>} : memref<16x32xf32, #tpu.memory_space<vmem>>, vector<8x8xf32>,
    %115 = vector.extract_strided_slice %31 {offsets = [8, 0], sizes = [8, 96], strides = [1, 1]} : vector<16x96xf32> to vector<8x96xf32>
    %c1 = arith.constant 1 : index
    %c0_44 = arith.constant 0 : index
    %c0_45 = arith.constant 0 : index
    %116 = vector.load %arg1[%c1, %c0_44, %c0_45] : memref<2x1x8xf32, #tpu.memory_space<vmem>>, vector<1x1x8xf32>
    %117 = vector.shape_cast %116 : vector<1x1x8xf32> to vector<1x8xf32>
    %118 = vector.extract_strided_slice %115 {offsets = [0, 0], sizes = [8, 8], strides = [1, 1]} : vector<8x96xf32> to vector<8x8xf32>
    %119 = vector.extract_strided_slice %115 {offsets = [0, 32], sizes = [8, 8], strides = [1, 1]} : vector<8x96xf32> to vector<8x8xf32>
    %120 = vector.extract_strided_slice %115 {offsets = [0, 64], sizes = [8, 8], strides = [1, 1]} : vector<8x96xf32> to vector<8x8xf32>
    %cst_46 = arith.constant dense<0.000000e+00> : vector<8x8xf32>
    %121 = tpu.matmul %118, %119, %cst_46 {dimension_numbers = #tpu.dot_dimension_numbers<[1], [1], [0], [0], [0, 0, 1, 0], [], []>} : vector<8x8xf32>, vector<8x8xf32>, vector<8x8xf32> -> vector<8x8xf32>
    %cst_47 = arith.constant 0.353553385 : f32
    %122 = vector.broadcast %cst_47 : f32 to vector<8x8xf32>
    %123 = arith.mulf %121, %122 : vector<8x8xf32>
    %124 = vector.broadcast %117 : vector<1x8xf32> to vector<8x8xf32>
    %125 = arith.addf %123, %124 : vector<8x8xf32>
    %cst_48 = arith.constant dense<0xFF800000> : vector<8xf32>
    %126 = vector.multi_reduction <maximumf>, %125, %cst_48 [1] : vector<8x8xf32> to vector<8xf32>
    %127 = vector.shape_cast %126 : vector<8xf32> to vector<8x1xf32>
    %128 = vector.broadcast %127 : vector<8x1xf32> to vector<8x8xf32>
    %129 = arith.subf %125, %128 : vector<8x8xf32>
    %130 = math.exp %129 : vector<8x8xf32>
    %cst_49 = arith.constant dense<0.000000e+00> : vector<8xf32>
    %131 = vector.multi_reduction <add>, %130, %cst_49 [1] : vector<8x8xf32> to vector<8xf32>
    %132 = vector.shape_cast %131 : vector<8xf32> to vector<8x1xf32>
    %133 = tpu.reciprocal %132 {approx = true} : vector<8x1xf32> -> vector<8x1xf32>
    %134 = vector.broadcast %133 : vector<8x1xf32> to vector<8x8xf32>
    %135 = arith.mulf %130, %134 : vector<8x8xf32>
    %cst_50 = arith.constant dense<0.000000e+00> : vector<8x8xf32>
    %136 = tpu.matmul %135, %120, %cst_50 {dimension_numbers = #tpu.dot_dimension_numbers<[1], [0], [0], [1], [0, 0, 1, 1], [], []>} : vector<8x8xf32>, vector<8x8xf32>, vector<8x8xf32> -> vector<8x8xf32>
    %c8_51 = arith.constant 8 : index
    %c0_52 = arith.constant 0 : index
    %137 = vector.load %arg28[%c8_51, %c0_52] : memref<16x32xf32, #tpu.memory_space<vmem>>, vector<8x8xf32>
    tpu.vector_store %arg28[%c8_51, %c0_52], %136 {strides = array<i32>} : memref<16x32xf32, #tpu.memory_space<vmem>>, vector<8x8xf32>,
    %138 = vector.extract_strided_slice %115 {offsets = [0, 8], sizes = [8, 8], strides = [1, 1]} : vector<8x96xf32> to vector<8x8xf32>
    %139 = vector.extract_strided_slice %115 {offsets = [0, 40], sizes = [8, 8], strides = [1, 1]} : vector<8x96xf32> to vector<8x8xf32>
    %140 = vector.extract_strided_slice %115 {offsets = [0, 72], sizes = [8, 8], strides = [1, 1]} : vector<8x96xf32> to vector<8x8xf32>
    %cst_53 = arith.constant dense<0.000000e+00> : vector<8x8xf32>
    %141 = tpu.matmul %138, %139, %cst_53 {dimension_numbers = #tpu.dot_dimension_numbers<[1], [1], [0], [0], [0, 0, 1, 0], [], []>} : vector<8x8xf32>, vector<8x8xf32>, vector<8x8xf32> -> vector<8x8xf32>
    %cst_54 = arith.constant 0.353553385 : f32
    %142 = vector.broadcast %cst_54 : f32 to vector<8x8xf32>
    %143 = arith.mulf %141, %142 : vector<8x8xf32>
    %144 = vector.broadcast %117 : vector<1x8xf32> to vector<8x8xf32>
    %145 = arith.addf %143, %144 : vector<8x8xf32>
    %cst_55 = arith.constant dense<0xFF800000> : vector<8xf32>
    %146 = vector.multi_reduction <maximumf>, %145, %cst_55 [1] : vector<8x8xf32> to vector<8xf32>
    %147 = vector.shape_cast %146 : vector<8xf32> to vector<8x1xf32>
    %148 = vector.broadcast %147 : vector<8x1xf32> to vector<8x8xf32>
    %149 = arith.subf %145, %148 : vector<8x8xf32>
    %150 = math.exp %149 : vector<8x8xf32>
    %cst_56 = arith.constant dense<0.000000e+00> : vector<8xf32>
    %151 = vector.multi_reduction <add>, %150, %cst_56 [1] : vector<8x8xf32> to vector<8xf32>
    %152 = vector.shape_cast %151 : vector<8xf32> to vector<8x1xf32>
    %153 = tpu.reciprocal %152 {approx = true} : vector<8x1xf32> -> vector<8x1xf32>
    %154 = vector.broadcast %153 : vector<8x1xf32> to vector<8x8xf32>
    %155 = arith.mulf %150, %154 : vector<8x8xf32>
    %cst_57 = arith.constant dense<0.000000e+00> : vector<8x8xf32>
    %156 = tpu.matmul %155, %140, %cst_57 {dimension_numbers = #tpu.dot_dimension_numbers<[1], [0], [0], [1], [0, 0, 1, 1], [], []>} : vector<8x8xf32>, vector<8x8xf32>, vector<8x8xf32> -> vector<8x8xf32>
    %c8_58 = arith.constant 8 : index
    %c8_59 = arith.constant 8 : index
    %157 = vector.load %arg28[%c8_58, %c8_59] : memref<16x32xf32, #tpu.memory_space<vmem>>, vector<8x8xf32>
    tpu.vector_store %arg28[%c8_58, %c8_59], %156 {strides = array<i32>} : memref<16x32xf32, #tpu.memory_space<vmem>>, vector<8x8xf32>,
    %158 = vector.extract_strided_slice %115 {offsets = [0, 16], sizes = [8, 8], strides = [1, 1]} : vector<8x96xf32> to vector<8x8xf32>
    %159 = vector.extract_strided_slice %115 {offsets = [0, 48], sizes = [8, 8], strides = [1, 1]} : vector<8x96xf32> to vector<8x8xf32>
    %160 = vector.extract_strided_slice %115 {offsets = [0, 80], sizes = [8, 8], strides = [1, 1]} : vector<8x96xf32> to vector<8x8xf32>
    %cst_60 = arith.constant dense<0.000000e+00> : vector<8x8xf32>
    %161 = tpu.matmul %158, %159, %cst_60 {dimension_numbers = #tpu.dot_dimension_numbers<[1], [1], [0], [0], [0, 0, 1, 0], [], []>} : vector<8x8xf32>, vector<8x8xf32>, vector<8x8xf32> -> vector<8x8xf32>
    %cst_61 = arith.constant 0.353553385 : f32
    %162 = vector.broadcast %cst_61 : f32 to vector<8x8xf32>
    %163 = arith.mulf %161, %162 : vector<8x8xf32>
    %164 = vector.broadcast %117 : vector<1x8xf32> to vector<8x8xf32>
    %165 = arith.addf %163, %164 : vector<8x8xf32>
    %cst_62 = arith.constant dense<0xFF800000> : vector<8xf32>
    %166 = vector.multi_reduction <maximumf>, %165, %cst_62 [1] : vector<8x8xf32> to vector<8xf32>
    %167 = vector.shape_cast %166 : vector<8xf32> to vector<8x1xf32>
    %168 = vector.broadcast %167 : vector<8x1xf32> to vector<8x8xf32>
    %169 = arith.subf %165, %168 : vector<8x8xf32>
    %170 = math.exp %169 : vector<8x8xf32>
    %cst_63 = arith.constant dense<0.000000e+00> : vector<8xf32>
    %171 = vector.multi_reduction <add>, %170, %cst_63 [1] : vector<8x8xf32> to vector<8xf32>
    %172 = vector.shape_cast %171 : vector<8xf32> to vector<8x1xf32>
    %173 = tpu.reciprocal %172 {approx = true} : vector<8x1xf32> -> vector<8x1xf32>
    %174 = vector.broadcast %173 : vector<8x1xf32> to vector<8x8xf32>
    %175 = arith.mulf %170, %174 : vector<8x8xf32>
    %cst_64 = arith.constant dense<0.000000e+00> : vector<8x8xf32>
    %176 = tpu.matmul %175, %160, %cst_64 {dimension_numbers = #tpu.dot_dimension_numbers<[1], [0], [0], [1], [0, 0, 1, 1], [], []>} : vector<8x8xf32>, vector<8x8xf32>, vector<8x8xf32> -> vector<8x8xf32>
    %c8_65 = arith.constant 8 : index
    %c16_66 = arith.constant 16 : index
    %177 = vector.load %arg28[%c8_65, %c16_66] : memref<16x32xf32, #tpu.memory_space<vmem>>, vector<8x8xf32>
    tpu.vector_store %arg28[%c8_65, %c16_66], %176 {strides = array<i32>} : memref<16x32xf32, #tpu.memory_space<vmem>>, vector<8x8xf32>,
    %178 = vector.extract_strided_slice %115 {offsets = [0, 24], sizes = [8, 8], strides = [1, 1]} : vector<8x96xf32> to vector<8x8xf32>
    %179 = vector.extract_strided_slice %115 {offsets = [0, 56], sizes = [8, 8], strides = [1, 1]} : vector<8x96xf32> to vector<8x8xf32>
    %180 = vector.extract_strided_slice %115 {offsets = [0, 88], sizes = [8, 8], strides = [1, 1]} : vector<8x96xf32> to vector<8x8xf32>
    %cst_67 = arith.constant dense<0.000000e+00> : vector<8x8xf32>
    %181 = tpu.matmul %178, %179, %cst_67 {dimension_numbers = #tpu.dot_dimension_numbers<[1], [1], [0], [0], [0, 0, 1, 0], [], []>} : vector<8x8xf32>, vector<8x8xf32>, vector<8x8xf32> -> vector<8x8xf32>
    %cst_68 = arith.constant 0.353553385 : f32
    %182 = vector.broadcast %cst_68 : f32 to vector<8x8xf32>
    %183 = arith.mulf %181, %182 : vector<8x8xf32>
    %184 = vector.broadcast %117 : vector<1x8xf32> to vector<8x8xf32>
    %185 = arith.addf %183, %184 : vector<8x8xf32>
    %cst_69 = arith.constant dense<0xFF800000> : vector<8xf32>
    %186 = vector.multi_reduction <maximumf>, %185, %cst_69 [1] : vector<8x8xf32> to vector<8xf32>
    %187 = vector.shape_cast %186 : vector<8xf32> to vector<8x1xf32>
    %188 = vector.broadcast %187 : vector<8x1xf32> to vector<8x8xf32>
    %189 = arith.subf %185, %188 : vector<8x8xf32>
    %190 = math.exp %189 : vector<8x8xf32>
    %cst_70 = arith.constant dense<0.000000e+00> : vector<8xf32>
    %191 = vector.multi_reduction <add>, %190, %cst_70 [1] : vector<8x8xf32> to vector<8xf32>
    %192 = vector.shape_cast %191 : vector<8xf32> to vector<8x1xf32>
    %193 = tpu.reciprocal %192 {approx = true} : vector<8x1xf32> -> vector<8x1xf32>
    %194 = vector.broadcast %193 : vector<8x1xf32> to vector<8x8xf32>
    %195 = arith.mulf %190, %194 : vector<8x8xf32>
    %cst_71 = arith.constant dense<0.000000e+00> : vector<8x8xf32>
    %196 = tpu.matmul %195, %180, %cst_71 {dimension_numbers = #tpu.dot_dimension_numbers<[1], [0], [0], [1], [0, 0, 1, 1], [], []>} : vector<8x8xf32>, vector<8x8xf32>, vector<8x8xf32> -> vector<8x8xf32>
    %c8_72 = arith.constant 8 : index
    %c24_73 = arith.constant 24 : index
    %197 = vector.load %arg28[%c8_72, %c24_73] : memref<16x32xf32, #tpu.memory_space<vmem>>, vector<8x8xf32>
    tpu.vector_store %arg28[%c8_72, %c24_73], %196 {strides = array<i32>} : memref<16x32xf32, #tpu.memory_space<vmem>>, vector<8x8xf32>,
    %c0_74 = arith.constant 0 : index
    %c0_75 = arith.constant 0 : index
    %198 = vector.load %arg28[%c0_74, %c0_75] : memref<16x32xf32, #tpu.memory_space<vmem>>, vector<16x32xf32>
    %c0_76 = arith.constant 0 : index
    %c0_77 = arith.constant 0 : index
    %c0_78 = arith.constant 0 : index
    %199 = vector.load %arg8[%c0_76, %c0_77, %c0_78] : memref<2x32x32xf32, #tpu.memory_space<vmem>>, vector<1x32x32xf32>
    %200 = vector.shape_cast %199 : vector<1x32x32xf32> to vector<32x32xf32>
    %cst_79 = arith.constant dense<0.000000e+00> : vector<16x32xf32>
    %201 = tpu.matmul %198, %200, %cst_79 {dimension_numbers = #tpu.dot_dimension_numbers<[1], [0], [0], [1], [0, 0, 1, 1], [], []>} : vector<16x32xf32>, vector<32x32xf32>, vector<16x32xf32> -> vector<16x32xf32>
    %c0_80 = arith.constant 0 : index
    %c0_81 = arith.constant 0 : index
    %c0_82 = arith.constant 0 : index
    %202 = vector.load %arg9[%c0_80, %c0_81, %c0_82] : memref<2x1x32xf32, #tpu.memory_space<vmem>>, vector<1x1x32xf32>
    %203 = vector.shape_cast %202 : vector<1x1x32xf32> to vector<1x32xf32>
    %204 = vector.broadcast %203 : vector<1x32xf32> to vector<16x32xf32>
    %205 = arith.addf %201, %204 : vector<16x32xf32>
    %206 = arith.addf %205, %24 : vector<16x32xf32>
    %c0_83 = arith.constant 0 : index
    %c0_84 = arith.constant 0 : index
    %c0_85 = arith.constant 0 : index
    %207 = vector.load %arg10[%c0_83, %c0_84, %c0_85] : memref<2x1x32xf32, #tpu.memory_space<vmem>>, vector<1x1x32xf32>
    %208 = vector.shape_cast %207 : vector<1x1x32xf32> to vector<1x32xf32>
    %c0_86 = arith.constant 0 : index
    %c0_87 = arith.constant 0 : index
    %c0_88 = arith.constant 0 : index
    %209 = vector.load %arg11[%c0_86, %c0_87, %c0_88] : memref<2x1x32xf32, #tpu.memory_space<vmem>>, vector<1x1x32xf32>
    %210 = vector.shape_cast %209 : vector<1x1x32xf32> to vector<1x32xf32>
    %cst_89 = arith.constant dense<0.000000e+00> : vector<16xf32>
    %211 = vector.multi_reduction <add>, %206, %cst_89 [1] : vector<16x32xf32> to vector<16xf32>
    %212 = vector.shape_cast %211 : vector<16xf32> to vector<16x1xf32>
    %cst_90 = arith.constant 3.200000e+01 : f32
    %213 = vector.broadcast %cst_90 : f32 to vector<16x1xf32>
    %214 = arith.divf %212, %213 : vector<16x1xf32>
    %215 = vector.broadcast %214 : vector<16x1xf32> to vector<16x32xf32>
    %216 = arith.subf %206, %215 : vector<16x32xf32>
    %217 = arith.mulf %216, %216 : vector<16x32xf32>
    %cst_91 = arith.constant dense<0.000000e+00> : vector<16xf32>
    %218 = vector.multi_reduction <add>, %217, %cst_91 [1] : vector<16x32xf32> to vector<16xf32>
    %219 = vector.shape_cast %218 : vector<16xf32> to vector<16x1xf32>
    %cst_92 = arith.constant 3.200000e+01 : f32
    %220 = vector.broadcast %cst_92 : f32 to vector<16x1xf32>
    %221 = arith.divf %219, %220 : vector<16x1xf32>
    %222 = vector.broadcast %214 : vector<16x1xf32> to vector<16x32xf32>
    %223 = arith.subf %206, %222 : vector<16x32xf32>
    %cst_93 = arith.constant 9.99999974E-6 : f32
    %224 = vector.broadcast %cst_93 : f32 to vector<16x1xf32>
    %225 = arith.addf %221, %224 : vector<16x1xf32>
    %226 = math.rsqrt %225 : vector<16x1xf32>
    %227 = vector.broadcast %226 : vector<16x1xf32> to vector<16x32xf32>
    %228 = arith.mulf %223, %227 : vector<16x32xf32>
    %229 = vector.broadcast %208 : vector<1x32xf32> to vector<16x32xf32>
    %230 = arith.mulf %228, %229 : vector<16x32xf32>
    %231 = vector.broadcast %210 : vector<1x32xf32> to vector<16x32xf32>
    %232 = arith.addf %230, %231 : vector<16x32xf32>
    %c0_94 = arith.constant 0 : index
    %c0_95 = arith.constant 0 : index
    %c0_96 = arith.constant 0 : index
    %233 = vector.load %arg12[%c0_94, %c0_95, %c0_96] : memref<2x32x64xf32, #tpu.memory_space<vmem>>, vector<1x32x64xf32>
    %234 = vector.shape_cast %233 : vector<1x32x64xf32> to vector<32x64xf32>
    %cst_97 = arith.constant dense<0.000000e+00> : vector<16x64xf32>
    %235 = tpu.matmul %232, %234, %cst_97 {dimension_numbers = #tpu.dot_dimension_numbers<[1], [0], [0], [1], [0, 0, 1, 1], [], []>} : vector<16x32xf32>, vector<32x64xf32>, vector<16x64xf32> -> vector<16x64xf32>
    %c0_98 = arith.constant 0 : index
    %c0_99 = arith.constant 0 : index
    %c0_100 = arith.constant 0 : index
    %236 = vector.load %arg13[%c0_98, %c0_99, %c0_100] : memref<2x1x64xf32, #tpu.memory_space<vmem>>, vector<1x1x64xf32>
    %237 = vector.shape_cast %236 : vector<1x1x64xf32> to vector<1x64xf32>
    %238 = vector.broadcast %237 : vector<1x64xf32> to vector<16x64xf32>
    %239 = arith.addf %235, %238 : vector<16x64xf32>
    %cst_101 = arith.constant 5.000000e-01 : f32
    %240 = vector.broadcast %cst_101 : f32 to vector<16x64xf32>
    %241 = arith.mulf %239, %240 : vector<16x64xf32>
    %cst_102 = arith.constant 0.707106769 : f32
    %242 = vector.broadcast %cst_102 : f32 to vector<16x64xf32>
    %243 = arith.mulf %239, %242 : vector<16x64xf32>
    %cst_103 = arith.constant 0.000000e+00 : f32
    %244 = vector.broadcast %cst_103 : f32 to vector<16x64xf32>
    %245 = arith.cmpf olt, %243, %244 : vector<16x64xf32>
    %cst_104 = arith.constant -1.000000e+00 : f32
    %cst_105 = arith.constant 1.000000e+00 : f32
    %246 = vector.broadcast %cst_104 : f32 to vector<16x64xf32>
    %247 = vector.broadcast %cst_105 : f32 to vector<16x64xf32>
    %248 = arith.select %245, %246, %247 : vector<16x64xi1>, vector<16x64xf32>
    %249 = math.absf %243 : vector<16x64xf32>
    %cst_106 = arith.constant 0.327591091 : f32
    %250 = vector.broadcast %cst_106 : f32 to vector<16x64xf32>
    %251 = arith.mulf %250, %249 : vector<16x64xf32>
    %cst_107 = arith.constant 1.000000e+00 : f32
    %252 = vector.broadcast %cst_107 : f32 to vector<16x64xf32>
    %253 = arith.addf %252, %251 : vector<16x64xf32>
    %cst_108 = arith.constant 1.000000e+00 : f32
    %254 = vector.broadcast %cst_108 : f32 to vector<16x64xf32>
    %255 = arith.divf %254, %253 : vector<16x64xf32>
    %cst_109 = arith.constant 1.06140542 : f32
    %256 = vector.broadcast %cst_109 : f32 to vector<16x64xf32>
    %257 = arith.mulf %255, %256 : vector<16x64xf32>
    %cst_110 = arith.constant -1.45315206 : f32
    %258 = vector.broadcast %cst_110 : f32 to vector<16x64xf32>
    %259 = arith.addf %258, %257 : vector<16x64xf32>
    %260 = arith.mulf %255, %259 : vector<16x64xf32>
    %cst_111 = arith.constant 1.42141378 : f32
    %261 = vector.broadcast %cst_111 : f32 to vector<16x64xf32>
    %262 = arith.addf %261, %260 : vector<16x64xf32>
    %263 = arith.mulf %255, %262 : vector<16x64xf32>
    %cst_112 = arith.constant -0.284496725 : f32
    %264 = vector.broadcast %cst_112 : f32 to vector<16x64xf32>
    %265 = arith.addf %264, %263 : vector<16x64xf32>
    %266 = arith.mulf %255, %265 : vector<16x64xf32>
    %cst_113 = arith.constant 0.254829586 : f32
    %267 = vector.broadcast %cst_113 : f32 to vector<16x64xf32>
    %268 = arith.addf %267, %266 : vector<16x64xf32>
    %269 = arith.mulf %255, %268 : vector<16x64xf32>
    %cst_114 = arith.constant 0.000000e+00 : f32
    %270 = vector.broadcast %cst_114 : f32 to vector<16x64xf32>
    %271 = arith.subf %270, %249 : vector<16x64xf32>
    %272 = arith.mulf %271, %249 : vector<16x64xf32>
    %273 = math.exp %272 : vector<16x64xf32>
    %274 = arith.mulf %269, %273 : vector<16x64xf32>
    %cst_115 = arith.constant 1.000000e+00 : f32
    %275 = vector.broadcast %cst_115 : f32 to vector<16x64xf32>
    %276 = arith.subf %275, %274 : vector<16x64xf32>
    %277 = arith.mulf %248, %276 : vector<16x64xf32>
    %cst_116 = arith.constant 1.000000e+00 : f32
    %278 = vector.broadcast %cst_116 : f32 to vector<16x64xf32>
    %279 = arith.addf %278, %277 : vector<16x64xf32>
    %280 = arith.mulf %241, %279 : vector<16x64xf32>
    %c0_117 = arith.constant 0 : index
    %c0_118 = arith.constant 0 : index
    %c0_119 = arith.constant 0 : index
    %281 = vector.load %arg14[%c0_117, %c0_118, %c0_119] : memref<2x64x32xf32, #tpu.memory_space<vmem>>, vector<1x64x32xf32>
    %282 = vector.shape_cast %281 : vector<1x64x32xf32> to vector<64x32xf32>
    %cst_120 = arith.constant dense<0.000000e+00> : vector<16x32xf32>
    %283 = tpu.matmul %280, %282, %cst_120 {dimension_numbers = #tpu.dot_dimension_numbers<[1], [0], [0], [1], [0, 0, 1, 1], [], []>} : vector<16x64xf32>, vector<64x32xf32>, vector<16x32xf32> -> vector<16x32xf32>
    %c0_121 = arith.constant 0 : index
    %c0_122 = arith.constant 0 : index
    %c0_123 = arith.constant 0 : index
    %284 = vector.load %arg15[%c0_121, %c0_122, %c0_123] : memref<2x1x32xf32, #tpu.memory_space<vmem>>, vector<1x1x32xf32>
    %285 = vector.shape_cast %284 : vector<1x1x32xf32> to vector<1x32xf32>
    %286 = vector.broadcast %285 : vector<1x32xf32> to vector<16x32xf32>
    %287 = arith.addf %283, %286 : vector<16x32xf32>
    %c1_124 = arith.constant 1 : index
    %c0_125 = arith.constant 0 : index
    %c0_126 = arith.constant 0 : index
    %288 = vector.load %arg6[%c1_124, %c0_125, %c0_126] : memref<2x32x96xf32, #tpu.memory_space<vmem>>, vector<1x32x96xf32>
    %289 = vector.shape_cast %288 : vector<1x32x96xf32> to vector<32x96xf32>
    %cst_127 = arith.constant dense<0.000000e+00> : vector<16x96xf32>
    %290 = tpu.matmul %287, %289, %cst_127 {dimension_numbers = #tpu.dot_dimension_numbers<[1], [0], [0], [1], [0, 0, 1, 1], [], []>} : vector<16x32xf32>, vector<32x96xf32>, vector<16x96xf32> -> vector<16x96xf32>
    %c1_128 = arith.constant 1 : index
    %c0_129 = arith.constant 0 : index
    %c0_130 = arith.constant 0 : index
    %291 = vector.load %arg7[%c1_128, %c0_129, %c0_130] : memref<2x1x96xf32, #tpu.memory_space<vmem>>, vector<1x1x96xf32>
    %292 = vector.shape_cast %291 : vector<1x1x96xf32> to vector<1x96xf32>
    %293 = vector.broadcast %292 : vector<1x96xf32> to vector<16x96xf32>
    %294 = arith.addf %290, %293 : vector<16x96xf32>
    %295 = vector.extract_strided_slice %294 {offsets = [0, 0], sizes = [8, 96], strides = [1, 1]} : vector<16x96xf32> to vector<8x96xf32>
    %c0_131 = arith.constant 0 : index
    %c0_132 = arith.constant 0 : index
    %c0_133 = arith.constant 0 : index
    %296 = vector.load %arg1[%c0_131, %c0_132, %c0_133] : memref<2x1x8xf32, #tpu.memory_space<vmem>>, vector<1x1x8xf32>
    %297 = vector.shape_cast %296 : vector<1x1x8xf32> to vector<1x8xf32>
    %298 = vector.extract_strided_slice %295 {offsets = [0, 0], sizes = [8, 8], strides = [1, 1]} : vector<8x96xf32> to vector<8x8xf32>
    %299 = vector.extract_strided_slice %295 {offsets = [0, 32], sizes = [8, 8], strides = [1, 1]} : vector<8x96xf32> to vector<8x8xf32>
    %300 = vector.extract_strided_slice %295 {offsets = [0, 64], sizes = [8, 8], strides = [1, 1]} : vector<8x96xf32> to vector<8x8xf32>
    %cst_134 = arith.constant dense<0.000000e+00> : vector<8x8xf32>
    %301 = tpu.matmul %298, %299, %cst_134 {dimension_numbers = #tpu.dot_dimension_numbers<[1], [1], [0], [0], [0, 0, 1, 0], [], []>} : vector<8x8xf32>, vector<8x8xf32>, vector<8x8xf32> -> vector<8x8xf32>
    %cst_135 = arith.constant 0.353553385 : f32
    %302 = vector.broadcast %cst_135 : f32 to vector<8x8xf32>
    %303 = arith.mulf %301, %302 : vector<8x8xf32>
    %304 = vector.broadcast %297 : vector<1x8xf32> to vector<8x8xf32>
    %305 = arith.addf %303, %304 : vector<8x8xf32>
    %cst_136 = arith.constant dense<0xFF800000> : vector<8xf32>
    %306 = vector.multi_reduction <maximumf>, %305, %cst_136 [1] : vector<8x8xf32> to vector<8xf32>
    %307 = vector.shape_cast %306 : vector<8xf32> to vector<8x1xf32>
    %308 = vector.broadcast %307 : vector<8x1xf32> to vector<8x8xf32>
    %309 = arith.subf %305, %308 : vector<8x8xf32>
    %310 = math.exp %309 : vector<8x8xf32>
    %cst_137 = arith.constant dense<0.000000e+00> : vector<8xf32>
    %311 = vector.multi_reduction <add>, %310, %cst_137 [1] : vector<8x8xf32> to vector<8xf32>
    %312 = vector.shape_cast %311 : vector<8xf32> to vector<8x1xf32>
    %313 = tpu.reciprocal %312 {approx = true} : vector<8x1xf32> -> vector<8x1xf32>
    %314 = vector.broadcast %313 : vector<8x1xf32> to vector<8x8xf32>
    %315 = arith.mulf %310, %314 : vector<8x8xf32>
    %cst_138 = arith.constant dense<0.000000e+00> : vector<8x8xf32>
    %316 = tpu.matmul %315, %300, %cst_138 {dimension_numbers = #tpu.dot_dimension_numbers<[1], [0], [0], [1], [0, 0, 1, 1], [], []>} : vector<8x8xf32>, vector<8x8xf32>, vector<8x8xf32> -> vector<8x8xf32>
    %c0_139 = arith.constant 0 : index
    %c0_140 = arith.constant 0 : index
    %317 = vector.load %arg28[%c0_139, %c0_140] : memref<16x32xf32, #tpu.memory_space<vmem>>, vector<8x8xf32>
    tpu.vector_store %arg28[%c0_139, %c0_140], %316 {strides = array<i32>} : memref<16x32xf32, #tpu.memory_space<vmem>>, vector<8x8xf32>,
    %318 = vector.extract_strided_slice %295 {offsets = [0, 8], sizes = [8, 8], strides = [1, 1]} : vector<8x96xf32> to vector<8x8xf32>
    %319 = vector.extract_strided_slice %295 {offsets = [0, 40], sizes = [8, 8], strides = [1, 1]} : vector<8x96xf32> to vector<8x8xf32>
    %320 = vector.extract_strided_slice %295 {offsets = [0, 72], sizes = [8, 8], strides = [1, 1]} : vector<8x96xf32> to vector<8x8xf32>
    %cst_141 = arith.constant dense<0.000000e+00> : vector<8x8xf32>
    %321 = tpu.matmul %318, %319, %cst_141 {dimension_numbers = #tpu.dot_dimension_numbers<[1], [1], [0], [0], [0, 0, 1, 0], [], []>} : vector<8x8xf32>, vector<8x8xf32>, vector<8x8xf32> -> vector<8x8xf32>
    %cst_142 = arith.constant 0.353553385 : f32
    %322 = vector.broadcast %cst_142 : f32 to vector<8x8xf32>
    %323 = arith.mulf %321, %322 : vector<8x8xf32>
    %324 = vector.broadcast %297 : vector<1x8xf32> to vector<8x8xf32>
    %325 = arith.addf %323, %324 : vector<8x8xf32>
    %cst_143 = arith.constant dense<0xFF800000> : vector<8xf32>
    %326 = vector.multi_reduction <maximumf>, %325, %cst_143 [1] : vector<8x8xf32> to vector<8xf32>
    %327 = vector.shape_cast %326 : vector<8xf32> to vector<8x1xf32>
    %328 = vector.broadcast %327 : vector<8x1xf32> to vector<8x8xf32>
    %329 = arith.subf %325, %328 : vector<8x8xf32>
    %330 = math.exp %329 : vector<8x8xf32>
    %cst_144 = arith.constant dense<0.000000e+00> : vector<8xf32>
    %331 = vector.multi_reduction <add>, %330, %cst_144 [1] : vector<8x8xf32> to vector<8xf32>
    %332 = vector.shape_cast %331 : vector<8xf32> to vector<8x1xf32>
    %333 = tpu.reciprocal %332 {approx = true} : vector<8x1xf32> -> vector<8x1xf32>
    %334 = vector.broadcast %333 : vector<8x1xf32> to vector<8x8xf32>
    %335 = arith.mulf %330, %334 : vector<8x8xf32>
    %cst_145 = arith.constant dense<0.000000e+00> : vector<8x8xf32>
    %336 = tpu.matmul %335, %320, %cst_145 {dimension_numbers = #tpu.dot_dimension_numbers<[1], [0], [0], [1], [0, 0, 1, 1], [], []>} : vector<8x8xf32>, vector<8x8xf32>, vector<8x8xf32> -> vector<8x8xf32>
    %c0_146 = arith.constant 0 : index
    %c8_147 = arith.constant 8 : index
    %337 = vector.load %arg28[%c0_146, %c8_147] : memref<16x32xf32, #tpu.memory_space<vmem>>, vector<8x8xf32>
    tpu.vector_store %arg28[%c0_146, %c8_147], %336 {strides = array<i32>} : memref<16x32xf32, #tpu.memory_space<vmem>>, vector<8x8xf32>,
    %338 = vector.extract_strided_slice %295 {offsets = [0, 16], sizes = [8, 8], strides = [1, 1]} : vector<8x96xf32> to vector<8x8xf32>
    %339 = vector.extract_strided_slice %295 {offsets = [0, 48], sizes = [8, 8], strides = [1, 1]} : vector<8x96xf32> to vector<8x8xf32>
    %340 = vector.extract_strided_slice %295 {offsets = [0, 80], sizes = [8, 8], strides = [1, 1]} : vector<8x96xf32> to vector<8x8xf32>
    %cst_148 = arith.constant dense<0.000000e+00> : vector<8x8xf32>
    %341 = tpu.matmul %338, %339, %cst_148 {dimension_numbers = #tpu.dot_dimension_numbers<[1], [1], [0], [0], [0, 0, 1, 0], [], []>} : vector<8x8xf32>, vector<8x8xf32>, vector<8x8xf32> -> vector<8x8xf32>
    %cst_149 = arith.constant 0.353553385 : f32
    %342 = vector.broadcast %cst_149 : f32 to vector<8x8xf32>
    %343 = arith.mulf %341, %342 : vector<8x8xf32>
    %344 = vector.broadcast %297 : vector<1x8xf32> to vector<8x8xf32>
    %345 = arith.addf %343, %344 : vector<8x8xf32>
    %cst_150 = arith.constant dense<0xFF800000> : vector<8xf32>
    %346 = vector.multi_reduction <maximumf>, %345, %cst_150 [1] : vector<8x8xf32> to vector<8xf32>
    %347 = vector.shape_cast %346 : vector<8xf32> to vector<8x1xf32>
    %348 = vector.broadcast %347 : vector<8x1xf32> to vector<8x8xf32>
    %349 = arith.subf %345, %348 : vector<8x8xf32>
    %350 = math.exp %349 : vector<8x8xf32>
    %cst_151 = arith.constant dense<0.000000e+00> : vector<8xf32>
    %351 = vector.multi_reduction <add>, %350, %cst_151 [1] : vector<8x8xf32> to vector<8xf32>
    %352 = vector.shape_cast %351 : vector<8xf32> to vector<8x1xf32>
    %353 = tpu.reciprocal %352 {approx = true} : vector<8x1xf32> -> vector<8x1xf32>
    %354 = vector.broadcast %353 : vector<8x1xf32> to vector<8x8xf32>
    %355 = arith.mulf %350, %354 : vector<8x8xf32>
    %cst_152 = arith.constant dense<0.000000e+00> : vector<8x8xf32>
    %356 = tpu.matmul %355, %340, %cst_152 {dimension_numbers = #tpu.dot_dimension_numbers<[1], [0], [0], [1], [0, 0, 1, 1], [], []>} : vector<8x8xf32>, vector<8x8xf32>, vector<8x8xf32> -> vector<8x8xf32>
    %c0_153 = arith.constant 0 : index
    %c16_154 = arith.constant 16 : index
    %357 = vector.load %arg28[%c0_153, %c16_154] : memref<16x32xf32, #tpu.memory_space<vmem>>, vector<8x8xf32>
    tpu.vector_store %arg28[%c0_153, %c16_154], %356 {strides = array<i32>} : memref<16x32xf32, #tpu.memory_space<vmem>>, vector<8x8xf32>,
    %358 = vector.extract_strided_slice %295 {offsets = [0, 24], sizes = [8, 8], strides = [1, 1]} : vector<8x96xf32> to vector<8x8xf32>
    %359 = vector.extract_strided_slice %295 {offsets = [0, 56], sizes = [8, 8], strides = [1, 1]} : vector<8x96xf32> to vector<8x8xf32>
    %360 = vector.extract_strided_slice %295 {offsets = [0, 88], sizes = [8, 8], strides = [1, 1]} : vector<8x96xf32> to vector<8x8xf32>
    %cst_155 = arith.constant dense<0.000000e+00> : vector<8x8xf32>
    %361 = tpu.matmul %358, %359, %cst_155 {dimension_numbers = #tpu.dot_dimension_numbers<[1], [1], [0], [0], [0, 0, 1, 0], [], []>} : vector<8x8xf32>, vector<8x8xf32>, vector<8x8xf32> -> vector<8x8xf32>
    %cst_156 = arith.constant 0.353553385 : f32
    %362 = vector.broadcast %cst_156 : f32 to vector<8x8xf32>
    %363 = arith.mulf %361, %362 : vector<8x8xf32>
    %364 = vector.broadcast %297 : vector<1x8xf32> to vector<8x8xf32>
    %365 = arith.addf %363, %364 : vector<8x8xf32>
    %cst_157 = arith.constant dense<0xFF800000> : vector<8xf32>
    %366 = vector.multi_reduction <maximumf>, %365, %cst_157 [1] : vector<8x8xf32> to vector<8xf32>
    %367 = vector.shape_cast %366 : vector<8xf32> to vector<8x1xf32>
    %368 = vector.broadcast %367 : vector<8x1xf32> to vector<8x8xf32>
    %369 = arith.subf %365, %368 : vector<8x8xf32>
    %370 = math.exp %369 : vector<8x8xf32>
    %cst_158 = arith.constant dense<0.000000e+00> : vector<8xf32>
    %371 = vector.multi_reduction <add>, %370, %cst_158 [1] : vector<8x8xf32> to vector<8xf32>
    %372 = vector.shape_cast %371 : vector<8xf32> to vector<8x1xf32>
    %373 = tpu.reciprocal %372 {approx = true} : vector<8x1xf32> -> vector<8x1xf32>
    %374 = vector.broadcast %373 : vector<8x1xf32> to vector<8x8xf32>
    %375 = arith.mulf %370, %374 : vector<8x8xf32>
    %cst_159 = arith.constant dense<0.000000e+00> : vector<8x8xf32>
    %376 = tpu.matmul %375, %360, %cst_159 {dimension_numbers = #tpu.dot_dimension_numbers<[1], [0], [0], [1], [0, 0, 1, 1], [], []>} : vector<8x8xf32>, vector<8x8xf32>, vector<8x8xf32> -> vector<8x8xf32>
    %c0_160 = arith.constant 0 : index
    %c24_161 = arith.constant 24 : index
    %377 = vector.load %arg28[%c0_160, %c24_161] : memref<16x32xf32, #tpu.memory_space<vmem>>, vector<8x8xf32>
    tpu.vector_store %arg28[%c0_160, %c24_161], %376 {strides = array<i32>} : memref<16x32xf32, #tpu.memory_space<vmem>>, vector<8x8xf32>,
    %378 = vector.extract_strided_slice %294 {offsets = [8, 0], sizes = [8, 96], strides = [1, 1]} : vector<16x96xf32> to vector<8x96xf32>
    %c1_162 = arith.constant 1 : index
    %c0_163 = arith.constant 0 : index
    %c0_164 = arith.constant 0 : index
    %379 = vector.load %arg1[%c1_162, %c0_163, %c0_164] : memref<2x1x8xf32, #tpu.memory_space<vmem>>, vector<1x1x8xf32>
    %380 = vector.shape_cast %379 : vector<1x1x8xf32> to vector<1x8xf32>
    %381 = vector.extract_strided_slice %378 {offsets = [0, 0], sizes = [8, 8], strides = [1, 1]} : vector<8x96xf32> to vector<8x8xf32>
    %382 = vector.extract_strided_slice %378 {offsets = [0, 32], sizes = [8, 8], strides = [1, 1]} : vector<8x96xf32> to vector<8x8xf32>
    %383 = vector.extract_strided_slice %378 {offsets = [0, 64], sizes = [8, 8], strides = [1, 1]} : vector<8x96xf32> to vector<8x8xf32>
    %cst_165 = arith.constant dense<0.000000e+00> : vector<8x8xf32>
    %384 = tpu.matmul %381, %382, %cst_165 {dimension_numbers = #tpu.dot_dimension_numbers<[1], [1], [0], [0], [0, 0, 1, 0], [], []>} : vector<8x8xf32>, vector<8x8xf32>, vector<8x8xf32> -> vector<8x8xf32>
    %cst_166 = arith.constant 0.353553385 : f32
    %385 = vector.broadcast %cst_166 : f32 to vector<8x8xf32>
    %386 = arith.mulf %384, %385 : vector<8x8xf32>
    %387 = vector.broadcast %380 : vector<1x8xf32> to vector<8x8xf32>
    %388 = arith.addf %386, %387 : vector<8x8xf32>
    %cst_167 = arith.constant dense<0xFF800000> : vector<8xf32>
    %389 = vector.multi_reduction <maximumf>, %388, %cst_167 [1] : vector<8x8xf32> to vector<8xf32>
    %390 = vector.shape_cast %389 : vector<8xf32> to vector<8x1xf32>
    %391 = vector.broadcast %390 : vector<8x1xf32> to vector<8x8xf32>
    %392 = arith.subf %388, %391 : vector<8x8xf32>
    %393 = math.exp %392 : vector<8x8xf32>
    %cst_168 = arith.constant dense<0.000000e+00> : vector<8xf32>
    %394 = vector.multi_reduction <add>, %393, %cst_168 [1] : vector<8x8xf32> to vector<8xf32>
    %395 = vector.shape_cast %394 : vector<8xf32> to vector<8x1xf32>
    %396 = tpu.reciprocal %395 {approx = true} : vector<8x1xf32> -> vector<8x1xf32>
    %397 = vector.broadcast %396 : vector<8x1xf32> to vector<8x8xf32>
    %398 = arith.mulf %393, %397 : vector<8x8xf32>
    %cst_169 = arith.constant dense<0.000000e+00> : vector<8x8xf32>
    %399 = tpu.matmul %398, %383, %cst_169 {dimension_numbers = #tpu.dot_dimension_numbers<[1], [0], [0], [1], [0, 0, 1, 1], [], []>} : vector<8x8xf32>, vector<8x8xf32>, vector<8x8xf32> -> vector<8x8xf32>
    %c8_170 = arith.constant 8 : index
    %c0_171 = arith.constant 0 : index
    %400 = vector.load %arg28[%c8_170, %c0_171] : memref<16x32xf32, #tpu.memory_space<vmem>>, vector<8x8xf32>
    tpu.vector_store %arg28[%c8_170, %c0_171], %399 {strides = array<i32>} : memref<16x32xf32, #tpu.memory_space<vmem>>, vector<8x8xf32>,
    %401 = vector.extract_strided_slice %378 {offsets = [0, 8], sizes = [8, 8], strides = [1, 1]} : vector<8x96xf32> to vector<8x8xf32>
    %402 = vector.extract_strided_slice %378 {offsets = [0, 40], sizes = [8, 8], strides = [1, 1]} : vector<8x96xf32> to vector<8x8xf32>
    %403 = vector.extract_strided_slice %378 {offsets = [0, 72], sizes = [8, 8], strides = [1, 1]} : vector<8x96xf32> to vector<8x8xf32>
    %cst_172 = arith.constant dense<0.000000e+00> : vector<8x8xf32>
    %404 = tpu.matmul %401, %402, %cst_172 {dimension_numbers = #tpu.dot_dimension_numbers<[1], [1], [0], [0], [0, 0, 1, 0], [], []>} : vector<8x8xf32>, vector<8x8xf32>, vector<8x8xf32> -> vector<8x8xf32>
    %cst_173 = arith.constant 0.353553385 : f32
    %405 = vector.broadcast %cst_173 : f32 to vector<8x8xf32>
    %406 = arith.mulf %404, %405 : vector<8x8xf32>
    %407 = vector.broadcast %380 : vector<1x8xf32> to vector<8x8xf32>
    %408 = arith.addf %406, %407 : vector<8x8xf32>
    %cst_174 = arith.constant dense<0xFF800000> : vector<8xf32>
    %409 = vector.multi_reduction <maximumf>, %408, %cst_174 [1] : vector<8x8xf32> to vector<8xf32>
    %410 = vector.shape_cast %409 : vector<8xf32> to vector<8x1xf32>
    %411 = vector.broadcast %410 : vector<8x1xf32> to vector<8x8xf32>
    %412 = arith.subf %408, %411 : vector<8x8xf32>
    %413 = math.exp %412 : vector<8x8xf32>
    %cst_175 = arith.constant dense<0.000000e+00> : vector<8xf32>
    %414 = vector.multi_reduction <add>, %413, %cst_175 [1] : vector<8x8xf32> to vector<8xf32>
    %415 = vector.shape_cast %414 : vector<8xf32> to vector<8x1xf32>
    %416 = tpu.reciprocal %415 {approx = true} : vector<8x1xf32> -> vector<8x1xf32>
    %417 = vector.broadcast %416 : vector<8x1xf32> to vector<8x8xf32>
    %418 = arith.mulf %413, %417 : vector<8x8xf32>
    %cst_176 = arith.constant dense<0.000000e+00> : vector<8x8xf32>
    %419 = tpu.matmul %418, %403, %cst_176 {dimension_numbers = #tpu.dot_dimension_numbers<[1], [0], [0], [1], [0, 0, 1, 1], [], []>} : vector<8x8xf32>, vector<8x8xf32>, vector<8x8xf32> -> vector<8x8xf32>
    %c8_177 = arith.constant 8 : index
    %c8_178 = arith.constant 8 : index
    %420 = vector.load %arg28[%c8_177, %c8_178] : memref<16x32xf32, #tpu.memory_space<vmem>>, vector<8x8xf32>
    tpu.vector_store %arg28[%c8_177, %c8_178], %419 {strides = array<i32>} : memref<16x32xf32, #tpu.memory_space<vmem>>, vector<8x8xf32>,
    %421 = vector.extract_strided_slice %378 {offsets = [0, 16], sizes = [8, 8], strides = [1, 1]} : vector<8x96xf32> to vector<8x8xf32>
    %422 = vector.extract_strided_slice %378 {offsets = [0, 48], sizes = [8, 8], strides = [1, 1]} : vector<8x96xf32> to vector<8x8xf32>
    %423 = vector.extract_strided_slice %378 {offsets = [0, 80], sizes = [8, 8], strides = [1, 1]} : vector<8x96xf32> to vector<8x8xf32>
    %cst_179 = arith.constant dense<0.000000e+00> : vector<8x8xf32>
    %424 = tpu.matmul %421, %422, %cst_179 {dimension_numbers = #tpu.dot_dimension_numbers<[1], [1], [0], [0], [0, 0, 1, 0], [], []>} : vector<8x8xf32>, vector<8x8xf32>, vector<8x8xf32> -> vector<8x8xf32>
    %cst_180 = arith.constant 0.353553385 : f32
    %425 = vector.broadcast %cst_180 : f32 to vector<8x8xf32>
    %426 = arith.mulf %424, %425 : vector<8x8xf32>
    %427 = vector.broadcast %380 : vector<1x8xf32> to vector<8x8xf32>
    %428 = arith.addf %426, %427 : vector<8x8xf32>
    %cst_181 = arith.constant dense<0xFF800000> : vector<8xf32>
    %429 = vector.multi_reduction <maximumf>, %428, %cst_181 [1] : vector<8x8xf32> to vector<8xf32>
    %430 = vector.shape_cast %429 : vector<8xf32> to vector<8x1xf32>
    %431 = vector.broadcast %430 : vector<8x1xf32> to vector<8x8xf32>
    %432 = arith.subf %428, %431 : vector<8x8xf32>
    %433 = math.exp %432 : vector<8x8xf32>
    %cst_182 = arith.constant dense<0.000000e+00> : vector<8xf32>
    %434 = vector.multi_reduction <add>, %433, %cst_182 [1] : vector<8x8xf32> to vector<8xf32>
    %435 = vector.shape_cast %434 : vector<8xf32> to vector<8x1xf32>
    %436 = tpu.reciprocal %435 {approx = true} : vector<8x1xf32> -> vector<8x1xf32>
    %437 = vector.broadcast %436 : vector<8x1xf32> to vector<8x8xf32>
    %438 = arith.mulf %433, %437 : vector<8x8xf32>
    %cst_183 = arith.constant dense<0.000000e+00> : vector<8x8xf32>
    %439 = tpu.matmul %438, %423, %cst_183 {dimension_numbers = #tpu.dot_dimension_numbers<[1], [0], [0], [1], [0, 0, 1, 1], [], []>} : vector<8x8xf32>, vector<8x8xf32>, vector<8x8xf32> -> vector<8x8xf32>
    %c8_184 = arith.constant 8 : index
    %c16_185 = arith.constant 16 : index
    %440 = vector.load %arg28[%c8_184, %c16_185] : memref<16x32xf32, #tpu.memory_space<vmem>>, vector<8x8xf32>
    tpu.vector_store %arg28[%c8_184, %c16_185], %439 {strides = array<i32>} : memref<16x32xf32, #tpu.memory_space<vmem>>, vector<8x8xf32>,
    %441 = vector.extract_strided_slice %378 {offsets = [0, 24], sizes = [8, 8], strides = [1, 1]} : vector<8x96xf32> to vector<8x8xf32>
    %442 = vector.extract_strided_slice %378 {offsets = [0, 56], sizes = [8, 8], strides = [1, 1]} : vector<8x96xf32> to vector<8x8xf32>
    %443 = vector.extract_strided_slice %378 {offsets = [0, 88], sizes = [8, 8], strides = [1, 1]} : vector<8x96xf32> to vector<8x8xf32>
    %cst_186 = arith.constant dense<0.000000e+00> : vector<8x8xf32>
    %444 = tpu.matmul %441, %442, %cst_186 {dimension_numbers = #tpu.dot_dimension_numbers<[1], [1], [0], [0], [0, 0, 1, 0], [], []>} : vector<8x8xf32>, vector<8x8xf32>, vector<8x8xf32> -> vector<8x8xf32>
    %cst_187 = arith.constant 0.353553385 : f32
    %445 = vector.broadcast %cst_187 : f32 to vector<8x8xf32>
    %446 = arith.mulf %444, %445 : vector<8x8xf32>
    %447 = vector.broadcast %380 : vector<1x8xf32> to vector<8x8xf32>
    %448 = arith.addf %446, %447 : vector<8x8xf32>
    %cst_188 = arith.constant dense<0xFF800000> : vector<8xf32>
    %449 = vector.multi_reduction <maximumf>, %448, %cst_188 [1] : vector<8x8xf32> to vector<8xf32>
    %450 = vector.shape_cast %449 : vector<8xf32> to vector<8x1xf32>
    %451 = vector.broadcast %450 : vector<8x1xf32> to vector<8x8xf32>
    %452 = arith.subf %448, %451 : vector<8x8xf32>
    %453 = math.exp %452 : vector<8x8xf32>
    %cst_189 = arith.constant dense<0.000000e+00> : vector<8xf32>
    %454 = vector.multi_reduction <add>, %453, %cst_189 [1] : vector<8x8xf32> to vector<8xf32>
    %455 = vector.shape_cast %454 : vector<8xf32> to vector<8x1xf32>
    %456 = tpu.reciprocal %455 {approx = true} : vector<8x1xf32> -> vector<8x1xf32>
    %457 = vector.broadcast %456 : vector<8x1xf32> to vector<8x8xf32>
    %458 = arith.mulf %453, %457 : vector<8x8xf32>
    %cst_190 = arith.constant dense<0.000000e+00> : vector<8x8xf32>
    %459 = tpu.matmul %458, %443, %cst_190 {dimension_numbers = #tpu.dot_dimension_numbers<[1], [0], [0], [1], [0, 0, 1, 1], [], []>} : vector<8x8xf32>, vector<8x8xf32>, vector<8x8xf32> -> vector<8x8xf32>
    %c8_191 = arith.constant 8 : index
    %c24_192 = arith.constant 24 : index
    %460 = vector.load %arg28[%c8_191, %c24_192] : memref<16x32xf32, #tpu.memory_space<vmem>>, vector<8x8xf32>
    tpu.vector_store %arg28[%c8_191, %c24_192], %459 {strides = array<i32>} : memref<16x32xf32, #tpu.memory_space<vmem>>, vector<8x8xf32>,
    %c0_193 = arith.constant 0 : index
    %c0_194 = arith.constant 0 : index
    %461 = vector.load %arg28[%c0_193, %c0_194] : memref<16x32xf32, #tpu.memory_space<vmem>>, vector<16x32xf32>
    %c1_195 = arith.constant 1 : index
    %c0_196 = arith.constant 0 : index
    %c0_197 = arith.constant 0 : index
    %462 = vector.load %arg8[%c1_195, %c0_196, %c0_197] : memref<2x32x32xf32, #tpu.memory_space<vmem>>, vector<1x32x32xf32>
    %463 = vector.shape_cast %462 : vector<1x32x32xf32> to vector<32x32xf32>
    %cst_198 = arith.constant dense<0.000000e+00> : vector<16x32xf32>
    %464 = tpu.matmul %461, %463, %cst_198 {dimension_numbers = #tpu.dot_dimension_numbers<[1], [0], [0], [1], [0, 0, 1, 1], [], []>} : vector<16x32xf32>, vector<32x32xf32>, vector<16x32xf32> -> vector<16x32xf32>
    %c1_199 = arith.constant 1 : index
    %c0_200 = arith.constant 0 : index
    %c0_201 = arith.constant 0 : index
    %465 = vector.load %arg9[%c1_199, %c0_200, %c0_201] : memref<2x1x32xf32, #tpu.memory_space<vmem>>, vector<1x1x32xf32>
    %466 = vector.shape_cast %465 : vector<1x1x32xf32> to vector<1x32xf32>
    %467 = vector.broadcast %466 : vector<1x32xf32> to vector<16x32xf32>
    %468 = arith.addf %464, %467 : vector<16x32xf32>
    %469 = arith.addf %468, %287 : vector<16x32xf32>
    %c1_202 = arith.constant 1 : index
    %c0_203 = arith.constant 0 : index
    %c0_204 = arith.constant 0 : index
    %470 = vector.load %arg10[%c1_202, %c0_203, %c0_204] : memref<2x1x32xf32, #tpu.memory_space<vmem>>, vector<1x1x32xf32>
    %471 = vector.shape_cast %470 : vector<1x1x32xf32> to vector<1x32xf32>
    %c1_205 = arith.constant 1 : index
    %c0_206 = arith.constant 0 : index
    %c0_207 = arith.constant 0 : index
    %472 = vector.load %arg11[%c1_205, %c0_206, %c0_207] : memref<2x1x32xf32, #tpu.memory_space<vmem>>, vector<1x1x32xf32>
    %473 = vector.shape_cast %472 : vector<1x1x32xf32> to vector<1x32xf32>
    %cst_208 = arith.constant dense<0.000000e+00> : vector<16xf32>
    %474 = vector.multi_reduction <add>, %469, %cst_208 [1] : vector<16x32xf32> to vector<16xf32>
    %475 = vector.shape_cast %474 : vector<16xf32> to vector<16x1xf32>
    %cst_209 = arith.constant 3.200000e+01 : f32
    %476 = vector.broadcast %cst_209 : f32 to vector<16x1xf32>
    %477 = arith.divf %475, %476 : vector<16x1xf32>
    %478 = vector.broadcast %477 : vector<16x1xf32> to vector<16x32xf32>
    %479 = arith.subf %469, %478 : vector<16x32xf32>
    %480 = arith.mulf %479, %479 : vector<16x32xf32>
    %cst_210 = arith.constant dense<0.000000e+00> : vector<16xf32>
    %481 = vector.multi_reduction <add>, %480, %cst_210 [1] : vector<16x32xf32> to vector<16xf32>
    %482 = vector.shape_cast %481 : vector<16xf32> to vector<16x1xf32>
    %cst_211 = arith.constant 3.200000e+01 : f32
    %483 = vector.broadcast %cst_211 : f32 to vector<16x1xf32>
    %484 = arith.divf %482, %483 : vector<16x1xf32>
    %485 = vector.broadcast %477 : vector<16x1xf32> to vector<16x32xf32>
    %486 = arith.subf %469, %485 : vector<16x32xf32>
    %cst_212 = arith.constant 9.99999974E-6 : f32
    %487 = vector.broadcast %cst_212 : f32 to vector<16x1xf32>
    %488 = arith.addf %484, %487 : vector<16x1xf32>
    %489 = math.rsqrt %488 : vector<16x1xf32>
    %490 = vector.broadcast %489 : vector<16x1xf32> to vector<16x32xf32>
    %491 = arith.mulf %486, %490 : vector<16x32xf32>
    %492 = vector.broadcast %471 : vector<1x32xf32> to vector<16x32xf32>
    %493 = arith.mulf %491, %492 : vector<16x32xf32>
    %494 = vector.broadcast %473 : vector<1x32xf32> to vector<16x32xf32>
    %495 = arith.addf %493, %494 : vector<16x32xf32>
    %c1_213 = arith.constant 1 : index
    %c0_214 = arith.constant 0 : index
    %c0_215 = arith.constant 0 : index
    %496 = vector.load %arg12[%c1_213, %c0_214, %c0_215] : memref<2x32x64xf32, #tpu.memory_space<vmem>>, vector<1x32x64xf32>
    %497 = vector.shape_cast %496 : vector<1x32x64xf32> to vector<32x64xf32>
    %cst_216 = arith.constant dense<0.000000e+00> : vector<16x64xf32>
    %498 = tpu.matmul %495, %497, %cst_216 {dimension_numbers = #tpu.dot_dimension_numbers<[1], [0], [0], [1], [0, 0, 1, 1], [], []>} : vector<16x32xf32>, vector<32x64xf32>, vector<16x64xf32> -> vector<16x64xf32>
    %c1_217 = arith.constant 1 : index
    %c0_218 = arith.constant 0 : index
    %c0_219 = arith.constant 0 : index
    %499 = vector.load %arg13[%c1_217, %c0_218, %c0_219] : memref<2x1x64xf32, #tpu.memory_space<vmem>>, vector<1x1x64xf32>
    %500 = vector.shape_cast %499 : vector<1x1x64xf32> to vector<1x64xf32>
    %501 = vector.broadcast %500 : vector<1x64xf32> to vector<16x64xf32>
    %502 = arith.addf %498, %501 : vector<16x64xf32>
    %cst_220 = arith.constant 5.000000e-01 : f32
    %503 = vector.broadcast %cst_220 : f32 to vector<16x64xf32>
    %504 = arith.mulf %502, %503 : vector<16x64xf32>
    %cst_221 = arith.constant 0.707106769 : f32
    %505 = vector.broadcast %cst_221 : f32 to vector<16x64xf32>
    %506 = arith.mulf %502, %505 : vector<16x64xf32>
    %cst_222 = arith.constant 0.000000e+00 : f32
    %507 = vector.broadcast %cst_222 : f32 to vector<16x64xf32>
    %508 = arith.cmpf olt, %506, %507 : vector<16x64xf32>
    %cst_223 = arith.constant -1.000000e+00 : f32
    %cst_224 = arith.constant 1.000000e+00 : f32
    %509 = vector.broadcast %cst_223 : f32 to vector<16x64xf32>
    %510 = vector.broadcast %cst_224 : f32 to vector<16x64xf32>
    %511 = arith.select %508, %509, %510 : vector<16x64xi1>, vector<16x64xf32>
    %512 = math.absf %506 : vector<16x64xf32>
    %cst_225 = arith.constant 0.327591091 : f32
    %513 = vector.broadcast %cst_225 : f32 to vector<16x64xf32>
    %514 = arith.mulf %513, %512 : vector<16x64xf32>
    %cst_226 = arith.constant 1.000000e+00 : f32
    %515 = vector.broadcast %cst_226 : f32 to vector<16x64xf32>
    %516 = arith.addf %515, %514 : vector<16x64xf32>
    %cst_227 = arith.constant 1.000000e+00 : f32
    %517 = vector.broadcast %cst_227 : f32 to vector<16x64xf32>
    %518 = arith.divf %517, %516 : vector<16x64xf32>
    %cst_228 = arith.constant 1.06140542 : f32
    %519 = vector.broadcast %cst_228 : f32 to vector<16x64xf32>
    %520 = arith.mulf %518, %519 : vector<16x64xf32>
    %cst_229 = arith.constant -1.45315206 : f32
    %521 = vector.broadcast %cst_229 : f32 to vector<16x64xf32>
    %522 = arith.addf %521, %520 : vector<16x64xf32>
    %523 = arith.mulf %518, %522 : vector<16x64xf32>
    %cst_230 = arith.constant 1.42141378 : f32
    %524 = vector.broadcast %cst_230 : f32 to vector<16x64xf32>
    %525 = arith.addf %524, %523 : vector<16x64xf32>
    %526 = arith.mulf %518, %525 : vector<16x64xf32>
    %cst_231 = arith.constant -0.284496725 : f32
    %527 = vector.broadcast %cst_231 : f32 to vector<16x64xf32>
    %528 = arith.addf %527, %526 : vector<16x64xf32>
    %529 = arith.mulf %518, %528 : vector<16x64xf32>
    %cst_232 = arith.constant 0.254829586 : f32
    %530 = vector.broadcast %cst_232 : f32 to vector<16x64xf32>
    %531 = arith.addf %530, %529 : vector<16x64xf32>
    %532 = arith.mulf %518, %531 : vector<16x64xf32>
    %cst_233 = arith.constant 0.000000e+00 : f32
    %533 = vector.broadcast %cst_233 : f32 to vector<16x64xf32>
    %534 = arith.subf %533, %512 : vector<16x64xf32>
    %535 = arith.mulf %534, %512 : vector<16x64xf32>
    %536 = math.exp %535 : vector<16x64xf32>
    %537 = arith.mulf %532, %536 : vector<16x64xf32>
    %cst_234 = arith.constant 1.000000e+00 : f32
    %538 = vector.broadcast %cst_234 : f32 to vector<16x64xf32>
    %539 = arith.subf %538, %537 : vector<16x64xf32>
    %540 = arith.mulf %511, %539 : vector<16x64xf32>
    %cst_235 = arith.constant 1.000000e+00 : f32
    %541 = vector.broadcast %cst_235 : f32 to vector<16x64xf32>
    %542 = arith.addf %541, %540 : vector<16x64xf32>
    %543 = arith.mulf %504, %542 : vector<16x64xf32>
    %c1_236 = arith.constant 1 : index
    %c0_237 = arith.constant 0 : index
    %c0_238 = arith.constant 0 : index
    %544 = vector.load %arg14[%c1_236, %c0_237, %c0_238] : memref<2x64x32xf32, #tpu.memory_space<vmem>>, vector<1x64x32xf32>
    %545 = vector.shape_cast %544 : vector<1x64x32xf32> to vector<64x32xf32>
    %cst_239 = arith.constant dense<0.000000e+00> : vector<16x32xf32>
    %546 = tpu.matmul %543, %545, %cst_239 {dimension_numbers = #tpu.dot_dimension_numbers<[1], [0], [0], [1], [0, 0, 1, 1], [], []>} : vector<16x64xf32>, vector<64x32xf32>, vector<16x32xf32> -> vector<16x32xf32>
    %c1_240 = arith.constant 1 : index
    %c0_241 = arith.constant 0 : index
    %c0_242 = arith.constant 0 : index
    %547 = vector.load %arg15[%c1_240, %c0_241, %c0_242] : memref<2x1x32xf32, #tpu.memory_space<vmem>>, vector<1x1x32xf32>
    %548 = vector.shape_cast %547 : vector<1x1x32xf32> to vector<1x32xf32>
    %549 = vector.broadcast %548 : vector<1x32xf32> to vector<16x32xf32>
    %550 = arith.addf %546, %549 : vector<16x32xf32>
    %c0_243 = arith.constant 0 : index
    %c0_244 = arith.constant 0 : index
    %551 = vector.load %arg2[%c0_243, %c0_244] : memref<2x16xf32, #tpu.memory_space<vmem>>, vector<2x16xf32>
    %cst_245 = arith.constant dense<0.000000e+00> : vector<2x32xf32>
    %552 = tpu.matmul %551, %550, %cst_245 {dimension_numbers = #tpu.dot_dimension_numbers<[1], [0], [0], [1], [0, 0, 1, 1], [], []>} : vector<2x16xf32>, vector<16x32xf32>, vector<2x32xf32> -> vector<2x32xf32>
    %c0_246 = arith.constant 0 : index
    %c0_247 = arith.constant 0 : index
    %553 = vector.load %arg3[%c0_246, %c0_247] : memref<6x16xf32, #tpu.memory_space<vmem>>, vector<6x16xf32>
    %cst_248 = arith.constant dense<0.000000e+00> : vector<6x32xf32>
    %554 = tpu.matmul %553, %550, %cst_248 {dimension_numbers = #tpu.dot_dimension_numbers<[1], [0], [0], [1], [0, 0, 1, 1], [], []>} : vector<6x16xf32>, vector<16x32xf32>, vector<6x32xf32> -> vector<6x32xf32>
    %c0_249 = arith.constant 0 : index
    %c0_250 = arith.constant 0 : index
    %555 = vector.load %arg16[%c0_249, %c0_250] : memref<32x32xf32, #tpu.memory_space<vmem>>, vector<32x32xf32>
    %cst_251 = arith.constant dense<0.000000e+00> : vector<2x32xf32>
    %556 = tpu.matmul %552, %555, %cst_251 {dimension_numbers = #tpu.dot_dimension_numbers<[1], [0], [0], [1], [0, 0, 1, 1], [], []>} : vector<2x32xf32>, vector<32x32xf32>, vector<2x32xf32> -> vector<2x32xf32>
    %c0_252 = arith.constant 0 : index
    %c0_253 = arith.constant 0 : index
    %557 = vector.load %arg17[%c0_252, %c0_253] : memref<1x32xf32, #tpu.memory_space<vmem>>, vector<1x32xf32>
    %558 = vector.broadcast %557 : vector<1x32xf32> to vector<2x32xf32>
    %559 = arith.addf %556, %558 : vector<2x32xf32>
    %560 = math.tanh %559 : vector<2x32xf32>
    %c0_254 = arith.constant 0 : index
    %c0_255 = arith.constant 0 : index
    %561 = vector.load %arg18[%c0_254, %c0_255] : memref<32x2xf32, #tpu.memory_space<vmem>>, vector<32x2xf32>
    %cst_256 = arith.constant dense<0.000000e+00> : vector<2x2xf32>
    %562 = tpu.matmul %560, %561, %cst_256 {dimension_numbers = #tpu.dot_dimension_numbers<[1], [0], [0], [1], [0, 0, 1, 1], [], []>} : vector<2x32xf32>, vector<32x2xf32>, vector<2x2xf32> -> vector<2x2xf32>
    %c0_257 = arith.constant 0 : index
    %c0_258 = arith.constant 0 : index
    %563 = vector.load %arg19[%c0_257, %c0_258] : memref<1x2xf32, #tpu.memory_space<vmem>>, vector<1x2xf32>
    %564 = vector.broadcast %563 : vector<1x2xf32> to vector<2x2xf32>
    %565 = arith.addf %562, %564 : vector<2x2xf32>
    %c0_259 = arith.constant 0 : index
    %c0_260 = arith.constant 0 : index
    %566 = vector.load %arg26[%c0_259, %c0_260] : memref<2x2xf32, #tpu.memory_space<vmem>>, vector<2x2xf32>
    tpu.vector_store %arg26[%c0_259, %c0_260], %565 {strides = array<i32>} : memref<2x2xf32, #tpu.memory_space<vmem>>, vector<2x2xf32>,
    %c0_261 = arith.constant 0 : index
    %c0_262 = arith.constant 0 : index
    %567 = vector.load %arg20[%c0_261, %c0_262] : memref<32x32xf32, #tpu.memory_space<vmem>>, vector<32x32xf32>
    %cst_263 = arith.constant dense<0.000000e+00> : vector<6x32xf32>
    %568 = tpu.matmul %554, %567, %cst_263 {dimension_numbers = #tpu.dot_dimension_numbers<[1], [0], [0], [1], [0, 0, 1, 1], [], []>} : vector<6x32xf32>, vector<32x32xf32>, vector<6x32xf32> -> vector<6x32xf32>
    %c0_264 = arith.constant 0 : index
    %c0_265 = arith.constant 0 : index
    %569 = vector.load %arg21[%c0_264, %c0_265] : memref<1x32xf32, #tpu.memory_space<vmem>>, vector<1x32xf32>
    %570 = vector.broadcast %569 : vector<1x32xf32> to vector<6x32xf32>
    %571 = arith.addf %568, %570 : vector<6x32xf32>
    %cst_266 = arith.constant 5.000000e-01 : f32
    %572 = vector.broadcast %cst_266 : f32 to vector<6x32xf32>
    %573 = arith.mulf %571, %572 : vector<6x32xf32>
    %cst_267 = arith.constant 0.707106769 : f32
    %574 = vector.broadcast %cst_267 : f32 to vector<6x32xf32>
    %575 = arith.mulf %571, %574 : vector<6x32xf32>
    %cst_268 = arith.constant 0.000000e+00 : f32
    %576 = vector.broadcast %cst_268 : f32 to vector<6x32xf32>
    %577 = arith.cmpf olt, %575, %576 : vector<6x32xf32>
    %cst_269 = arith.constant -1.000000e+00 : f32
    %cst_270 = arith.constant 1.000000e+00 : f32
    %578 = vector.broadcast %cst_269 : f32 to vector<6x32xf32>
    %579 = vector.broadcast %cst_270 : f32 to vector<6x32xf32>
    %580 = arith.select %577, %578, %579 : vector<6x32xi1>, vector<6x32xf32>
    %581 = math.absf %575 : vector<6x32xf32>
    %cst_271 = arith.constant 0.327591091 : f32
    %582 = vector.broadcast %cst_271 : f32 to vector<6x32xf32>
    %583 = arith.mulf %582, %581 : vector<6x32xf32>
    %cst_272 = arith.constant 1.000000e+00 : f32
    %584 = vector.broadcast %cst_272 : f32 to vector<6x32xf32>
    %585 = arith.addf %584, %583 : vector<6x32xf32>
    %cst_273 = arith.constant 1.000000e+00 : f32
    %586 = vector.broadcast %cst_273 : f32 to vector<6x32xf32>
    %587 = arith.divf %586, %585 : vector<6x32xf32>
    %cst_274 = arith.constant 1.06140542 : f32
    %588 = vector.broadcast %cst_274 : f32 to vector<6x32xf32>
    %589 = arith.mulf %587, %588 : vector<6x32xf32>
    %cst_275 = arith.constant -1.45315206 : f32
    %590 = vector.broadcast %cst_275 : f32 to vector<6x32xf32>
    %591 = arith.addf %590, %589 : vector<6x32xf32>
    %592 = arith.mulf %587, %591 : vector<6x32xf32>
    %cst_276 = arith.constant 1.42141378 : f32
    %593 = vector.broadcast %cst_276 : f32 to vector<6x32xf32>
    %594 = arith.addf %593, %592 : vector<6x32xf32>
    %595 = arith.mulf %587, %594 : vector<6x32xf32>
    %cst_277 = arith.constant -0.284496725 : f32
    %596 = vector.broadcast %cst_277 : f32 to vector<6x32xf32>
    %597 = arith.addf %596, %595 : vector<6x32xf32>
    %598 = arith.mulf %587, %597 : vector<6x32xf32>
    %cst_278 = arith.constant 0.254829586 : f32
    %599 = vector.broadcast %cst_278 : f32 to vector<6x32xf32>
    %600 = arith.addf %599, %598 : vector<6x32xf32>
    %601 = arith.mulf %587, %600 : vector<6x32xf32>
    %cst_279 = arith.constant 0.000000e+00 : f32
    %602 = vector.broadcast %cst_279 : f32 to vector<6x32xf32>
    %603 = arith.subf %602, %581 : vector<6x32xf32>
    %604 = arith.mulf %603, %581 : vector<6x32xf32>
    %605 = math.exp %604 : vector<6x32xf32>
    %606 = arith.mulf %601, %605 : vector<6x32xf32>
    %cst_280 = arith.constant 1.000000e+00 : f32
    %607 = vector.broadcast %cst_280 : f32 to vector<6x32xf32>
    %608 = arith.subf %607, %606 : vector<6x32xf32>
    %609 = arith.mulf %580, %608 : vector<6x32xf32>
    %cst_281 = arith.constant 1.000000e+00 : f32
    %610 = vector.broadcast %cst_281 : f32 to vector<6x32xf32>
    %611 = arith.addf %610, %609 : vector<6x32xf32>
    %612 = arith.mulf %573, %611 : vector<6x32xf32>
    %c0_282 = arith.constant 0 : index
    %c0_283 = arith.constant 0 : index
    %613 = vector.load %arg22[%c0_282, %c0_283] : memref<1x32xf32, #tpu.memory_space<vmem>>, vector<1x32xf32>
    %c0_284 = arith.constant 0 : index
    %c0_285 = arith.constant 0 : index
    %614 = vector.load %arg23[%c0_284, %c0_285] : memref<1x32xf32, #tpu.memory_space<vmem>>, vector<1x32xf32>
    %cst_286 = arith.constant dense<0.000000e+00> : vector<6xf32>
    %615 = vector.multi_reduction <add>, %612, %cst_286 [1] : vector<6x32xf32> to vector<6xf32>
    %616 = vector.shape_cast %615 : vector<6xf32> to vector<6x1xf32>
    %cst_287 = arith.constant 3.200000e+01 : f32
    %617 = vector.broadcast %cst_287 : f32 to vector<6x1xf32>
    %618 = arith.divf %616, %617 : vector<6x1xf32>
    %619 = vector.broadcast %618 : vector<6x1xf32> to vector<6x32xf32>
    %620 = arith.subf %612, %619 : vector<6x32xf32>
    %621 = arith.mulf %620, %620 : vector<6x32xf32>
    %cst_288 = arith.constant dense<0.000000e+00> : vector<6xf32>
    %622 = vector.multi_reduction <add>, %621, %cst_288 [1] : vector<6x32xf32> to vector<6xf32>
    %623 = vector.shape_cast %622 : vector<6xf32> to vector<6x1xf32>
    %cst_289 = arith.constant 3.200000e+01 : f32
    %624 = vector.broadcast %cst_289 : f32 to vector<6x1xf32>
    %625 = arith.divf %623, %624 : vector<6x1xf32>
    %626 = vector.broadcast %618 : vector<6x1xf32> to vector<6x32xf32>
    %627 = arith.subf %612, %626 : vector<6x32xf32>
    %cst_290 = arith.constant 9.99999974E-6 : f32
    %628 = vector.broadcast %cst_290 : f32 to vector<6x1xf32>
    %629 = arith.addf %625, %628 : vector<6x1xf32>
    %630 = math.rsqrt %629 : vector<6x1xf32>
    %631 = vector.broadcast %630 : vector<6x1xf32> to vector<6x32xf32>
    %632 = arith.mulf %627, %631 : vector<6x32xf32>
    %633 = vector.broadcast %613 : vector<1x32xf32> to vector<6x32xf32>
    %634 = arith.mulf %632, %633 : vector<6x32xf32>
    %635 = vector.broadcast %614 : vector<1x32xf32> to vector<6x32xf32>
    %636 = arith.addf %634, %635 : vector<6x32xf32>
    %c0_291 = arith.constant 0 : index
    %c0_292 = arith.constant 0 : index
    %637 = vector.load %arg24[%c0_291, %c0_292] : memref<32x32xf32, #tpu.memory_space<vmem>>, vector<32x32xf32>
    %cst_293 = arith.constant dense<0.000000e+00> : vector<6x32xf32>
    %638 = tpu.matmul %636, %637, %cst_293 {dimension_numbers = #tpu.dot_dimension_numbers<[1], [1], [0], [0], [0, 0, 1, 0], [], []>} : vector<6x32xf32>, vector<32x32xf32>, vector<6x32xf32> -> vector<6x32xf32>
    %c0_294 = arith.constant 0 : index
    %c0_295 = arith.constant 0 : index
    %639 = vector.load %arg25[%c0_294, %c0_295] : memref<1x32xf32, #tpu.memory_space<vmem>>, vector<1x32xf32>
    %640 = vector.broadcast %639 : vector<1x32xf32> to vector<6x32xf32>
    %641 = arith.addf %638, %640 : vector<6x32xf32>
    %c0_296 = arith.constant 0 : index
    %c0_297 = arith.constant 0 : index
    %642 = vector.load %arg27[%c0_296, %c0_297] : memref<6x32xf32, #tpu.memory_space<vmem>>, vector<6x32xf32>
    tpu.vector_store %arg27[%c0_296, %c0_297], %641 {strides = array<i32>} : memref<6x32xf32, #tpu.memory_space<vmem>>, vector<6x32xf32>,
    return
  }
}

</mosaic_0001>

<bundles_post_ra>
// kernel: eq.15
= control target key start
LH: loop header
LB: loop body
LE: loop exit
PB: predicated region body
PF: predicated region fallthrough
CT: control target
= control target key end

     0   :  { %vm7_vm0 = vcmask 23552   ;;  %vm13_vm1 = vcmask 48152   ;;  %s39_s0 = inlined_call_operand.vmem [shape: s32[2,3], index: 0, kind: input, shape index: {}]   ;;  %s40_s1 = inlined_call_operand.vmem [shape: s32[6], index: 1, kind: output, shape index: {}]  }
   0x1   :  { %v4_v0 = vld [vmem:[%s39_s0] sm:$0x3]  ;;  %s22_s0 = smov 3  }
   0x2   :  { %5 = vst [vmem:[#allocation1] sm:$0x3] %v4_v0 }
   0x9   :  { %v10_v1 = vld [vmem:[#allocation1 + $0x1] sm:$0x1]   ;;  %v6_v2 = vld [vmem:[#allocation1] sm:$0x1]  }
   0xa   :  { %11 = vrot.lane.b32.xlu0 %v10_v1, %s22_s0  ;;  %8 = vst.msk [vmem:[#allocation0] sm:$0x1] %vm7_vm0, %v6_v2  }
  0x7c   :  { %v12_v3 = vpop.permute.xlu0 %11  }
  0x7d   :  { %14 = vst.msk [vmem:[#allocation0] sm:$0x1] %vm13_vm1, %v12_v3  }
  0x84   :  { %v18_v4 = vld [vmem:[#allocation0] sm:$0x1] }
  0x85   :  { %20 = vst [vmem:[%s40_s1] sm:$0x1] %v18_v4 }

// kernel: bert_forward.1
= control target key start
LH: loop header
LB: loop body
LE: loop exit
PB: predicated region body
PF: predicated region fallthrough
CT: control target
= control target key end

     0   :  { %s6151_s0 = inlined_call_operand.vmem [shape: f32[16,32], index: 0, kind: input, shape index: {}]   ;;  %s6152_s1 = inlined_call_operand.vmem [shape: f32[2,1,8], index: 1, kind: input, shape index: {}]   ;;  %s6153_s2 = inlined_call_operand.vmem [shape: f32[2,16], index: 2, kind: input, shape index: {}]   ;;  %s6154_s3 = inlined_call_operand.vmem [shape: f32[6,16], index: 3, kind: input, shape index: {}]   ;;  %s6155_s4 = inlined_call_operand.vmem [shape: f32[1,32], index: 4, kind: input, shape index: {}]   ;;  %s6156_s5 = inlined_call_operand.vmem [shape: f32[1,32], index: 5, kind: input, shape index: {}]   ;;  %s6157_s6 = inlined_call_operand.vmem [shape: f32[2,32,96], index: 6, kind: input, shape index: {}]   ;;  %s6158_s7 = inlined_call_operand.vmem [shape: f32[2,1,96], index: 7, kind: input, shape index: {}]   ;;  %s6159_s8 = inlined_call_operand.vmem [shape: f32[2,32,32], index: 8, kind: input, shape index: {}]   ;;  %s6160_s9 = inlined_call_operand.vmem [shape: f32[2,1,32], index: 9, kind: input, shape index: {}]   ;;  %s6161_s10 = inlined_call_operand.vmem [shape: f32[2,1,32], index: 10, kind: input, shape index: {}]   ;;  %s6162_s11 = inlined_call_operand.vmem [shape: f32[2,1,32], index: 11, kind: input, shape index: {}]   ;;  %s6163_s12 = inlined_call_operand.vmem [shape: f32[2,32,64], index: 12, kind: input, shape index: {}]   ;;  %s6164_s13 = inlined_call_operand.vmem [shape: f32[2,1,64], index: 13, kind: input, shape index: {}]   ;;  %s6165_s14 = inlined_call_operand.vmem [shape: f32[2,64,32], index: 14, kind: input, shape index: {}]   ;;  %s6166_s15 = inlined_call_operand.vmem [shape: f32[2,1,32], index: 15, kind: input, shape index: {}]   ;;  %s6167_s16 = inlined_call_operand.vmem [shape: f32[32,32], index: 16, kind: input, shape index: {}]   ;;  %s6168_s17 = inlined_call_operand.vmem [shape: f32[1,32], index: 17, kind: input, shape index: {}]   ;;  %s6169_s18 = inlined_call_operand.vmem [shape: f32[32,2], index: 18, kind: input, shape index: {}]   ;;  %s6170_s19 = inlined_call_operand.vmem [shape: f32[1,2], index: 19, kind: input, shape index: {}]   ;;  %s6171_s20 = inlined_call_operand.vmem [shape: f32[32,32], index: 20, kind: input, shape index: {}]   ;;  %s6172_s21 = inlined_call_operand.vmem [shape: f32[1,32], index: 21, kind: input, shape index: {}]   ;;  %s6173_s22 = inlined_call_operand.vmem [shape: f32[1,32], index: 22, kind: input, shape index: {}]   ;;  %s6174_s23 = inlined_call_operand.vmem [shape: f32[1,32], index: 23, kind: input, shape index: {}]   ;;  %s6175_s24 = inlined_call_operand.vmem [shape: f32[32,32], index: 24, kind: input, shape index: {}]   ;;  %s6176_s25 = inlined_call_operand.vmem [shape: f32[1,32], index: 25, kind: input, shape index: {}]   ;;  %s6177_s26 = inlined_call_operand.hbm [shape: f32[2,2], index: 26, kind: output, shape index: {0}]   ;;  %s6178_s27 = inlined_call_operand.vmem [shape: f32[6,32], index: 27, kind: output, shape index: {1}]  }
   0x1   :  { %6213 = sst [smem:[#allocation6_spill]] %s6151_s0 }
   0x2   :  { %6214 = sst [smem:[#allocation7_spill]] %s6152_s1 }
   0x3   :  { %6215 = sst [smem:[#allocation8_spill]] %s6153_s2 }
   0x4   :  { %6216 = sst [smem:[#allocation9_spill]] %s6154_s3 }
   0x5   :  { %6217 = sst [smem:[#allocation10_spill]] %s6155_s4 }
   0x6   :  { %6218 = sst [smem:[#allocation11_spill]] %s6156_s5 }
   0x7   :  { %6219 = sst [smem:[#allocation12_spill]] %s6157_s6 }
   0x8   :  { %6220 = sst [smem:[#allocation13_spill]] %s6158_s7 }
   0x9   :  { %6221 = sst [smem:[#allocation14_spill]] %s6159_s8 }
   0xa   :  { %6222 = sst [smem:[#allocation15_spill]] %s6160_s9 }
   0xb   :  { %6223 = sst [smem:[#allocation16_spill]] %s6161_s10 }
   0xc   :  { %6224 = sst [smem:[#allocation17_spill]] %s6162_s11 }
   0xd   :  { %s6225_s8 = sld [smem:[#allocation6_spill]]  ;;  %vm90_vm0 = vcmask 261120  }
  0x13   :  { %v86_v0 = vld [vmem:[%s6225_s8] sm:$0xff]  ;;  %v87_v1 = vld [vmem:[%s6225_s8 + $0x8] sm:$0xff] }
  0x14   :  { %33 = vsyncpa [#allocation4], 0  ;;  %v91_v2 = vsel %vm90_vm0, %v86_v0, 0.0  ;;  %v94_v3 = vsel %vm90_vm0, %v87_v1, 0.0  ;;  %s6226_s0 = sld [smem:[#allocation12_spill]]  ;;  %s6227_s4 = sld [smem:[#allocation10_spill]] }
  0x15   :  { %92 = vadd.xlane.f32.xlu0 %v91_v2  ;;  %s6228_s9 = sld [smem:[#allocation11_spill]]  ;;  %v5283_v36 = vmov 0.0   ;;  %vm5284_vm1 = vmmov 0   ;;  %s6229_s10 = sld [smem:[#allocation13_spill]]  ;;  %vm230_vm2 = vcmask 64512   ;;  %vm572_vm3 = vcmask 130112   ;;  %vm5134_vm15 = vmpackc.low %vm90_vm0, %vm90_vm0 }
  0x16   :  { %4727 = vmatprep.subr.mxu0 %v5283_v36  ;;  %4729 = vmatprep.mubr.msk.f32.mxu0 %vm5284_vm1, %v5283_v36  ;;  %s5285_s29 = smov 88   ;;  %s6205_s1 = smov 96   ;;  %vm745_vm4 = vcmask 195712   ;;  %vm918_vm5 = vcmask 261312   ;;  %vm1912_vm8 = vcmask 523264   ;;  %vm3859_vm11 = vcmask 130048  }
  0x17   :  { %s6203_s6 = smov 120   ;;  %s6201_s11 = smov 112   ;;  %vm4291_vm13 = vcmask 259072   ;;  %vm4176_vm14 = vcmask 9216  }
  0x18   :  { %s6199_s2 = smov 80   ;;  %s6197_s3 = smov 104  }
  0x19   :  { %95 = vadd.xlane.f32.xlu0 %v94_v3  ;;  %s6195_s7 = smov 72   ;;  %s6230_s30 = sld [smem:[#allocation7_spill]] }
  0x1a   :  { %v134_v14 = vld [vmem:[%s6226_s0] sm:$0xff]  ;;  %v135_v15 = vld [vmem:[%s6226_s0 + $0x8] sm:$0xff]  ;;  %v136_v16 = vld [vmem:[%s6226_s0 + $0x10] sm:$0xff]  ;;  %s6193_s28 = smov 64   ;;  %s6189_s8 = smov 40  }
  0x1b   :  { %v5028_v17 = vpack.c.bf16 %v135_v15, %v134_v14  ;;  %v137_v18 = vld [vmem:[%s6226_s0 + $0x18] sm:$0xff]  ;;  %v4434_v27 = vld [vmem:[%s6227_s4] ss:$0 sm:$0xff]  ;;  %s6191_s4 = smov 48   ;;  %s6209_s5 = smov 16  }
  0x1c   :  { %v5032_v19 = vpack.c.bf16 %v137_v18, %v136_v16  ;;  %v4435_v29 = vld [vmem:[%s6228_s9] ss:$0 sm:$0xff]  ;;  %s6211_s9 = smov 8  }
  0x1d   :  { %5029 = vmatprep.subr.bf16.mxu1 %v5028_v17  ;;  %v4436_v37 = vld [vmem:[%s6229_s10] ss:$0 sm:$0xff] }
  0x1e   :  { %5031 = vmatpush3.bf16.msra.mxu1 %v5028_v17 }
  0x1f   :  { %5033 = vmatprep.subr.bf16.mxu1 %v5032_v19  ;;  %v5561_v57 = vld [vmem:[%s6230_s30] ss:$0 sm:$0xff] }
  0x22   :  { %5035 = vmatpush3.bf16.msra.mxu1 %v5032_v19 }
  0x23   :  { %4717 = vmatprep.subr.mxu1 %v5283_v36 }
  0xa2   :  { %v93_v4 = vpop.xlane.xlu0 %92 }
  0xa3   :  { %v98_v5 = vmul.f32 0.03125, %v93_v4 }
  0xa5   :  { %v100_v6 = vsub.f32 %v86_v0, %v98_v5 }
  0xa6   :  { %v96_v7 = vpop.xlane.xlu0 %95 }
  0xa7   :  { %v99_v8 = vmul.f32 0.03125, %v96_v7  ;;  %v102_v9 = vmul.f32 %v100_v6, %v100_v6 }
  0xa9   :  { %v101_v10 = vsub.f32 %v87_v1, %v99_v8  ;;  %v104_v11 = vsel %vm90_vm0, %v102_v9, 0.0 }
  0xaa   :  { %105 = vadd.xlane.f32.xlu1 %v104_v11 }
  0xab   :  { %v103_v12 = vmul.f32 %v101_v10, %v101_v10 }
  0xad   :  { %v107_v13 = vsel %vm90_vm0, %v103_v12, 0.0 }
  0xae   :  { %108 = vadd.xlane.f32.xlu1 %v107_v13  ;;  %v5576_v13 = vld [vmem:[%s6230_s30 + $0x1] ss:$0 sm:$0xff]  ;;  %s6187_s30 = smov 56  }
 0x137   :  { %v106_v20 = vpop.xlane.xlu1 %105 }
 0x138   :  { %v110_v21 = vmul.f32 0.03125, %v106_v20 }
 0x13a   :  { %v112_v22 = vadd.f32 1e-05, %v110_v21 }
 0x13b   :  { %v109_v23 = vpop.xlane.xlu1 %108 }
 0x13c   :  { %5159 = vrsqrt.f32 %v112_v22  ;;  %v111_v24 = vmul.f32 0.03125, %v109_v23 }
 0x13e   :  { %v113_v25 = vadd.f32 1e-05, %v111_v24 }
 0x140   :  { %5161 = vrsqrt.f32 %v113_v25 }
 0x146   :  { %v5160_v26 = vpop.eup %5159 }
 0x147   :  { %v116_v28 = vmul.f32 %v5160_v26, %v100_v6 }
 0x149   :  { %v124_v30 = vmul.f32 %v4434_v27, %v116_v28 }
 0x14a   :  { %v5162_v31 = vpop.eup %5161 }
 0x14b   :  { %v117_v32 = vmul.f32 %v5162_v31, %v101_v10  ;;  %v5470_v33 = vadd.f32 %v4435_v29, %v124_v30 }
 0x14d   :  { %v125_v34 = vmul.f32 %v4434_v27, %v117_v32  ;;  %4714 = vmatprep.mubr.msk.f32.mxu1 %vm90_vm0, %v5470_v33 }
 0x14f   :  { %v5474_v35 = vadd.f32 %v4435_v29, %v125_v34 }
 0x151   :  { %4715 = vmatmul.mubr.msk.f32.vlgmr.msra.gmra.mrb[0].mxu1 %vm90_vm0, %v5474_v35 }
 0x152   :  { %4719 = vmatprep.mubr.msk.f32.mxu1 %vm5284_vm1, %v5283_v36 }
 0x224   :  { %v4716_v38 = vpop.f32.mrb[0].mxu1 }
 0x225   :  { %v217_v39 = vpop.f32.mrb[1].mxu1  ;;  %v5501_v41 = vadd.f32 %v4716_v38, %v4436_v37 }
 0x226   :  { %v5487_v40 = vadd.f32 %v4436_v37, %v217_v39 }
 0x228   :  { %403 = vrot.lane.b32.xlu1 %v5487_v40, %s5285_s29  ;;  %228 = vrot.lane.b32.xlu0 %v5487_v40, %s6205_s1 }
 0x22c   :  { %401 = vrot.lane.b32.xlu1 %v5487_v40, %s6203_s6  ;;  %574 = vrot.lane.b32.xlu0 %v5487_v40, %s6201_s11 }
 0x230   :  { %576 = vrot.lane.b32.xlu1 %v5487_v40, %s6199_s2  ;;  %747 = vrot.lane.b32.xlu0 %v5487_v40, %s6197_s3 }
 0x234   :  { %749 = vrot.lane.b32.xlu1 %v5487_v40, %s6195_s7  ;;  %1097 = vrot.lane.b32.xlu0 %v5501_v41, %s5285_s29 }
 0x238   :  { %923 = vrot.lane.b32.xlu1 %v5501_v41, %s6205_s1  ;;  %1269 = vrot.lane.b32.xlu0 %v5501_v41, %s6199_s2  ;;  %s6238_s1 = smov 80   ;;  %s6242_s2 = smov 48  }
 0x23c   :  { %1095 = vrot.lane.b32.xlu1 %v5501_v41, %s6203_s6  ;;  %1441 = vrot.lane.b32.xlu0 %v5501_v41, %s6195_s7  ;;  %s6233_s7 = sld [smem:[#allocation16_spill]]  ;;  %s6240_s6 = smov 72  }
 0x240   :  { %1267 = vrot.lane.b32.xlu1 %v5501_v41, %s6201_s11  ;;  %s6232_s11 = sld [smem:[#allocation15_spill]] }
 0x244   :  { %1439 = vrot.lane.b32.xlu1 %v5501_v41, %s6197_s3  ;;  %s6243_s3 = smov 40  }
 0x29a   :  { %v404_v42 = vpop.permute.xlu1 %403  ;;  %v229_v43 = vpop.permute.xlu0 %228 }
 0x29b   :  { %4718 = vmatpush3.xpose.msk.msra.mxu1 %vm230_vm2, %v229_v43  ;;  %4728 = vmatpush3.xpose.msk.msra.mxu0 %vm230_vm2, %v404_v42 }
 0x29c   :  { %4737 = vmatprep.subr.mxu0 %v5283_v36  ;;  %4722 = vmatprep.subr.mxu1 %v5283_v36 }
 0x29e   :  { %v402_v44 = vpop.permute.xlu1 %401  ;;  %4720 = vmatmul.mubr.msk.f32.vlgmr.msra.gmra.mrb[2].mxu1 %vm230_vm2, %v5487_v40  ;;  %v575_v45 = vpop.permute.xlu0 %574 }
 0x29f   :  { %4730 = vmatmul.mubr.msk.f32.vlgmr.msra.gmra.mrb[0].mxu0 %vm230_vm2, %v402_v44  ;;  %4724 = vmatprep.mubr.msk.f32.mxu1 %vm5284_vm1, %v5283_v36 }
 0x2a0   :  { %4739 = vmatprep.mubr.msk.f32.mxu0 %vm5284_vm1, %v5283_v36 }
 0x2a2   :  { %v577_v46 = vpop.permute.xlu1 %576  ;;  %v748_v47 = vpop.permute.xlu0 %747 }
 0x2a3   :  { %4738 = vmatpush3.xpose.msk.msra.mxu0 %vm230_vm2, %v577_v46 }
 0x2a4   :  { %4747 = vmatprep.subr.mxu0 %v5283_v36 }
 0x2a6   :  { %v750_v48 = vpop.permute.xlu1 %749  ;;  %4740 = vmatmul.mubr.msk.f32.vlgmr.msra.gmra.mrb[2].mxu0 %vm230_vm2, %v575_v45  ;;  %v1098_v49 = vpop.permute.xlu0 %1097 }
 0x2a7   :  { %4748 = vmatpush3.xpose.msk.msra.mxu0 %vm230_vm2, %v750_v48  ;;  %4749 = vmatprep.mubr.msk.f32.mxu0 %vm5284_vm1, %v5283_v36 }
 0x2a8   :  { %4757 = vmatprep.subr.mxu0 %v5283_v36 }
 0x2aa   :  { %v924_v50 = vpop.permute.xlu1 %923  ;;  %4750 = vmatmul.mubr.msk.f32.vlgmr.msra.gmra.mrb[4].mxu0 %vm230_vm2, %v748_v47  ;;  %v1270_v52 = vpop.permute.xlu0 %1269 }
 0x2ab   :  { %4758 = vmatpush3.xpose.msk.msra.mxu0 %vm230_vm2, %v924_v50  ;;  %4759 = vmatprep.mubr.msk.f32.mxu0 %vm5284_vm1, %v5283_v36 }
 0x2ac   :  { %4767 = vmatprep.subr.mxu0 %v5283_v36 }
 0x2ae   :  { %v1096_v51 = vpop.permute.xlu1 %1095  ;;  %4760 = vmatmul.mubr.msk.f32.vlgmr.msra.gmra.mrb[6].mxu0 %vm230_vm2, %v5501_v41  ;;  %v1442_v54 = vpop.permute.xlu0 %1441 }
 0x2af   :  { %4768 = vmatpush3.xpose.msk.msra.mxu0 %vm230_vm2, %v1098_v49  ;;  %4769 = vmatprep.mubr.msk.f32.mxu0 %vm5284_vm1, %v5283_v36 }
 0x2b0   :  { %4777 = vmatprep.subr.mxu0 %v5283_v36 }
 0x2b2   :  { %4770 = vmatmul.mubr.msk.f32.vlgmr.msra.gmra.mrb[8].mxu0 %vm230_vm2, %v1096_v51  ;;  %v1268_v53 = vpop.permute.xlu1 %1267 }
 0x2b3   :  { %4778 = vmatpush3.xpose.msk.msra.mxu0 %vm230_vm2, %v1270_v52  ;;  %4779 = vmatprep.mubr.msk.f32.mxu0 %vm5284_vm1, %v5283_v36 }
 0x2b4   :  { %4787 = vmatprep.subr.mxu0 %v5283_v36 }
 0x2b6   :  { %4780 = vmatmul.mubr.msk.f32.vlgmr.msra.gmra.mrb[10].mxu0 %vm230_vm2, %v1268_v53  ;;  %v1440_v55 = vpop.permute.xlu1 %1439 }
 0x2b7   :  { %4788 = vmatpush3.xpose.msk.msra.mxu0 %vm230_vm2, %v1442_v54  ;;  %4789 = vmatprep.mubr.msk.f32.mxu0 %vm5284_vm1, %v5283_v36 }
 0x2ba   :  { %4790 = vmatmul.mubr.msk.f32.vlgmr.msra.gmra.mrb[12].mxu0 %vm230_vm2, %v1440_v55 }
 0x371   :  { %v301_v56 = vpop.f32.mrb[2].mxu1 }
 0x372   :  { %v305_v58 = vmul.f32 0.35355338, %v301_v56  ;;  %v4721_v59 = vpop.f32.mrb[3].mxu1  ;;  %v475_v60 = vpop.f32.mrb[0].mxu0 }
 0x373   :  { %v479_v61 = vmul.f32 0.35355338, %v475_v60  ;;  %v4731_v62 = vpop.f32.mrb[1].mxu0 }
 0x374   :  { %v312_v63 = vadd.f32 %v5561_v57, %v305_v58 }
 0x375   :  { %v480_v0 = vadd.f32 %v5561_v57, %v479_v61 }
 0x376   :  { %v313_v1 = vsel %vm230_vm2, %v312_v63, -inf }
 0x377   :  { %314 = vmax.xlane.f32.xlu0 %v313_v1  ;;  %v481_v2 = vsel %vm230_vm2, %v480_v0, -inf }
 0x378   :  { %482 = vmax.xlane.f32.xlu1 %v481_v2 }
 0x379   :  { %v648_v3 = vpop.f32.mrb[2].mxu0 }
 0x37a   :  { %v652_v4 = vmul.f32 0.35355338, %v648_v3  ;;  %v4741_v5 = vpop.f32.mrb[3].mxu0 }
 0x37c   :  { %v5568_v6 = vadd.f32 %v5561_v57, %v652_v4 }
 0x37d   :  { %v821_v7 = vpop.f32.mrb[4].mxu0 }
 0x37e   :  { %v825_v8 = vmul.f32 0.35355338, %v821_v7  ;;  %v4751_v9 = vpop.f32.mrb[5].mxu0  ;;  %v654_v10 = vsel %vm230_vm2, %v5568_v6, -inf }
 0x37f   :  { %655 = vmax.xlane.f32.xlu0 %v654_v10 }
 0x380   :  { %v826_v11 = vadd.f32 %v5561_v57, %v825_v8 }
 0x381   :  { %v995_v12 = vpop.f32.mrb[6].mxu0 }
 0x382   :  { %v999_v14 = vmul.f32 0.35355338, %v995_v12  ;;  %v4761_v15 = vpop.f32.mrb[7].mxu0  ;;  %v827_v16 = vsel %vm230_vm2, %v826_v11, -inf }
 0x383   :  { %828 = vmax.xlane.f32.xlu0 %v827_v16 }
 0x384   :  { %v5580_v17 = vadd.f32 %v5576_v13, %v999_v14 }
 0x385   :  { %v1169_v18 = vpop.f32.mrb[8].mxu0 }
 0x386   :  { %v1173_v19 = vmul.f32 0.35355338, %v1169_v18  ;;  %v4771_v20 = vpop.f32.mrb[9].mxu0  ;;  %v1007_v21 = vsel %vm230_vm2, %v5580_v17, -inf }
 0x387   :  { %1008 = vmax.xlane.f32.xlu0 %v1007_v21 }
 0x388   :  { %v1174_v22 = vadd.f32 %v5576_v13, %v1173_v19 }
 0x389   :  { %v1341_v23 = vpop.f32.mrb[10].mxu0 }
 0x38a   :  { %v1345_v24 = vmul.f32 0.35355338, %v1341_v23  ;;  %v4781_v25 = vpop.f32.mrb[11].mxu0  ;;  %v1175_v26 = vsel %vm230_vm2, %v1174_v22, -inf }
 0x38b   :  { %1176 = vmax.xlane.f32.xlu1 %v1175_v26 }
 0x38c   :  { %v1346_v27 = vadd.f32 %v5576_v13, %v1345_v24 }
 0x38d   :  { %v1513_v28 = vpop.f32.mrb[12].mxu0 }
 0x38e   :  { %v4791_v29 = vpop.f32.mrb[13].mxu0  ;;  %v1347_v30 = vsel %vm230_vm2, %v1346_v27, -inf  ;;  %v1517_v31 = vmul.f32 0.35355338, %v1513_v28 }
 0x38f   :  { %1348 = vmax.xlane.f32.xlu0 %v1347_v30 }
 0x390   :  { %v1518_v32 = vadd.f32 %v5576_v13, %v1517_v31 }
 0x392   :  { %v1519_v34 = vsel %vm230_vm2, %v1518_v32, -inf }
 0x39c   :  { %324 = vrot.lane.b32.xlu1 %v5487_v40, %s6193_s28 }
 0x3c0   :  { %1520 = vmax.xlane.f32.xlu1 %v1519_v34 }
 0x3d1   :  { %665 = vrot.lane.b32.xlu1 %v5487_v40, %s6191_s4 }
 0x3d5   :  { %838 = vrot.lane.b32.xlu1 %v5487_v40, %s6189_s8 }
 0x3d9   :  { %1018 = vrot.lane.b32.xlu1 %v5501_v41, %s6193_s28  ;;  %s6231_s28 = sld [smem:[#allocation14_spill]] }
 0x404   :  { %v315_v37 = vpop.xlane.xlu0 %314 }
 0x405   :  { %v316_v38 = vsub.f32 %v312_v63, %v315_v37  ;;  %v483_v39 = vpop.xlane.xlu1 %482 }
 0x406   :  { %v484_v42 = vsub.f32 %v480_v0, %v483_v39 }
 0x407   :  { %v317_v43 = vmul.f32 1.442695, %v316_v38 }
 0x408   :  { %v485_v44 = vmul.f32 1.442695, %v484_v42 }
 0x409   :  { %5163 = vpow2.f32 %v317_v43 }
 0x40a   :  { %5165 = vpow2.f32 %v485_v44 }
 0x40c   :  { %v656_v45 = vpop.xlane.xlu0 %655 }
 0x40d   :  { %v657_v58 = vsub.f32 %v5568_v6, %v656_v45 }
 0x40f   :  { %v658_v60 = vmul.f32 1.442695, %v657_v58 }
 0x410   :  { %v829_v46 = vpop.xlane.xlu0 %828 }
 0x411   :  { %v830_v47 = vsub.f32 %v826_v11, %v829_v46 }
 0x413   :  { %v5164_v48 = vpop.eup %5163  ;;  %v831_v49 = vmul.f32 1.442695, %v830_v47 }
 0x414   :  { %v5598_v50 = vpop.eup %5165  ;;  %v319_v51 = vsel %vm230_vm2, %v5164_v48, 0.0  ;;  %v1009_v59 = vpop.xlane.xlu0 %1008 }
 0x415   :  { %5167 = vpow2.f32 %v831_v49  ;;  %320 = vadd.xlane.f32.xlu0 %v319_v51  ;;  %v487_v52 = vsel %vm230_vm2, %v5598_v50, 0.0  ;;  %v1010_v61 = vsub.f32 %v5580_v17, %v1009_v59 }
 0x416   :  { %488 = vadd.xlane.f32.xlu1 %v487_v52  ;;  %5169 = vpow2.f32 %v658_v60 }
 0x417   :  { %v1011_v63 = vmul.f32 1.442695, %v1010_v61  ;;  %v1613_v61 = vld [vmem:[%s6231_s28] sm:$0xff] }
 0x418   :  { %v1177_v53 = vpop.xlane.xlu1 %1176 }
 0x419   :  { %5171 = vpow2.f32 %v1011_v63  ;;  %v1178_v1 = vsub.f32 %v1174_v22, %v1177_v53 }
 0x41b   :  { %v1179_v3 = vmul.f32 1.442695, %v1178_v1  ;;  %v1615_v1 = vld [vmem:[%s6231_s28 + $0x10] sm:$0xff] }
 0x41c   :  { %v325_v54 = vpop.permute.xlu1 %324  ;;  %v1349_v62 = vpop.xlane.xlu0 %1348 }
 0x41d   :  { %4723 = vmatpush3.msra.mxu1 %v325_v54  ;;  %v1350_v0 = vsub.f32 %v1346_v27, %v1349_v62  ;;  %v1614_v62 = vld [vmem:[%s6231_s28 + $0x8] sm:$0xff] }
 0x41e   :  { %4732 = vmatprep.subr.mxu1 %v5283_v36  ;;  %v5036_v63 = vpack.c.bf16 %v1614_v62, %v1613_v61 }
 0x41f   :  { %v5604_v55 = vpop.eup %5167  ;;  %v1351_v2 = vmul.f32 1.442695, %v1350_v0 }
 0x420   :  { %v833_v56 = vsel %vm230_vm2, %v5604_v55, 0.0  ;;  %v5170_v4 = vpop.eup %5169  ;;  %5037 = vmatprep.subr.bf16.mxu0 %v5036_v63 }
 0x421   :  { %834 = vadd.xlane.f32.xlu1 %v833_v56  ;;  %5173 = vpow2.f32 %v1351_v2  ;;  %v1616_v2 = vld [vmem:[%s6231_s28 + $0x18] sm:$0xff]  ;;  %5039 = vmatpush3.bf16.msra.mxu0 %v5036_v63  ;;  %v1897_v63 = vld [vmem:[%s6165_s14] sm:$0xff] }
 0x422   :  { %5175 = vpow2.f32 %v1179_v3 }
 0x423   :  { %v5172_v5 = vpop.eup %5171 }
 0x424   :  { %v1013_v7 = vsel %vm230_vm2, %v5172_v5, 0.0 }
 0x42b   :  { %492 = vrot.lane.b32.xlu0 %v5487_v40, %s6187_s30  ;;  %v660_v40 = vsel %vm230_vm2, %v5170_v4, 0.0  ;;  %v5616_v8 = vpop.eup %5173 }
 0x42c   :  { %v1353_v11 = vsel %vm230_vm2, %v5616_v8, 0.0  ;;  %v5176_v12 = vpop.eup %5175 }
 0x42d   :  { %v1181_v14 = vsel %vm230_vm2, %v5176_v12, 0.0 }
 0x432   :  { %1186 = vrot.lane.b32.xlu1 %v5501_v41, %s6187_s30  ;;  %s6207_s30 = smov 24  }
 0x44a   :  { %661 = vadd.xlane.f32.xlu0 %v660_v40 }
 0x44d   :  { %v1521_v6 = vpop.xlane.xlu1 %1520 }
 0x44e   :  { %v1522_v9 = vsub.f32 %v1518_v32, %v1521_v6  ;;  %1014 = vadd.xlane.f32.xlu0 %v1013_v7 }
 0x450   :  { %v1523_v10 = vmul.f32 1.442695, %v1522_v9 }
 0x451   :  { %v666_v17 = vpop.permute.xlu1 %665 }
 0x452   :  { %5177 = vpow2.f32 %v1523_v10  ;;  %1354 = vadd.xlane.f32.xlu0 %v1353_v11 }
 0x455   :  { %v839_v18 = vpop.permute.xlu1 %838 }
 0x456   :  { %1182 = vadd.xlane.f32.xlu1 %v1181_v14 }
 0x459   :  { %v1019_v19 = vpop.permute.xlu1 %1018 }
 0x45c   :  { %v5621_v15 = vpop.eup %5177 }
 0x45d   :  { %v1525_v16 = vsel %vm230_vm2, %v5621_v15, 0.0 }
 0x45e   :  { %1526 = vadd.xlane.f32.xlu0 %v1525_v16 }
 0x467   :  { %1530 = vrot.lane.b32.xlu1 %v5501_v41, %s6189_s8  ;;  %s6234_s8 = sld [smem:[#allocation17_spill]] }
 0x474   :  { %1358 = vrot.lane.b32.xlu0 %v5501_v41, %s6191_s4  ;;  %s6245_s4 = smov 8  }
 0x4a2   :  { %v321_v20 = vpop.xlane.xlu0 %320 }
 0x4a3   :  { %5179 = vrcp.f32 %v321_v20  ;;  %v489_v21 = vpop.xlane.xlu1 %488 }
 0x4a4   :  { %5181 = vrcp.f32 %v489_v21 }
 0x4a6   :  { %v493_v25 = vpop.permute.xlu0 %492 }
 0x4ad   :  { %v5180_v22 = vpop.eup %5179 }
 0x4ae   :  { %v323_v23 = vmul.f32 %v5180_v22, %v5164_v48  ;;  %v5182_v24 = vpop.eup %5181  ;;  %v835_v41 = vpop.xlane.xlu1 %834 }
 0x4af   :  { %v491_v26 = vmul.f32 %v5182_v24, %v5598_v50 }
 0x4b0   :  { %4725 = vmatmul.mubr.msk.f32.vlgmr.msra.gmra.mrb[4].mxu1 %vm230_vm2, %v323_v23 }
 0x4b1   :  { %4733 = vmatpush3.msra.mxu1 %v493_v25  ;;  %4734 = vmatprep.mubr.msk.f32.mxu1 %vm5284_vm1, %v5283_v36 }
 0x4b2   :  { %4742 = vmatprep.subr.mxu1 %v5283_v36  ;;  %v1187_v29 = vpop.permute.xlu1 %1186 }
 0x4b4   :  { %4735 = vmatmul.mubr.msk.f32.vlgmr.msra.gmra.mrb[6].mxu1 %vm230_vm2, %v491_v26 }
 0x4b5   :  { %4743 = vmatpush3.msra.mxu1 %v666_v17  ;;  %4744 = vmatprep.mubr.msk.f32.mxu1 %vm5284_vm1, %v5283_v36 }
 0x4b6   :  { %4752 = vmatprep.subr.mxu1 %v5283_v36 }
 0x4d7   :  { %v662_v27 = vpop.xlane.xlu0 %661 }
 0x4d8   :  { %5183 = vrcp.f32 %v662_v27 }
 0x4d9   :  { %5185 = vrcp.f32 %v835_v41 }
 0x4db   :  { %v1015_v28 = vpop.xlane.xlu0 %1014 }
 0x4dc   :  { %5187 = vrcp.f32 %v1015_v28 }
 0x4df   :  { %v1355_v32 = vpop.xlane.xlu0 %1354 }
 0x4e2   :  { %v5184_v30 = vpop.eup %5183 }
 0x4e3   :  { %v664_v31 = vmul.f32 %v5184_v30, %v5170_v4  ;;  %v1183_v34 = vpop.xlane.xlu1 %1182  ;;  %v5186_v37 = vpop.eup %5185  ;;  %v5040_v4 = vpack.c.bf16 %v1616_v2, %v1615_v1  ;;  %v1899_v2 = vld [vmem:[%s6165_s14 + $0x10] sm:$0xff] }
 0x4e4   :  { %5189 = vrcp.f32 %v1183_v34  ;;  %v837_v38 = vmul.f32 %v5186_v37, %v5604_v55 }
 0x4e5   :  { %4745 = vmatmul.mubr.msk.f32.vlgmr.msra.gmra.mrb[8].mxu1 %vm230_vm2, %v664_v31  ;;  %5191 = vrcp.f32 %v1355_v32  ;;  %5041 = vmatprep.subr.bf16.mxu0 %v5040_v4 }
 0x4e6   :  { %4753 = vmatpush3.msra.mxu1 %v839_v18  ;;  %4754 = vmatprep.mubr.msk.f32.mxu1 %vm5284_vm1, %v5283_v36  ;;  %v5188_v39 = vpop.eup %5187 }
 0x4e7   :  { %4762 = vmatprep.subr.mxu1 %v5283_v36  ;;  %v1017_v42 = vmul.f32 %v5188_v39, %v5172_v5  ;;  %v1531_v49 = vpop.permute.xlu1 %1530  ;;  %5043 = vmatpush3.bf16.msra.mxu0 %v5040_v4  ;;  %v1752_v39 = vld [vmem:[%s6163_s12 + $0x8] sm:$0xff] }
 0x4e9   :  { %4755 = vmatmul.mubr.msk.f32.vlgmr.msra.gmra.mrb[10].mxu1 %vm230_vm2, %v837_v38 }
 0x4ea   :  { %4763 = vmatpush3.msra.mxu1 %v1019_v19  ;;  %4764 = vmatprep.mubr.msk.f32.mxu1 %vm5284_vm1, %v5283_v36  ;;  %v4466_v19 = vld [vmem:[%s6232_s11] ss:$0 sm:$0xff] }
 0x4eb   :  { %v1527_v43 = vpop.xlane.xlu0 %1526  ;;  %4772 = vmatprep.subr.mxu1 %v5283_v36 }
 0x4ec   :  { %5193 = vrcp.f32 %v1527_v43  ;;  %v1753_v43 = vld [vmem:[%s6163_s12 + $0x10] sm:$0xff] }
 0x4ed   :  { %4765 = vmatmul.mubr.msk.f32.vlgmr.msra.gmra.mrb[12].mxu1 %vm230_vm2, %v1017_v42 }
 0x4ee   :  { %v5190_v44 = vpop.eup %5189  ;;  %4773 = vmatpush3.msra.mxu1 %v1187_v29  ;;  %4774 = vmatprep.mubr.msk.f32.mxu1 %vm5284_vm1, %v5283_v36 }
 0x4ef   :  { %v1185_v45 = vmul.f32 %v5190_v44, %v5176_v12  ;;  %v1359_v46 = vpop.permute.xlu0 %1358  ;;  %4782 = vmatprep.subr.mxu1 %v5283_v36  ;;  %v5192_v47 = vpop.eup %5191  ;;  %v1754_v44 = vld [vmem:[%s6163_s12 + $0x18] sm:$0xff] }
 0x4f0   :  { %v1357_v48 = vmul.f32 %v5192_v47, %v5616_v8 }
 0x4f1   :  { %4775 = vmatmul.mubr.msk.f32.vlgmr.msra.gmra.mrb[14].mxu1 %vm230_vm2, %v1185_v45  ;;  %v5048_v45 = vpack.c.bf16 %v1754_v44, %v1753_v43 }
 0x4f2   :  { %4783 = vmatpush3.msra.mxu1 %v1359_v46  ;;  %4784 = vmatprep.mubr.msk.f32.mxu1 %vm5284_vm1, %v5283_v36 }
 0x4f3   :  { %4792 = vmatprep.subr.mxu1 %v5283_v36 }
 0x4f5   :  { %4785 = vmatmul.mubr.msk.f32.vlgmr.msra.gmra.mrb[16].mxu1 %vm230_vm2, %v1357_v48 }
 0x4f6   :  { %v5194_v50 = vpop.eup %5193  ;;  %4793 = vmatpush3.msra.mxu1 %v1531_v49  ;;  %4794 = vmatprep.mubr.msk.f32.mxu1 %vm5284_vm1, %v5283_v36 }
 0x4f7   :  { %v1529_v51 = vmul.f32 %v5194_v50, %v5621_v15 }
 0x4f9   :  { %4795 = vmatmul.mubr.msk.f32.vlgmr.msra.gmra.mrb[18].mxu1 %vm230_vm2, %v1529_v51 }
 0x583   :  { %v396_v52 = vpop.f32.mrb[4].mxu1 }
 0x584   :  { %400 = vst.msk [vmem:[#allocation2] sm:$0xff] %vm230_vm2, %v396_v52  ;;  %v4726_v53 = vpop.f32.mrb[5].mxu1 }
 0x585   :  { %v4469_v53 = vld [vmem:[%s6233_s7] ss:$0 sm:$0xff] }
 0x587   :  { %v564_v54 = vpop.f32.mrb[6].mxu1 }
 0x588   :  { %569 = vrot.lane.b32.xlu0 %v564_v54, %s6211_s9  ;;  %v4736_v55 = vpop.f32.mrb[7].mxu1 }
 0x589   :  { %v4470_v55 = vld [vmem:[%s6234_s8] ss:$0 sm:$0xff] }
 0x5b8   :  { %v737_v56 = vpop.f32.mrb[8].mxu1 }
 0x5b9   :  { %742 = vrot.lane.b32.xlu1 %v737_v56, %s6209_s5  ;;  %v4746_v58 = vpop.f32.mrb[9].mxu1 }
 0x5bc   :  { %v910_v59 = vpop.f32.mrb[10].mxu1 }
 0x5bd   :  { %915 = vrot.lane.b32.xlu1 %v910_v59, %s6207_s30  ;;  %v4756_v60 = vpop.f32.mrb[11].mxu1 }
 0x5c0   :  { %v1090_v0 = vpop.f32.mrb[12].mxu1 }
 0x5c1   :  { %1094 = vst.msk [vmem:[#allocation2 + $0x8] sm:$0xff] %vm230_vm2, %v1090_v0  ;;  %v4766_v3 = vpop.f32.mrb[13].mxu1  ;;  %v1898_v0 = vld [vmem:[%s6165_s14 + $0x8] sm:$0xff] }
 0x5c2   :  { %v5052_v1 = vpack.c.bf16 %v1898_v0, %v1897_v63  ;;  %v1900_v3 = vld [vmem:[%s6165_s14 + $0x18] sm:$0xff] }
 0x5c3   :  { %v5056_v4 = vpack.c.bf16 %v1900_v3, %v1899_v2 }
 0x5c4   :  { %v1258_v40 = vpop.f32.mrb[14].mxu1  ;;  %5053 = vmatprep.subr.bf16.mxu0 %v5052_v1 }
 0x5c5   :  { %1263 = vrot.lane.b32.xlu0 %v1258_v40, %s6211_s9  ;;  %v4776_v5 = vpop.f32.mrb[15].mxu1  ;;  %v1901_v40 = vld [vmem:[%s6165_s14 + $0x20] sm:$0xff]  ;;  %s6236_s9 = smov 120  }
 0x5c6   :  { %v1902_v5 = vld [vmem:[%s6165_s14 + $0x28] sm:$0xff] }
 0x5c8   :  { %v1430_v6 = vpop.f32.mrb[16].mxu1 }
 0x5c9   :  { %1435 = vrot.lane.b32.xlu0 %v1430_v6, %s6209_s5  ;;  %v4786_v7 = vpop.f32.mrb[17].mxu1  ;;  %v5060_v6 = vpack.c.bf16 %v1902_v5, %v1901_v40  ;;  %s6237_s5 = smov 112  }
 0x5ca   :  { %v1903_v7 = vld [vmem:[%s6165_s14 + $0x30] sm:$0xff] }
 0x5cc   :  { %v1602_v8 = vpop.f32.mrb[18].mxu1 }
 0x5cd   :  { %1607 = vrot.lane.b32.xlu1 %v1602_v8, %s6207_s30  ;;  %v4796_v9 = vpop.f32.mrb[19].mxu1  ;;  %v1904_v8 = vld [vmem:[%s6165_s14 + $0x38] sm:$0xff]  ;;  %s6235_s30 = smov 96  }
 0x5ce   :  { %v5064_v9 = vpack.c.bf16 %v1904_v8, %v1903_v7  ;;  %v4479_v8 = vld [vmem:[%s6226_s0 + $0x30] sm:$0xff] }
 0x5fa   :  { %v570_v10 = vpop.permute.xlu0 %569 }
 0x5fb   :  { %573 = vst.msk [vmem:[#allocation2] sm:$0xff] %vm572_vm3, %v570_v10  ;;  %v4477_v10 = vld [vmem:[%s6226_s0 + $0x20] sm:$0xff] }
 0x62b   :  { %v743_v11 = vpop.permute.xlu1 %742 }
 0x62c   :  { %746 = vst.msk [vmem:[#allocation2] sm:$0xff] %vm745_vm4, %v743_v11  ;;  %v4478_v11 = vld [vmem:[%s6226_s0 + $0x28] sm:$0xff] }
 0x62f   :  { %v916_v12 = vpop.permute.xlu1 %915 }
 0x630   :  { %919 = vst.msk [vmem:[#allocation2] sm:$0xff] %vm918_vm5, %v916_v12  ;;  %v5068_v12 = vpack.c.bf16 %v4478_v11, %v4477_v10  ;;  %v4474_v11 = vld [vmem:[%s6166_s15] ss:$0 sm:$0xff] }
 0x637   :  { %v1264_v14 = vpop.permute.xlu0 %1263  ;;  %v1611_v15 = vld [vmem:[#allocation2] sm:$0xff] }
 0x638   :  { %1266 = vst.msk [vmem:[#allocation2 + $0x8] sm:$0xff] %vm572_vm3, %v1264_v14  ;;  %4805 = vmatprep.mubr.msk.f32.mxu0 %vm90_vm0, %v1611_v15  ;;  %v4471_v14 = vld [vmem:[%s6164_s13] ss:$0 sm:$0xff] }
 0x63b   :  { %v1436_v16 = vpop.permute.xlu0 %1435 }
 0x63c   :  { %1438 = vst.msk [vmem:[#allocation2 + $0x8] sm:$0xff] %vm745_vm4, %v1436_v16 }
 0x63f   :  { %v1608_v17 = vpop.permute.xlu1 %1607 }
 0x640   :  { %1610 = vst.msk [vmem:[#allocation2 + $0x8] sm:$0xff] %vm918_vm5, %v1608_v17 }
 0x647   :  { %v1612_v18 = vld [vmem:[#allocation2 + $0x8] sm:$0xff] }
 0x648   :  { %4806 = vmatmul.mubr.msk.f32.vlgmr.msra.gmra.mrb[14].mxu0 %vm90_vm0, %v1612_v18 }
 0x649   :  { %5055 = vmatpush3.bf16.msra.mxu0 %v5052_v1 }
 0x64a   :  { %5057 = vmatprep.subr.bf16.mxu0 %v5056_v4 }
 0x64d   :  { %5059 = vmatpush3.bf16.msra.mxu0 %v5056_v4 }
 0x64e   :  { %5061 = vmatprep.subr.bf16.mxu0 %v5060_v6 }
 0x651   :  { %5063 = vmatpush3.bf16.msra.mxu0 %v5060_v6 }
 0x652   :  { %5065 = vmatprep.subr.bf16.mxu0 %v5064_v9 }
 0x655   :  { %5067 = vmatpush3.bf16.msra.mxu0 %v5064_v9  ;;  %v4480_v9 = vld [vmem:[%s6226_s0 + $0x38] sm:$0xff]  ;;  %s6244_s0 = smov 56  }
 0x656   :  { %4859 = vmatprep.subr.mxu0 %v5283_v36  ;;  %v5072_v10 = vpack.c.bf16 %v4480_v9, %v4479_v8 }
 0x71b   :  { %v4807_v20 = vpop.f32.mrb[14].mxu0 }
 0x71c   :  { %v1702_v21 = vadd.f32 %v4807_v20, %v4466_v19  ;;  %v1696_v22 = vpop.f32.mrb[15].mxu0 }
 0x71d   :  { %v1697_v23 = vadd.f32 %v4466_v19, %v1696_v22 }
 0x71e   :  { %v1706_v24 = vadd.f32 %v1702_v21, %v5474_v35 }
 0x71f   :  { %v1705_v25 = vadd.f32 %v1697_v23, %v5470_v33  ;;  %v1751_v33 = vld [vmem:[%s6163_s12] sm:$0xff] }
 0x720   :  { %v1712_v26 = vsel %vm90_vm0, %v1706_v24, 0.0  ;;  %v5044_v42 = vpack.c.bf16 %v1752_v39, %v1751_v33 }
 0x721   :  { %1713 = vadd.xlane.f32.xlu1 %v1712_v26  ;;  %v1709_v41 = vsel %vm90_vm0, %v1705_v25, 0.0 }
 0x722   :  { %1710 = vadd.xlane.f32.xlu0 %v1709_v41  ;;  %5045 = vmatprep.subr.bf16.mxu1 %v5044_v42 }
 0x723   :  { %5047 = vmatpush3.bf16.msra.mxu1 %v5044_v42 }
 0x724   :  { %5049 = vmatprep.subr.bf16.mxu1 %v5048_v45 }
 0x727   :  { %5051 = vmatpush3.bf16.msra.mxu1 %v5048_v45 }
 0x728   :  { %5069 = vmatprep.subr.bf16.mxu1 %v5068_v12 }
 0x7ae   :  { %v1714_v27 = vpop.xlane.xlu1 %1713 }
 0x7af   :  { %v1716_v28 = vmul.f32 0.03125, %v1714_v27  ;;  %v1711_v29 = vpop.xlane.xlu0 %1710 }
 0x7b0   :  { %v1715_v30 = vmul.f32 0.03125, %v1711_v29 }
 0x7b1   :  { %v1718_v31 = vsub.f32 %v1706_v24, %v1716_v28 }
 0x7b2   :  { %v1717_v32 = vsub.f32 %v1705_v25, %v1715_v30 }
 0x7b3   :  { %v1720_v38 = vmul.f32 %v1718_v31, %v1718_v31 }
 0x7b4   :  { %v1719_v34 = vmul.f32 %v1717_v32, %v1717_v32 }
 0x7b5   :  { %v1724_v35 = vsel %vm90_vm0, %v1720_v38, 0.0 }
 0x7b6   :  { %v1721_v37 = vsel %vm90_vm0, %v1719_v34, 0.0 }
 0x7b7   :  { %1722 = vadd.xlane.f32.xlu0 %v1721_v37 }
 0x7bb   :  { %1725 = vadd.xlane.f32.xlu0 %v1724_v35 }
 0x844   :  { %v1723_v46 = vpop.xlane.xlu0 %1722 }
 0x845   :  { %v1727_v47 = vmul.f32 0.03125, %v1723_v46 }
 0x847   :  { %v1729_v48 = vadd.f32 1e-05, %v1727_v47 }
 0x848   :  { %v1726_v49 = vpop.xlane.xlu0 %1725 }
 0x849   :  { %5195 = vrsqrt.f32 %v1729_v48  ;;  %v1728_v50 = vmul.f32 0.03125, %v1726_v49 }
 0x84b   :  { %v1730_v51 = vadd.f32 1e-05, %v1728_v50 }
 0x84d   :  { %5197 = vrsqrt.f32 %v1730_v51 }
 0x853   :  { %v5196_v52 = vpop.eup %5195 }
 0x854   :  { %v1733_v54 = vmul.f32 %v5196_v52, %v1717_v32 }
 0x856   :  { %v1741_v56 = vmul.f32 %v4469_v53, %v1733_v54 }
 0x857   :  { %v5198_v58 = vpop.eup %5197 }
 0x858   :  { %v1734_v59 = vmul.f32 %v5198_v58, %v1718_v31  ;;  %v1749_v60 = vadd.f32 %v4470_v55, %v1741_v56 }
 0x85a   :  { %v1742_v61 = vmul.f32 %v4469_v53, %v1734_v59  ;;  %4816 = vmatprep.mubr.msk.f32.mxu1 %vm90_vm0, %v1749_v60 }
 0x85c   :  { %v1750_v62 = vadd.f32 %v4470_v55, %v1742_v61  ;;  %v5299_v61 = vmov 1.0  }
 0x85e   :  { %4817 = vmatmul.mubr.msk.f32.vlgmr.msra.gmra.mrb[20].mxu1 %vm90_vm0, %v1750_v62 }
 0x85f   :  { %5071 = vmatpush3.bf16.msra.mxu1 %v5068_v12 }
 0x860   :  { %5073 = vmatprep.subr.bf16.mxu1 %v5072_v10 }
 0x863   :  { %5075 = vmatpush3.bf16.msra.mxu1 %v5072_v10 }
 0x864   :  { %4849 = vmatprep.subr.mxu1 %v5283_v36 }
 0x931   :  { %v4818_v15 = vpop.f32.mrb[20].mxu1 }
 0x932   :  { %v1840_v16 = vadd.f32 %v4818_v15, %v4471_v14  ;;  %v1834_v17 = vpop.f32.mrb[21].mxu1 }
 0x933   :  { %v1835_v18 = vadd.f32 %v4471_v14, %v1834_v17  ;;  %v4482_v17 = vld [vmem:[%s6229_s10 + $0x1] ss:$0 sm:$0xff]  ;;  %s6239_s10 = smov 104  }
 0x934   :  { %v1846_v19 = vmul.f32 0.70710677, %v1840_v16  ;;  %v1844_v5 = vmul.f32 0.5, %v1840_v16 }
 0x935   :  { %v1845_v20 = vmul.f32 0.70710677, %v1835_v18  ;;  %v1843_v4 = vmul.f32 0.5, %v1835_v18 }
 0x936   :  { %v1852_v21 = vand.u32 2147483647, %v1846_v19  ;;  %vm1848_vm6 = vcmp.lt.f32.partialorder %v1846_v19, 0.0 }
 0x937   :  { %v1851_v22 = vand.u32 2147483647, %v1845_v20  ;;  %vm1847_vm7 = vcmp.lt.f32.partialorder %v1845_v20, 0.0  ;;  %v1850_v62 = vsel %vm1848_vm6, -1.0, %v5299_v61 }
 0x938   :  { %v1854_v23 = vmul.f32 0.3275911, %v1852_v21  ;;  %v1880_v41 = vsub.f32 0.0, %v1852_v21  ;;  %v1849_v1 = vsel %vm1847_vm7, -1.0, %v5299_v61 }
 0x939   :  { %v1853_v24 = vmul.f32 0.3275911, %v1851_v22  ;;  %v1879_v27 = vsub.f32 0.0, %v1851_v22 }
 0x93a   :  { %v1856_v25 = vadd.f32 1.0, %v1854_v23  ;;  %v1882_v29 = vmul.f32 %v1880_v41, %v1852_v21 }
 0x93b   :  { %v1855_v26 = vadd.f32 1.0, %v1853_v24  ;;  %v1881_v32 = vmul.f32 %v1879_v27, %v1851_v22 }
 0x93c   :  { %5199 = vrcp.f32 %v1856_v25  ;;  %v1885_v38 = vmul.f32 1.442695, %v1882_v29 }
 0x93d   :  { %5201 = vrcp.f32 %v1855_v26  ;;  %v1883_v39 = vmul.f32 1.442695, %v1881_v32 }
 0x93e   :  { %5203 = vpow2.f32 %v1885_v38 }
 0x93f   :  { %5205 = vpow2.f32 %v1883_v39 }
 0x946   :  { %v5200_v28 = vpop.eup %5199 }
 0x947   :  { %v5202_v30 = vpop.eup %5201  ;;  %v1862_v31 = vmul.f32 1.0614054, %v5200_v28 }
 0x948   :  { %v1861_v34 = vmul.f32 1.0614054, %v5202_v30  ;;  %v5204_v54 = vpop.eup %5203 }
 0x949   :  { %v1864_v37 = vadd.f32 -1.4531521, %v1862_v31  ;;  %v5206_v56 = vpop.eup %5205 }
 0x94a   :  { %v1863_v35 = vadd.f32 -1.4531521, %v1861_v34 }
 0x94b   :  { %v1866_v33 = vmul.f32 %v5200_v28, %v1864_v37 }
 0x94c   :  { %v1865_v42 = vmul.f32 %v5202_v30, %v1863_v35 }
 0x94d   :  { %v1868_v43 = vadd.f32 1.4214138, %v1866_v33 }
 0x94e   :  { %v1867_v44 = vadd.f32 1.4214138, %v1865_v42 }
 0x94f   :  { %v1870_v45 = vmul.f32 %v5200_v28, %v1868_v43 }
 0x950   :  { %v1869_v46 = vmul.f32 %v5202_v30, %v1867_v44 }
 0x951   :  { %v1872_v47 = vadd.f32 -0.28449672, %v1870_v45 }
 0x952   :  { %v1871_v48 = vadd.f32 -0.28449672, %v1869_v46 }
 0x953   :  { %v1874_v49 = vmul.f32 %v5200_v28, %v1872_v47 }
 0x954   :  { %v1873_v50 = vmul.f32 %v5202_v30, %v1871_v48 }
 0x955   :  { %v1876_v51 = vadd.f32 0.2548296, %v1874_v49 }
 0x956   :  { %v1875_v52 = vadd.f32 0.2548296, %v1873_v50 }
 0x957   :  { %v1878_v53 = vmul.f32 %v5200_v28, %v1876_v51 }
 0x958   :  { %v1877_v55 = vmul.f32 %v5202_v30, %v1875_v52 }
 0x959   :  { %v1888_v58 = vmul.f32 %v5204_v54, %v1878_v53 }
 0x95a   :  { %v1887_v59 = vmul.f32 %v5206_v56, %v1877_v55 }
 0x95b   :  { %v1890_v60 = vsub.f32 1.0, %v1888_v58 }
 0x95c   :  { %v1889_v63 = vsub.f32 1.0, %v1887_v59 }
 0x95d   :  { %v1892_v0 = vmul.f32 %v1890_v60, %v1850_v62 }
 0x95e   :  { %v1891_v2 = vmul.f32 %v1889_v63, %v1849_v1 }
 0x95f   :  { %v1894_v3 = vadd.f32 1.0, %v1892_v0 }
 0x960   :  { %v1893_v40 = vadd.f32 1.0, %v1891_v2 }
 0x961   :  { %v1896_v7 = vmul.f32 %v1894_v3, %v1844_v5 }
 0x962   :  { %v1895_v6 = vmul.f32 %v1893_v40, %v1843_v4 }
 0x964   :  { %4835 = vmatprep.mubr.msk.f32.mxu0 %vm1912_vm8, %v1895_v6 }
 0x965   :  { %4836 = vmatmul.mubr.msk.f32.vlgmr.msra.gmra.mrb[16].mxu0 %vm1912_vm8, %v1896_v7 }
 0x966   :  { %4861 = vmatprep.mubr.msk.f32.mxu0 %vm5284_vm1, %v5283_v36 }
 0xa38   :  { %v4837_v12 = vpop.f32.mrb[16].mxu0 }
 0xa39   :  { %v1985_v14 = vpop.f32.mrb[17].mxu0  ;;  %v5770_v16 = vadd.f32 %v4837_v12, %v4474_v11 }
 0xa3a   :  { %v5768_v15 = vadd.f32 %v4474_v11, %v1985_v14 }
 0xa3c   :  { %4846 = vmatprep.mubr.msk.f32.mxu1 %vm90_vm0, %v5768_v15 }
 0xa3d   :  { %4847 = vmatmul.mubr.msk.f32.vlgmr.msra.gmra.mrb[22].mxu1 %vm90_vm0, %v5770_v16 }
 0xa3e   :  { %4851 = vmatprep.mubr.msk.f32.mxu1 %vm5284_vm1, %v5283_v36 }
 0xb10   :  { %v4848_v18 = vpop.f32.mrb[22].mxu1 }
 0xb11   :  { %v2079_v19 = vpop.f32.mrb[23].mxu1  ;;  %v5795_v21 = vadd.f32 %v4848_v18, %v4482_v17 }
 0xb12   :  { %v5781_v20 = vadd.f32 %v4482_v17, %v2079_v19 }
 0xb14   :  { %2264 = vrot.lane.b32.xlu1 %v5781_v20, %s5285_s29  ;;  %2090 = vrot.lane.b32.xlu0 %v5781_v20, %s6235_s30 }
 0xb18   :  { %2262 = vrot.lane.b32.xlu1 %v5781_v20, %s6236_s9  ;;  %2434 = vrot.lane.b32.xlu0 %v5781_v20, %s6237_s5 }
 0xb1c   :  { %2436 = vrot.lane.b32.xlu1 %v5781_v20, %s6238_s1  ;;  %2606 = vrot.lane.b32.xlu0 %v5781_v20, %s6239_s10 }
 0xb20   :  { %2608 = vrot.lane.b32.xlu1 %v5781_v20, %s6240_s6  ;;  %2954 = vrot.lane.b32.xlu0 %v5795_v21, %s5285_s29  ;;  %s6241_s29 = smov 64  }
 0xb24   :  { %2780 = vrot.lane.b32.xlu1 %v5795_v21, %s6235_s30  ;;  %3126 = vrot.lane.b32.xlu0 %v5795_v21, %s6238_s1  ;;  %s6246_s30 = smov 16  }
 0xb28   :  { %2952 = vrot.lane.b32.xlu1 %v5795_v21, %s6236_s9  ;;  %3298 = vrot.lane.b32.xlu0 %v5795_v21, %s6240_s6  ;;  %s6247_s9 = smov 24   ;;  %s6249_s6 = sld [smem:[#allocation9_spill]] }
 0xb2c   :  { %3124 = vrot.lane.b32.xlu1 %v5795_v21, %s6237_s5 }
 0xb30   :  { %3296 = vrot.lane.b32.xlu1 %v5795_v21, %s6239_s10 }
 0xb86   :  { %v2265_v22 = vpop.permute.xlu1 %2264  ;;  %v2091_v23 = vpop.permute.xlu0 %2090 }
 0xb87   :  { %4850 = vmatpush3.xpose.msk.msra.mxu1 %vm230_vm2, %v2091_v23  ;;  %4860 = vmatpush3.xpose.msk.msra.mxu0 %vm230_vm2, %v2265_v22 }
 0xb88   :  { %4869 = vmatprep.subr.mxu0 %v5283_v36  ;;  %4854 = vmatprep.subr.mxu1 %v5283_v36 }
 0xb8a   :  { %v2263_v24 = vpop.permute.xlu1 %2262  ;;  %4852 = vmatmul.mubr.msk.f32.vlgmr.msra.gmra.mrb[24].mxu1 %vm230_vm2, %v5781_v20  ;;  %v2435_v25 = vpop.permute.xlu0 %2434 }
 0xb8b   :  { %4862 = vmatmul.mubr.msk.f32.vlgmr.msra.gmra.mrb[18].mxu0 %vm230_vm2, %v2263_v24  ;;  %4856 = vmatprep.mubr.msk.f32.mxu1 %vm5284_vm1, %v5283_v36 }
 0xb8c   :  { %4871 = vmatprep.mubr.msk.f32.mxu0 %vm5284_vm1, %v5283_v36 }
 0xb8e   :  { %v2437_v26 = vpop.permute.xlu1 %2436  ;;  %v2607_v41 = vpop.permute.xlu0 %2606 }
 0xb8f   :  { %4870 = vmatpush3.xpose.msk.msra.mxu0 %vm230_vm2, %v2437_v26 }
 0xb90   :  { %4879 = vmatprep.subr.mxu0 %v5283_v36 }
 0xb92   :  { %v2609_v27 = vpop.permute.xlu1 %2608  ;;  %4872 = vmatmul.mubr.msk.f32.vlgmr.msra.gmra.mrb[20].mxu0 %vm230_vm2, %v2435_v25  ;;  %v2955_v28 = vpop.permute.xlu0 %2954 }
 0xb93   :  { %4880 = vmatpush3.xpose.msk.msra.mxu0 %vm230_vm2, %v2609_v27  ;;  %4881 = vmatprep.mubr.msk.f32.mxu0 %vm5284_vm1, %v5283_v36 }
 0xb94   :  { %4889 = vmatprep.subr.mxu0 %v5283_v36 }
 0xb96   :  { %v2781_v29 = vpop.permute.xlu1 %2780  ;;  %4882 = vmatmul.mubr.msk.f32.vlgmr.msra.gmra.mrb[22].mxu0 %vm230_vm2, %v2607_v41  ;;  %v3127_v31 = vpop.permute.xlu0 %3126 }
 0xb97   :  { %4890 = vmatpush3.xpose.msk.msra.mxu0 %vm230_vm2, %v2781_v29  ;;  %4891 = vmatprep.mubr.msk.f32.mxu0 %vm5284_vm1, %v5283_v36 }
 0xb98   :  { %4899 = vmatprep.subr.mxu0 %v5283_v36 }
 0xb9a   :  { %v2953_v30 = vpop.permute.xlu1 %2952  ;;  %4892 = vmatmul.mubr.msk.f32.vlgmr.msra.gmra.mrb[24].mxu0 %vm230_vm2, %v5795_v21  ;;  %v3299_v34 = vpop.permute.xlu0 %3298 }
 0xb9b   :  { %4900 = vmatpush3.xpose.msk.msra.mxu0 %vm230_vm2, %v2955_v28  ;;  %4901 = vmatprep.mubr.msk.f32.mxu0 %vm5284_vm1, %v5283_v36 }
 0xb9c   :  { %4909 = vmatprep.subr.mxu0 %v5283_v36 }
 0xb9e   :  { %4902 = vmatmul.mubr.msk.f32.vlgmr.msra.gmra.mrb[26].mxu0 %vm230_vm2, %v2953_v30  ;;  %v3125_v32 = vpop.permute.xlu1 %3124 }
 0xb9f   :  { %4910 = vmatpush3.xpose.msk.msra.mxu0 %vm230_vm2, %v3127_v31  ;;  %4911 = vmatprep.mubr.msk.f32.mxu0 %vm5284_vm1, %v5283_v36 }
 0xba0   :  { %4919 = vmatprep.subr.mxu0 %v5283_v36 }
 0xba2   :  { %4912 = vmatmul.mubr.msk.f32.vlgmr.msra.gmra.mrb[28].mxu0 %vm230_vm2, %v3125_v32  ;;  %v3297_v37 = vpop.permute.xlu1 %3296 }
 0xba3   :  { %4920 = vmatpush3.xpose.msk.msra.mxu0 %vm230_vm2, %v3299_v34  ;;  %4921 = vmatprep.mubr.msk.f32.mxu0 %vm5284_vm1, %v5283_v36 }
 0xba6   :  { %4922 = vmatmul.mubr.msk.f32.vlgmr.msra.gmra.mrb[30].mxu0 %vm230_vm2, %v3297_v37 }
 0xc5d   :  { %v2162_v38 = vpop.f32.mrb[24].mxu1 }
 0xc5e   :  { %v2166_v35 = vmul.f32 0.35355338, %v2162_v38  ;;  %v4853_v33 = vpop.f32.mrb[25].mxu1  ;;  %v2336_v39 = vpop.f32.mrb[18].mxu0 }
 0xc5f   :  { %v2340_v42 = vmul.f32 0.35355338, %v2336_v39  ;;  %v4863_v43 = vpop.f32.mrb[19].mxu0 }
 0xc60   :  { %v2173_v44 = vadd.f32 %v5561_v57, %v2166_v35 }
 0xc61   :  { %v2341_v45 = vadd.f32 %v5561_v57, %v2340_v42 }
 0xc62   :  { %v2174_v46 = vsel %vm230_vm2, %v2173_v44, -inf }
 0xc63   :  { %2175 = vmax.xlane.f32.xlu0 %v2174_v46  ;;  %v2342_v47 = vsel %vm230_vm2, %v2341_v45, -inf }
 0xc64   :  { %2343 = vmax.xlane.f32.xlu1 %v2342_v47 }
 0xc65   :  { %v2508_v48 = vpop.f32.mrb[20].mxu0 }
 0xc66   :  { %v2512_v49 = vmul.f32 0.35355338, %v2508_v48  ;;  %v4873_v50 = vpop.f32.mrb[21].mxu0 }
 0xc68   :  { %v5857_v51 = vadd.f32 %v5561_v57, %v2512_v49 }
 0xc69   :  { %v2680_v52 = vpop.f32.mrb[22].mxu0 }
 0xc6a   :  { %v2684_v53 = vmul.f32 0.35355338, %v2680_v52  ;;  %v4883_v54 = vpop.f32.mrb[23].mxu0  ;;  %v2514_v55 = vsel %vm230_vm2, %v5857_v51, -inf }
 0xc6b   :  { %2515 = vmax.xlane.f32.xlu0 %v2514_v55 }
 0xc6c   :  { %v2685_v56 = vadd.f32 %v5561_v57, %v2684_v53 }
 0xc6d   :  { %v2852_v58 = vpop.f32.mrb[24].mxu0 }
 0xc6e   :  { %v2856_v59 = vmul.f32 0.35355338, %v2852_v58  ;;  %v4893_v60 = vpop.f32.mrb[25].mxu0  ;;  %v2686_v62 = vsel %vm230_vm2, %v2685_v56, -inf }
 0xc6f   :  { %2687 = vmax.xlane.f32.xlu0 %v2686_v62 }
 0xc70   :  { %v2863_v63 = vadd.f32 %v5576_v13, %v2856_v59 }
 0xc71   :  { %v3026_v0 = vpop.f32.mrb[26].mxu0 }
 0xc72   :  { %v3030_v1 = vmul.f32 0.35355338, %v3026_v0  ;;  %v4903_v2 = vpop.f32.mrb[27].mxu0  ;;  %v2864_v3 = vsel %vm230_vm2, %v2863_v63, -inf }
 0xc73   :  { %2865 = vmax.xlane.f32.xlu0 %v2864_v3 }
 0xc74   :  { %v3031_v4 = vadd.f32 %v5576_v13, %v3030_v1 }
 0xc75   :  { %v3198_v40 = vpop.f32.mrb[28].mxu0 }
 0xc76   :  { %v3202_v5 = vmul.f32 0.35355338, %v3198_v40  ;;  %v4913_v6 = vpop.f32.mrb[29].mxu0  ;;  %v3032_v57 = vsel %vm230_vm2, %v3031_v4, -inf }
 0xc77   :  { %3033 = vmax.xlane.f32.xlu1 %v3032_v57 }
 0xc78   :  { %v3203_v7 = vadd.f32 %v5576_v13, %v3202_v5 }
 0xc79   :  { %v3370_v8 = vpop.f32.mrb[30].mxu0 }
 0xc7a   :  { %v4923_v9 = vpop.f32.mrb[31].mxu0  ;;  %v3204_v10 = vsel %vm230_vm2, %v3203_v7, -inf  ;;  %v3374_v11 = vmul.f32 0.35355338, %v3370_v8 }
 0xc7b   :  { %3205 = vmax.xlane.f32.xlu0 %v3204_v10 }
 0xc7c   :  { %v3375_v12 = vadd.f32 %v5576_v13, %v3374_v11 }
 0xc7e   :  { %v3376_v14 = vsel %vm230_vm2, %v3375_v12, -inf }
 0xc88   :  { %2185 = vrot.lane.b32.xlu1 %v5781_v20, %s6241_s29 }
 0xcac   :  { %3377 = vmax.xlane.f32.xlu1 %v3376_v14 }
 0xcbd   :  { %2525 = vrot.lane.b32.xlu1 %v5781_v20, %s6242_s2 }
 0xcc1   :  { %2697 = vrot.lane.b32.xlu1 %v5781_v20, %s6243_s3 }
 0xcc5   :  { %2875 = vrot.lane.b32.xlu1 %v5795_v21, %s6241_s29 }
 0xcf0   :  { %v2176_v17 = vpop.xlane.xlu0 %2175 }
 0xcf1   :  { %v2177_v18 = vsub.f32 %v2173_v44, %v2176_v17  ;;  %v2344_v19 = vpop.xlane.xlu1 %2343 }
 0xcf2   :  { %v2345_v22 = vsub.f32 %v2341_v45, %v2344_v19 }
 0xcf3   :  { %v2178_v23 = vmul.f32 1.442695, %v2177_v18 }
 0xcf4   :  { %v2346_v24 = vmul.f32 1.442695, %v2345_v22 }
 0xcf5   :  { %5207 = vpow2.f32 %v2178_v23 }
 0xcf6   :  { %5209 = vpow2.f32 %v2346_v24 }
 0xcf8   :  { %v2516_v13 = vpop.xlane.xlu0 %2515 }
 0xcf9   :  { %v2517_v38 = vsub.f32 %v5857_v51, %v2516_v13 }
 0xcfb   :  { %v2518_v33 = vmul.f32 1.442695, %v2517_v38 }
 0xcfc   :  { %v2688_v25 = vpop.xlane.xlu0 %2687 }
 0xcfd   :  { %v2689_v26 = vsub.f32 %v2685_v56, %v2688_v25 }
 0xcff   :  { %v5208_v41 = vpop.eup %5207  ;;  %v2690_v27 = vmul.f32 1.442695, %v2689_v26 }
 0xd00   :  { %v5879_v28 = vpop.eup %5209  ;;  %v2180_v29 = vsel %vm230_vm2, %v5208_v41, 0.0  ;;  %v2866_v35 = vpop.xlane.xlu0 %2865 }
 0xd01   :  { %5211 = vpow2.f32 %v2690_v27  ;;  %2181 = vadd.xlane.f32.xlu0 %v2180_v29  ;;  %v2348_v30 = vsel %vm230_vm2, %v5879_v28, 0.0  ;;  %v2867_v39 = vsub.f32 %v2863_v63, %v2866_v35 }
 0xd02   :  { %2349 = vadd.xlane.f32.xlu1 %v2348_v30  ;;  %5213 = vpow2.f32 %v2518_v33  ;;  %v4512_v33 = vld [vmem:[%s6231_s28 + $0x20] sm:$0xff] }
 0xd03   :  { %v2868_v43 = vmul.f32 1.442695, %v2867_v39  ;;  %v4513_v39 = vld [vmem:[%s6231_s28 + $0x28] sm:$0xff] }
 0xd04   :  { %v3034_v31 = vpop.xlane.xlu1 %3033 }
 0xd05   :  { %5215 = vpow2.f32 %v2868_v43  ;;  %v3035_v45 = vsub.f32 %v3031_v4, %v3034_v31 }
 0xd07   :  { %v3036_v47 = vmul.f32 1.442695, %v3035_v45  ;;  %v4515_v45 = vld [vmem:[%s6231_s28 + $0x38] sm:$0xff] }
 0xd08   :  { %v2186_v32 = vpop.permute.xlu1 %2185  ;;  %v3206_v42 = vpop.xlane.xlu0 %3205 }
 0xd09   :  { %4855 = vmatpush3.msra.mxu1 %v2186_v32  ;;  %v3207_v44 = vsub.f32 %v3203_v7, %v3206_v42  ;;  %v5076_v42 = vpack.c.bf16 %v4513_v39, %v4512_v33  ;;  %v4532_v39 = vld [vmem:[%s6165_s14 + $0x40] sm:$0xff] }
 0xd0a   :  { %4864 = vmatprep.subr.mxu1 %v5283_v36 }
 0xd0b   :  { %v5885_v34 = vpop.eup %5211  ;;  %v3208_v46 = vmul.f32 1.442695, %v3207_v44  ;;  %v4514_v44 = vld [vmem:[%s6231_s28 + $0x30] sm:$0xff]  ;;  %5077 = vmatprep.subr.bf16.mxu0 %v5076_v42 }
 0xd0c   :  { %v2692_v37 = vsel %vm230_vm2, %v5885_v34, 0.0  ;;  %v5214_v48 = vpop.eup %5213  ;;  %5079 = vmatpush3.bf16.msra.mxu0 %v5076_v42  ;;  %v4533_v42 = vld [vmem:[%s6165_s14 + $0x48] sm:$0xff] }
 0xd0d   :  { %2693 = vadd.xlane.f32.xlu1 %v2692_v37  ;;  %5217 = vpow2.f32 %v3208_v46 }
 0xd0e   :  { %5219 = vpow2.f32 %v3036_v47  ;;  %v5080_v47 = vpack.c.bf16 %v4515_v45, %v4514_v44  ;;  %v4534_v44 = vld [vmem:[%s6165_s14 + $0x50] sm:$0xff]  ;;  %v4535_v45 = vld [vmem:[%s6165_s14 + $0x58] sm:$0xff] }
 0xd0f   :  { %v5216_v49 = vpop.eup %5215 }
 0xd10   :  { %v2870_v51 = vsel %vm230_vm2, %v5216_v49, 0.0  ;;  %5081 = vmatprep.subr.bf16.mxu0 %v5080_v47 }
 0xd11   :  { %5083 = vmatpush3.bf16.msra.mxu0 %v5080_v47  ;;  %v4536_v47 = vld [vmem:[%s6165_s14 + $0x60] sm:$0xff] }
 0xd17   :  { %2353 = vrot.lane.b32.xlu0 %v5781_v20, %s6244_s0  ;;  %v2520_v20 = vsel %vm230_vm2, %v5214_v48, 0.0  ;;  %v5896_v52 = vpop.eup %5217 }
 0xd18   :  { %v3210_v55 = vsel %vm230_vm2, %v5896_v52, 0.0  ;;  %v5220_v56 = vpop.eup %5219 }
 0xd19   :  { %v3038_v58 = vsel %vm230_vm2, %v5220_v56, 0.0 }
 0xd1e   :  { %3043 = vrot.lane.b32.xlu1 %v5795_v21, %s6244_s0 }
 0xd36   :  { %2521 = vadd.xlane.f32.xlu0 %v2520_v20 }
 0xd39   :  { %v3378_v50 = vpop.xlane.xlu1 %3377 }
 0xd3a   :  { %v3379_v53 = vsub.f32 %v3375_v12, %v3378_v50  ;;  %2871 = vadd.xlane.f32.xlu0 %v2870_v51 }
 0xd3c   :  { %v3380_v54 = vmul.f32 1.442695, %v3379_v53 }
 0xd3d   :  { %v2526_v62 = vpop.permute.xlu1 %2525 }
 0xd3e   :  { %5221 = vpow2.f32 %v3380_v54  ;;  %3211 = vadd.xlane.f32.xlu0 %v3210_v55 }
 0xd41   :  { %v2698_v63 = vpop.permute.xlu1 %2697 }
 0xd42   :  { %3039 = vadd.xlane.f32.xlu1 %v3038_v58 }
 0xd45   :  { %v2876_v0 = vpop.permute.xlu1 %2875 }
 0xd48   :  { %v5901_v59 = vpop.eup %5221 }
 0xd49   :  { %v3382_v60 = vsel %vm230_vm2, %v5901_v59, 0.0 }
 0xd4a   :  { %3383 = vadd.xlane.f32.xlu0 %v3382_v60 }
 0xd53   :  { %3387 = vrot.lane.b32.xlu1 %v5795_v21, %s6243_s3 }
 0xd60   :  { %3215 = vrot.lane.b32.xlu0 %v5795_v21, %s6242_s2 }
 0xd8e   :  { %v2182_v1 = vpop.xlane.xlu0 %2181 }
 0xd8f   :  { %5223 = vrcp.f32 %v2182_v1  ;;  %v2350_v2 = vpop.xlane.xlu1 %2349 }
 0xd90   :  { %5225 = vrcp.f32 %v2350_v2 }
 0xd92   :  { %v2354_v5 = vpop.permute.xlu0 %2353 }
 0xd99   :  { %v5224_v3 = vpop.eup %5223 }
 0xd9a   :  { %v2184_v4 = vmul.f32 %v5224_v3, %v5208_v41  ;;  %v5226_v40 = vpop.eup %5225  ;;  %v2694_v21 = vpop.xlane.xlu1 %2693 }
 0xd9b   :  { %v2352_v6 = vmul.f32 %v5226_v40, %v5879_v28 }
 0xd9c   :  { %4857 = vmatmul.mubr.msk.f32.vlgmr.msra.gmra.mrb[26].mxu1 %vm230_vm2, %v2184_v4 }
 0xd9d   :  { %4865 = vmatpush3.msra.mxu1 %v2354_v5  ;;  %4866 = vmatprep.mubr.msk.f32.mxu1 %vm5284_vm1, %v5283_v36 }
 0xd9e   :  { %4874 = vmatprep.subr.mxu1 %v5283_v36  ;;  %v3044_v8 = vpop.permute.xlu1 %3043 }
 0xda0   :  { %4867 = vmatmul.mubr.msk.f32.vlgmr.msra.gmra.mrb[28].mxu1 %vm230_vm2, %v2352_v6 }
 0xda1   :  { %4875 = vmatpush3.msra.mxu1 %v2526_v62  ;;  %4876 = vmatprep.mubr.msk.f32.mxu1 %vm5284_vm1, %v5283_v36 }
 0xda2   :  { %4884 = vmatprep.subr.mxu1 %v5283_v36 }
 0xdc3   :  { %v2522_v57 = vpop.xlane.xlu0 %2521 }
 0xdc4   :  { %5227 = vrcp.f32 %v2522_v57 }
 0xdc5   :  { %5229 = vrcp.f32 %v2694_v21 }
 0xdc7   :  { %v2872_v7 = vpop.xlane.xlu0 %2871 }
 0xdc8   :  { %5231 = vrcp.f32 %v2872_v7 }
 0xdcb   :  { %v3212_v11 = vpop.xlane.xlu0 %3211 }
 0xdce   :  { %v5228_v9 = vpop.eup %5227 }
 0xdcf   :  { %v2524_v10 = vmul.f32 %v5228_v9, %v5214_v48  ;;  %v3040_v12 = vpop.xlane.xlu1 %3039  ;;  %v5230_v14 = vpop.eup %5229 }
 0xdd0   :  { %5233 = vrcp.f32 %v3040_v12  ;;  %v2696_v17 = vmul.f32 %v5230_v14, %v5885_v34 }
 0xdd1   :  { %4877 = vmatmul.mubr.msk.f32.vlgmr.msra.gmra.mrb[30].mxu1 %vm230_vm2, %v2524_v10  ;;  %5235 = vrcp.f32 %v3212_v11 }
 0xdd2   :  { %4885 = vmatpush3.msra.mxu1 %v2698_v63  ;;  %4886 = vmatprep.mubr.msk.f32.mxu1 %vm5284_vm1, %v5283_v36  ;;  %v5232_v18 = vpop.eup %5231  ;;  %v4517_v63 = vld [vmem:[%s6232_s11 + $0x1] ss:$0 sm:$0xff] }
 0xdd3   :  { %4894 = vmatprep.subr.mxu1 %v5283_v36  ;;  %v2874_v19 = vmul.f32 %v5232_v18, %v5216_v49  ;;  %v3388_v41 = vpop.permute.xlu1 %3387 }
 0xdd5   :  { %4887 = vmatmul.mubr.msk.f32.vlgmr.msra.gmra.mrb[32].mxu1 %vm230_vm2, %v2696_v17  ;;  %v4525_v17 = vld [vmem:[%s6163_s12 + $0x28] sm:$0xff] }
 0xdd6   :  { %4895 = vmatpush3.msra.mxu1 %v2876_v0  ;;  %4896 = vmatprep.mubr.msk.f32.mxu1 %vm5284_vm1, %v5283_v36 }
 0xdd7   :  { %v3384_v22 = vpop.xlane.xlu0 %3383  ;;  %4904 = vmatprep.subr.mxu1 %v5283_v36 }
 0xdd8   :  { %5237 = vrcp.f32 %v3384_v22  ;;  %v4527_v22 = vld [vmem:[%s6163_s12 + $0x38] sm:$0xff] }
 0xdd9   :  { %4897 = vmatmul.mubr.msk.f32.vlgmr.msra.gmra.mrb[34].mxu1 %vm230_vm2, %v2874_v19  ;;  %v4526_v19 = vld [vmem:[%s6163_s12 + $0x30] sm:$0xff] }
 0xdda   :  { %v5234_v23 = vpop.eup %5233  ;;  %4905 = vmatpush3.msra.mxu1 %v3044_v8  ;;  %4906 = vmatprep.mubr.msk.f32.mxu1 %vm5284_vm1, %v5283_v36 }
 0xddb   :  { %v3042_v24 = vmul.f32 %v5234_v23, %v5220_v56  ;;  %v3216_v13 = vpop.permute.xlu0 %3215  ;;  %4914 = vmatprep.subr.mxu1 %v5283_v36  ;;  %v5236_v25 = vpop.eup %5235  ;;  %v5088_v23 = vpack.c.bf16 %v4527_v22, %v4526_v19 }
 0xddc   :  { %v3214_v26 = vmul.f32 %v5236_v25, %v5896_v52 }
 0xddd   :  { %4907 = vmatmul.mubr.msk.f32.vlgmr.msra.gmra.mrb[36].mxu1 %vm230_vm2, %v3042_v24 }
 0xdde   :  { %4915 = vmatpush3.msra.mxu1 %v3216_v13  ;;  %4916 = vmatprep.mubr.msk.f32.mxu1 %vm5284_vm1, %v5283_v36 }
 0xddf   :  { %4924 = vmatprep.subr.mxu1 %v5283_v36 }
 0xde1   :  { %4917 = vmatmul.mubr.msk.f32.vlgmr.msra.gmra.mrb[38].mxu1 %vm230_vm2, %v3214_v26 }
 0xde2   :  { %v5238_v27 = vpop.eup %5237  ;;  %4925 = vmatpush3.msra.mxu1 %v3388_v41  ;;  %4926 = vmatprep.mubr.msk.f32.mxu1 %vm5284_vm1, %v5283_v36 }
 0xde3   :  { %v3386_v28 = vmul.f32 %v5238_v27, %v5901_v59 }
 0xde5   :  { %4927 = vmatmul.mubr.msk.f32.vlgmr.msra.gmra.mrb[40].mxu1 %vm230_vm2, %v3386_v28 }
 0xe6f   :  { %v2257_v29 = vpop.f32.mrb[26].mxu1 }
 0xe70   :  { %2261 = vst.msk [vmem:[#allocation2] sm:$0xff] %vm230_vm2, %v2257_v29  ;;  %v4858_v30 = vpop.f32.mrb[27].mxu1  ;;  %v4522_v29 = vld [vmem:[%s6233_s7 + $0x1] ss:$0 sm:$0xff] }
 0xe73   :  { %v2425_v31 = vpop.f32.mrb[28].mxu1 }
 0xe74   :  { %2430 = vrot.lane.b32.xlu0 %v2425_v31, %s6245_s4  ;;  %v4868_v32 = vpop.f32.mrb[29].mxu1  ;;  %v4523_v31 = vld [vmem:[%s6234_s8 + $0x1] ss:$0 sm:$0xff]  ;;  %s6248_s8 = sld [smem:[#allocation8_spill]] }
 0xea4   :  { %v2597_v34 = vpop.f32.mrb[30].mxu1 }
 0xea5   :  { %2602 = vrot.lane.b32.xlu1 %v2597_v34, %s6246_s30  ;;  %v4878_v37 = vpop.f32.mrb[31].mxu1 }
 0xea8   :  { %v2769_v38 = vpop.f32.mrb[32].mxu1 }
 0xea9   :  { %2774 = vrot.lane.b32.xlu1 %v2769_v38, %s6247_s9  ;;  %v4888_v35 = vpop.f32.mrb[33].mxu1 }
 0xeac   :  { %v2947_v43 = vpop.f32.mrb[34].mxu1 }
 0xead   :  { %2951 = vst.msk [vmem:[#allocation2 + $0x8] sm:$0xff] %vm230_vm2, %v2947_v43  ;;  %v4898_v46 = vpop.f32.mrb[35].mxu1  ;;  %v5092_v43 = vpack.c.bf16 %v4533_v42, %v4532_v39 }
 0xeae   :  { %v5096_v46 = vpack.c.bf16 %v4535_v45, %v4534_v44 }
 0xeaf   :  { %5093 = vmatprep.subr.bf16.mxu0 %v5092_v43 }
 0xeb0   :  { %v3115_v48 = vpop.f32.mrb[36].mxu1 }
 0xeb1   :  { %3120 = vrot.lane.b32.xlu0 %v3115_v48, %s6245_s4  ;;  %v4908_v20 = vpop.f32.mrb[37].mxu1  ;;  %v4537_v48 = vld [vmem:[%s6165_s14 + $0x68] sm:$0xff] }
 0xeb2   :  { %v5100_v20 = vpack.c.bf16 %v4537_v48, %v4536_v47  ;;  %v4541_v47 = vld [vmem:[%s6166_s15 + $0x1] ss:$0 sm:$0xff] }
 0xeb4   :  { %v3287_v49 = vpop.f32.mrb[38].mxu1 }
 0xeb5   :  { %3292 = vrot.lane.b32.xlu0 %v3287_v49, %s6246_s30  ;;  %v4918_v50 = vpop.f32.mrb[39].mxu1  ;;  %v4538_v49 = vld [vmem:[%s6165_s14 + $0x70] sm:$0xff] }
 0xeb6   :  { %v4539_v50 = vld [vmem:[%s6165_s14 + $0x78] sm:$0xff] }
 0xeb8   :  { %v3459_v51 = vpop.f32.mrb[40].mxu1 }
 0xeb9   :  { %3464 = vrot.lane.b32.xlu1 %v3459_v51, %s6247_s9  ;;  %v4928_v52 = vpop.f32.mrb[41].mxu1  ;;  %v5104_v51 = vpack.c.bf16 %v4539_v50, %v4538_v49 }
 0xeba   :  { %v4529_v52 = vld [vmem:[%s6164_s13 + $0x1] ss:$0 sm:$0xff] }
 0xee6   :  { %v2431_v53 = vpop.permute.xlu0 %2430 }
 0xee7   :  { %2433 = vst.msk [vmem:[#allocation2] sm:$0xff] %vm572_vm3, %v2431_v53 }
 0xf17   :  { %v2603_v54 = vpop.permute.xlu1 %2602 }
 0xf18   :  { %2605 = vst.msk [vmem:[#allocation2] sm:$0xff] %vm745_vm4, %v2603_v54 }
 0xf1b   :  { %v2775_v55 = vpop.permute.xlu1 %2774 }
 0xf1c   :  { %2777 = vst.msk [vmem:[#allocation2] sm:$0xff] %vm918_vm5, %v2775_v55 }
 0xf23   :  { %v3121_v56 = vpop.permute.xlu0 %3120  ;;  %v3468_v58 = vld [vmem:[#allocation2] sm:$0xff] }
 0xf24   :  { %3123 = vst.msk [vmem:[#allocation2 + $0x8] sm:$0xff] %vm572_vm3, %v3121_v56  ;;  %4937 = vmatprep.mubr.msk.f32.mxu0 %vm90_vm0, %v3468_v58 }
 0xf27   :  { %v3293_v59 = vpop.permute.xlu0 %3292 }
 0xf28   :  { %3295 = vst.msk [vmem:[#allocation2 + $0x8] sm:$0xff] %vm745_vm4, %v3293_v59 }
 0xf2b   :  { %v3465_v60 = vpop.permute.xlu1 %3464 }
 0xf2c   :  { %3467 = vst.msk [vmem:[#allocation2 + $0x8] sm:$0xff] %vm918_vm5, %v3465_v60 }
 0xf33   :  { %v3469_v62 = vld [vmem:[#allocation2 + $0x8] sm:$0xff] }
 0xf34   :  { %4938 = vmatmul.mubr.msk.f32.vlgmr.msra.gmra.mrb[32].mxu0 %vm90_vm0, %v3469_v62 }
 0xf35   :  { %5095 = vmatpush3.bf16.msra.mxu0 %v5092_v43 }
 0xf36   :  { %5097 = vmatprep.subr.bf16.mxu0 %v5096_v46 }
 0xf39   :  { %5099 = vmatpush3.bf16.msra.mxu0 %v5096_v46  ;;  %v5300_v46 = vmov 0.0|0.0  }
 0xf3a   :  { %5101 = vmatprep.subr.bf16.mxu0 %v5100_v20 }
 0xf3d   :  { %5103 = vmatpush3.bf16.msra.mxu0 %v5100_v20 }
 0xf3e   :  { %5105 = vmatprep.subr.bf16.mxu0 %v5104_v51 }
 0xf41   :  { %5107 = vmatpush3.bf16.msra.mxu0 %v5104_v51 }
 0xf42   :  { %5120 = vmatprep.subr.bf16.mxu0 %v5300_v46 }
0x1007   :  { %v4939_v0 = vpop.f32.mrb[32].mxu0 }
0x1008   :  { %v3561_v1 = vadd.f32 %v4939_v0, %v4517_v63  ;;  %v3555_v2 = vpop.f32.mrb[33].mxu0 }
0x1009   :  { %v3556_v3 = vadd.f32 %v4517_v63, %v3555_v2 }
0x100a   :  { %v3565_v4 = vadd.f32 %v3561_v1, %v5770_v16 }
0x100b   :  { %v3564_v40 = vadd.f32 %v3556_v3, %v5768_v15  ;;  %v4524_v15 = vld [vmem:[%s6163_s12 + $0x20] sm:$0xff] }
0x100c   :  { %v3573_v5 = vsel %vm90_vm0, %v3565_v4, 0.0  ;;  %v5084_v18 = vpack.c.bf16 %v4525_v17, %v4524_v15 }
0x100d   :  { %3574 = vadd.xlane.f32.xlu1 %v3573_v5  ;;  %v3570_v6 = vsel %vm90_vm0, %v3564_v40, 0.0 }
0x100e   :  { %3571 = vadd.xlane.f32.xlu0 %v3570_v6  ;;  %5085 = vmatprep.subr.bf16.mxu1 %v5084_v18 }
0x100f   :  { %5087 = vmatpush3.bf16.msra.mxu1 %v5084_v18 }
0x1010   :  { %5089 = vmatprep.subr.bf16.mxu1 %v5088_v23 }
0x1013   :  { %5091 = vmatpush3.bf16.msra.mxu1 %v5088_v23 }
0x1014   :  { %5108 = vmatprep.subr.bf16.mxu1 %v5300_v46 }
0x109a   :  { %v3575_v21 = vpop.xlane.xlu1 %3574 }
0x109b   :  { %v3577_v57 = vmul.f32 0.03125, %v3575_v21  ;;  %v3572_v7 = vpop.xlane.xlu0 %3571 }
0x109c   :  { %v3576_v8 = vmul.f32 0.03125, %v3572_v7 }
0x109d   :  { %v3579_v9 = vsub.f32 %v3565_v4, %v3577_v57 }
0x109e   :  { %v3578_v10 = vsub.f32 %v3564_v40, %v3576_v8 }
0x109f   :  { %v3581_v14 = vmul.f32 %v3579_v9, %v3579_v9 }
0x10a0   :  { %v3580_v11 = vmul.f32 %v3578_v10, %v3578_v10 }
0x10a1   :  { %v3585_v16 = vsel %vm90_vm0, %v3581_v14, 0.0 }
0x10a2   :  { %v3582_v12 = vsel %vm90_vm0, %v3580_v11, 0.0 }
0x10a3   :  { %3583 = vadd.xlane.f32.xlu0 %v3582_v12 }
0x10a7   :  { %3586 = vadd.xlane.f32.xlu0 %v3585_v16 }
0x1130   :  { %v3584_v24 = vpop.xlane.xlu0 %3583 }
0x1131   :  { %v3588_v13 = vmul.f32 0.03125, %v3584_v24 }
0x1133   :  { %v3590_v25 = vadd.f32 1e-05, %v3588_v13 }
0x1134   :  { %v3587_v26 = vpop.xlane.xlu0 %3586 }
0x1135   :  { %5239 = vrsqrt.f32 %v3590_v25  ;;  %v3589_v41 = vmul.f32 0.03125, %v3587_v26 }
0x1137   :  { %v3591_v27 = vadd.f32 1e-05, %v3589_v41 }
0x1139   :  { %5241 = vrsqrt.f32 %v3591_v27 }
0x113f   :  { %v5240_v28 = vpop.eup %5239 }
0x1140   :  { %v3594_v30 = vmul.f32 %v5240_v28, %v3578_v10 }
0x1142   :  { %v3602_v32 = vmul.f32 %v4522_v29, %v3594_v30 }
0x1143   :  { %v5242_v34 = vpop.eup %5241 }
0x1144   :  { %v3595_v37 = vmul.f32 %v5242_v34, %v3579_v9  ;;  %v3610_v38 = vadd.f32 %v4523_v31, %v3602_v32 }
0x1146   :  { %v3603_v35 = vmul.f32 %v4522_v29, %v3595_v37  ;;  %4948 = vmatprep.mubr.msk.f32.mxu1 %vm90_vm0, %v3610_v38 }
0x1148   :  { %v3611_v33 = vadd.f32 %v4523_v31, %v3603_v35 }
0x114a   :  { %4949 = vmatmul.mubr.msk.f32.vlgmr.msra.gmra.mrb[42].mxu1 %vm90_vm0, %v3611_v33 }
0x114b   :  { %4974 = vmatprep.mubr.msk.f32.mxu1 %vm5284_vm1, %v5283_v36 }
0x121d   :  { %v4950_v53 = vpop.f32.mrb[42].mxu1 }
0x121e   :  { %v3703_v54 = vadd.f32 %v4950_v53, %v4529_v52  ;;  %v3697_v55 = vpop.f32.mrb[43].mxu1  ;;  %v4007_v53 = vld [vmem:[%s6167_s16] sm:$0xff] }
0x121f   :  { %v3698_v56 = vadd.f32 %v4529_v52, %v3697_v55  ;;  %v3858_v52 = vld [vmem:[%s6248_s8] sm:$0x3] }
0x1220   :  { %v3709_v58 = vmul.f32 0.70710677, %v3703_v54  ;;  %v3707_v43 = vmul.f32 0.5, %v3703_v54  ;;  %v4008_v54 = vld [vmem:[%s6167_s16 + $0x8] sm:$0xff]  ;;  %v3933_v55 = vld [vmem:[%s6249_s6] sm:$0x3f] }
0x1221   :  { %v3708_v59 = vmul.f32 0.70710677, %v3698_v56  ;;  %v3706_v39 = vmul.f32 0.5, %v3698_v56  ;;  %v5115_v56 = vpack.c.bf16 %v4008_v54, %v4007_v53  ;;  %v4548_v54 = vld [vmem:[%s6170_s19] ss:$0 sm:$0xff] }
0x1222   :  { %v3715_v60 = vand.u32 2147483647, %v3709_v58  ;;  %vm3711_vm9 = vcmp.lt.f32.partialorder %v3709_v58, 0.0  ;;  %v4009_v58 = vld [vmem:[%s6167_s16 + $0x10] sm:$0xff] }
0x1223   :  { %v3714_v62 = vand.u32 2147483647, %v3708_v59  ;;  %vm3710_vm10 = vcmp.lt.f32.partialorder %v3708_v59, 0.0  ;;  %v3713_v32 = vsel %vm3711_vm9, -1.0, %v5299_v61  ;;  %v4010_v59 = vld [vmem:[%s6167_s16 + $0x18] sm:$0xff] }
0x1224   :  { %v3717_v63 = vmul.f32 0.3275911, %v3715_v60  ;;  %v3743_v3 = vsub.f32 0.0, %v3715_v60  ;;  %v3712_v38 = vsel %vm3710_vm10, -1.0, %v5299_v61 }
0x1225   :  { %v3716_v0 = vmul.f32 0.3275911, %v3714_v62  ;;  %v3742_v4 = vsub.f32 0.0, %v3714_v62 }
0x1226   :  { %v3719_v1 = vadd.f32 1.0, %v3717_v63  ;;  %v3745_v5 = vmul.f32 %v3743_v3, %v3715_v60  ;;  %v5118_v60 = vpack.c.bf16 %v4010_v59, %v4009_v58  ;;  %v4179_v63 = vld [vmem:[%s6171_s20 + $0x8] sm:$0xff] }
0x1227   :  { %v3718_v2 = vadd.f32 1.0, %v3716_v0  ;;  %v3744_v57 = vmul.f32 %v3742_v4, %v3714_v62  ;;  %v4178_v62 = vld [vmem:[%s6171_s20] sm:$0xff] }
0x1228   :  { %5243 = vrcp.f32 %v3719_v1  ;;  %v3748_v9 = vmul.f32 1.442695, %v3745_v5  ;;  %v5127_v0 = vpack.c.bf16 %v4179_v63, %v4178_v62  ;;  %v4180_v1 = vld [vmem:[%s6171_s20 + $0x10] sm:$0xff]  ;;  %v4322_v63 = vld [vmem:[%s6175_s24 + $0x18] sm:$0xff] }
0x1229   :  { %5245 = vrcp.f32 %v3718_v2  ;;  %v3746_v12 = vmul.f32 1.442695, %v3744_v57  ;;  %v4181_v2 = vld [vmem:[%s6171_s20 + $0x18] sm:$0xff]  ;;  %v4093_v57 = vld [vmem:[%s6169_s18 + $0x8] sm:$0xff]  ;;  %v4321_v62 = vld [vmem:[%s6175_s24 + $0x10] sm:$0xff] }
0x122a   :  { %5247 = vpow2.f32 %v3748_v9  ;;  %v4095_v9 = vld [vmem:[%s6169_s18 + $0x18] sm:$0xff] }
0x122b   :  { %5249 = vpow2.f32 %v3746_v12 }
0x1232   :  { %v5244_v40 = vpop.eup %5243 }
0x1233   :  { %v5246_v6 = vpop.eup %5245  ;;  %v3725_v21 = vmul.f32 1.0614054, %v5244_v40 }
0x1234   :  { %v3724_v7 = vmul.f32 1.0614054, %v5246_v6  ;;  %v5248_v41 = vpop.eup %5247 }
0x1235   :  { %v3727_v8 = vadd.f32 -1.4531521, %v3725_v21  ;;  %v5250_v28 = vpop.eup %5249  ;;  %v4092_v21 = vld [vmem:[%s6169_s18] sm:$0xff] }
0x1236   :  { %v3726_v10 = vadd.f32 -1.4531521, %v3724_v7  ;;  %v5121_v7 = vpack.c.bf16 %v4093_v57, %v4092_v21 }
0x1237   :  { %v3729_v11 = vmul.f32 %v5244_v40, %v3727_v8  ;;  %v4094_v8 = vld [vmem:[%s6169_s18 + $0x10] sm:$0xff] }
0x1238   :  { %v3728_v14 = vmul.f32 %v5246_v6, %v3726_v10  ;;  %v5124_v10 = vpack.c.bf16 %v4095_v9, %v4094_v8 }
0x1239   :  { %v3731_v16 = vadd.f32 1.4214138, %v3729_v11  ;;  %v4546_v11 = vld [vmem:[%s6168_s17] ss:$0 sm:$0xff] }
0x123a   :  { %v3730_v15 = vadd.f32 1.4214138, %v3728_v14 }
0x123b   :  { %v3733_v17 = vmul.f32 %v5244_v40, %v3731_v16 }
0x123c   :  { %v3732_v18 = vmul.f32 %v5246_v6, %v3730_v15  ;;  %v4550_v15 = vld [vmem:[%s6172_s21] ss:$0 sm:$0xff] }
0x123d   :  { %v3735_v19 = vadd.f32 -0.28449672, %v3733_v17 }
0x123e   :  { %v3734_v22 = vadd.f32 -0.28449672, %v3732_v18 }
0x123f   :  { %v3737_v23 = vmul.f32 %v5244_v40, %v3735_v19 }
0x1240   :  { %v3736_v24 = vmul.f32 %v5246_v6, %v3734_v22 }
0x1241   :  { %v3739_v13 = vadd.f32 0.2548296, %v3737_v23 }
0x1242   :  { %v3738_v25 = vadd.f32 0.2548296, %v3736_v24 }
0x1243   :  { %v3741_v26 = vmul.f32 %v5244_v40, %v3739_v13  ;;  %v5130_v40 = vpack.c.bf16 %v4181_v2, %v4180_v1 }
0x1244   :  { %v3740_v27 = vmul.f32 %v5246_v6, %v3738_v25 }
0x1245   :  { %v3751_v29 = vmul.f32 %v5248_v41, %v3741_v26 }
0x1246   :  { %v3750_v30 = vmul.f32 %v5250_v28, %v3740_v27 }
0x1247   :  { %v3753_v31 = vsub.f32 1.0, %v3751_v29 }
0x1248   :  { %v3752_v34 = vsub.f32 1.0, %v3750_v30 }
0x1249   :  { %v3755_v37 = vmul.f32 %v3753_v31, %v3713_v32 }
0x124a   :  { %v3754_v35 = vmul.f32 %v3752_v34, %v3712_v38 }
0x124b   :  { %v3757_v33 = vadd.f32 1.0, %v3755_v37 }
0x124c   :  { %v3756_v42 = vadd.f32 1.0, %v3754_v35 }
0x124d   :  { %v3759_v45 = vmul.f32 %v3757_v33, %v3707_v43 }
0x124e   :  { %v3758_v44 = vmul.f32 %v3756_v42, %v3706_v39 }
0x1250   :  { %4967 = vmatprep.mubr.msk.f32.mxu0 %vm1912_vm8, %v3758_v44 }
0x1251   :  { %4968 = vmatmul.mubr.msk.f32.vlgmr.msra.gmra.mrb[34].mxu0 %vm1912_vm8, %v3759_v45 }
0x1252   :  { %5003 = vmatprep.mubr.msk.f32.mxu0 %vm5284_vm1, %v5283_v36  ;;  %5122 = vmatpush3.bf16.msra.mxu0 %v5121_v7 }
0x1253   :  { %5123 = vmatprep.subr.bf16.mxu0 %v5300_v46 }
0x1256   :  { %5125 = vmatpush3.bf16.msra.mxu0 %v5124_v10 }
0x1257   :  { %5132 = vmatprep.subr.bf16.mxu0 %v5300_v46 }
0x1324   :  { %v4969_v48 = vpop.f32.mrb[34].mxu0 }
0x1325   :  { %v3855_v20 = vadd.f32 %v4969_v48, %v4541_v47  ;;  %v3849_v49 = vpop.f32.mrb[35].mxu0 }
0x1326   :  { %v3850_v50 = vadd.f32 %v4541_v47, %v3849_v49 }
0x1328   :  { %v5109_v51 = vpack.c.bf16 %v3855_v20, %v3850_v50 }
0x132a   :  { %5110 = vmatpush3.bf16.msra.mxu1 %v5109_v51 }
0x132b   :  { %5111 = vmatprep.subr.bf16.mxu1 %v5300_v46 }
0x132d   :  { %4975 = vmatmul.mubr.msk.f32.vlgmr.msra.gmra.mrb[44].mxu1 %vm3859_vm11, %v3858_v52 }
0x132e   :  { %5113 = vmatpush3.bf16.msra.mxu1 %v5109_v51  ;;  %4981 = vmatprep.mubr.msk.f32.mxu1 %vm5284_vm1, %v5283_v36 }
0x132f   :  { %5114 = vmatprep.subr.bf16.mxu1 %v5300_v46 }
0x1331   :  { %4982 = vmatmul.mubr.msk.f32.vlgmr.msra.gmra.mrb[46].mxu1 %vm3859_vm11, %v3933_v55  ;;  %v4319_v55 = vld [vmem:[%s6175_s24] sm:$0xff] }
0x1332   :  { %5116 = vmatpush3.bf16.msra.mxu1 %v5115_v56  ;;  %4992 = vmatprep.mubr.msk.f32.mxu1 %vm5284_vm1, %v5283_v36  ;;  %v4320_v56 = vld [vmem:[%s6175_s24 + $0x8] sm:$0xff]  ;;  %s5301_s24 = smov [#allocation3]  }
0x1333   :  { %5117 = vmatprep.subr.bf16.mxu1 %v5300_v46  ;;  %s4422_s30 = sshll.u32 %s5301_s24, 4  ;;  %s4423_s30 = int_to_ptr.vmem [resolvable:$true] %s4422_s30 }
0x1334   :  { %s5259_s20 = scalar_lea.vmem %s4423_s30, 32  ;;  %p5264_p1 = scmp.lt.s32.totalorder %s4423_s30, %s4423_s30 }
0x1335   :  { %p5260_p0 = scmp.ne.s32.totalorder %s4423_s30, %s5259_s20  ;;  %p5265_p2 = scmp.lt.s32.totalorder %s5259_s20, %s5259_s20 }
0x1336   :  { %5119 = vmatpush3.bf16.msra.mxu1 %v5118_v60  ;;  %v5133_v60 = vpack.c.bf16 %v4320_v56, %v4319_v55 }
0x1337   :  { %5126 = vmatprep.subr.bf16.mxu1 %v5300_v46  ;;  %p5266_p3 = por %p5265_p2, %p5264_p1 }
0x1339   :  { %p5267_p4 = pnand %p5266_p3, %p5260_p0 }
0x1400   :  { %v3929_v3 = vpop.f32.mrb[44].mxu1 }
0x1401   :  { %v4976_v4 = vpop.f32.mrb[45].mxu1  ;;  %4993 = vmatmul.mubr.msk.f32.vlgmr.msra.gmra.mrb[48].mxu1 %vm90_vm0, %v3929_v3 }
0x1402   :  { %5128 = vmatpush3.bf16.msra.mxu1 %v5127_v0  ;;  %5014 = vmatprep.mubr.msk.f32.mxu1 %vm5284_vm1, %v5283_v36  ;;  %v5137_v0 = vpack.c.bf16 %v4322_v63, %v4321_v62 }
0x1403   :  { %5129 = vmatprep.subr.bf16.mxu1 %v5300_v46 }
0x1404   :  { %v4003_v5 = vpop.f32.mrb[46].mxu1 }
0x1405   :  { %v4983_v6 = vpop.f32.mrb[47].mxu1 }
0x1406   :  { %5131 = vmatpush3.bf16.msra.mxu1 %v5130_v40  ;;  %v4552_v40 = vld [vmem:[%s6173_s22] ss:$0 sm:$0xff] }
0x1409   :  { %5015 = vmatmul.mubr.msk.f32.vlgmr.msra.gmra.mrb[50].mxu1 %vm90_vm0, %v4003_v5  ;;  %v4553_v5 = vld [vmem:[%s6174_s23] ss:$0 sm:$0xff] }
0x14d4   :  { %v4087_v12 = vpop.f32.mrb[48].mxu1 }
0x14d5   :  { %v4088_v14 = vadd.f32 %v4546_v11, %v4087_v12  ;;  %v4994_v16 = vpop.f32.mrb[49].mxu1 }
0x14d7   :  { %5251 = vtanh.f32 %v4088_v14 }
0x14dc   :  { %v4258_v17 = vpop.f32.mrb[50].mxu1 }
0x14dd   :  { %v4259_v18 = vadd.f32 %v4550_v15, %v4258_v17  ;;  %v5016_v19 = vpop.f32.mrb[51].mxu1 }
0x14df   :  { %v4263_v22 = vmul.f32 0.70710677, %v4259_v18  ;;  %v4262_v45 = vmul.f32 0.5, %v4259_v18 }
0x14e1   :  { %v5252_v23 = vpop.eup %5251  ;;  %v4266_v24 = vand.u32 2147483647, %v4263_v22  ;;  %vm4264_vm12 = vcmp.lt.f32.partialorder %v4263_v22, 0.0 }
0x14e2   :  { %5004 = vmatmul.mubr.msk.f32.vlgmr.msra.gmra.mrb[36].mxu0 %vm90_vm0, %v5252_v23  ;;  %v4265_v43 = vsel %vm4264_vm12, -1.0, %v5299_v61 }
0x14e3   :  { %v4267_v13 = vmul.f32 0.3275911, %v4266_v24  ;;  %5025 = vmatprep.mubr.msk.f32.mxu0 %vm5284_vm1, %v5283_v36  ;;  %v4280_v26 = vsub.f32 0.0, %v4266_v24  ;;  %5135 = vmatpush3.bf16.xpose.msk.msra.mxu0 %vm5134_vm15, %v5133_v60 }
0x14e4   :  { %5136 = vmatprep.subr.bf16.mxu0 %v5300_v46 }
0x14e5   :  { %v4268_v25 = vadd.f32 1.0, %v4267_v13  ;;  %v4281_v27 = vmul.f32 %v4280_v26, %v4266_v24 }
0x14e7   :  { %5253 = vrcp.f32 %v4268_v25  ;;  %v4282_v30 = vmul.f32 1.442695, %v4281_v27 }
0x14e9   :  { %5255 = vpow2.f32 %v4282_v30 }
0x14eb   :  { %5139 = vmatpush3.bf16.xpose.msk.msra.mxu0 %vm5134_vm15, %v5137_v0 }
0x14f1   :  { %v5254_v41 = vpop.eup %5253 }
0x14f2   :  { %v4271_v28 = vmul.f32 1.0614054, %v5254_v41 }
0x14f3   :  { %v5256_v39 = vpop.eup %5255 }
0x14f4   :  { %v4272_v29 = vadd.f32 -1.4531521, %v4271_v28 }
0x14f6   :  { %v4273_v31 = vmul.f32 %v5254_v41, %v4272_v29 }
0x14f8   :  { %v4274_v32 = vadd.f32 1.4214138, %v4273_v31 }
0x14fa   :  { %v4275_v34 = vmul.f32 %v5254_v41, %v4274_v32 }
0x14fc   :  { %v4276_v37 = vadd.f32 -0.28449672, %v4275_v34 }
0x14fe   :  { %v4277_v38 = vmul.f32 %v5254_v41, %v4276_v37 }
0x1500   :  { %v4278_v35 = vadd.f32 0.2548296, %v4277_v38 }
0x1502   :  { %v4279_v33 = vmul.f32 %v5254_v41, %v4278_v35 }
0x1504   :  { %v4284_v42 = vmul.f32 %v5256_v39, %v4279_v33 }
0x1506   :  { %v4285_v36 = vsub.f32 1.0, %v4284_v42 }
0x1508   :  { %v4286_v44 = vmul.f32 %v4285_v36, %v4265_v43 }
0x150a   :  { %v4287_v47 = vadd.f32 1.0, %v4286_v44 }
0x150c   :  { %v4288_v48 = vmul.f32 %v4287_v47, %v4262_v45 }
0x150e   :  { %v4292_v20 = vsel %vm4291_vm13, %v4288_v48, 0.0 }
0x150f   :  { %4293 = vadd.xlane.f32.xlu0 %v4292_v20 }
0x159c   :  { %v4294_v49 = vpop.xlane.xlu0 %4293 }
0x159d   :  { %v4295_v50 = vmul.f32 0.03125, %v4294_v49 }
0x159f   :  { %v4296_v51 = vsub.f32 %v4288_v48, %v4295_v50 }
0x15a1   :  { %v4297_v52 = vmul.f32 %v4296_v51, %v4296_v51 }
0x15a3   :  { %v4298_v53 = vsel %vm4291_vm13, %v4297_v52, 0.0 }
0x15a4   :  { %4299 = vadd.xlane.f32.xlu1 %v4298_v53 }
0x15b5   :  { %v4172_v61 = vpop.f32.mrb[36].mxu0 }
0x15b6   :  { %v4173_v58 = vadd.f32 %v4548_v54, %v4172_v61  ;;  %v5005_v59 = vpop.f32.mrb[37].mxu0 }
0x15b8   :  { %4177 = vst.msk [vmem:[#allocation3] sm:$0x3] %vm4176_vm14, %v4173_v58 }
0x1631   :  { %v4300_v1 = vpop.xlane.xlu1 %4299 }
0x1632   :  { %v4301_v2 = vmul.f32 0.03125, %v4300_v1 }
0x1634   :  { %v4302_v3 = vadd.f32 1e-05, %v4301_v2 }
0x1636   :  { %5257 = vrsqrt.f32 %v4302_v3 }
0x1640   :  { %v5258_v4 = vpop.eup %5257 }
0x1641   :  { %v4304_v46 = vmul.f32 %v5258_v4, %v4296_v51 }
0x1643   :  { %v4311_v6 = vmul.f32 %v4552_v40, %v4304_v46 }
0x1645   :  { %v4318_v21 = vadd.f32 %v4553_v5, %v4311_v6 }
0x1647   :  { %5026 = vmatmul.mubr.msk.f32.vlgmr.msra.gmra.mrb[38].mxu0 %vm90_vm0, %v4318_v21 }
0x1648   :  { %5270 = shalt.err (!%p5267_p4)
}
0x1649   :  { %s5271_s5 = scalar_lea.hbm %s6177_s26, 32 }
0x164a   :  { %p5272_p5 = scmp.ne.s32.totalorder %s6177_s26, %s5271_s5  ;;  %p5275_p6 = scmp.lt.u32.totalorder %s5271_s5, %s6177_s26 }
0x164c   :  { %p5277_p7 = pnand %p5275_p6, %p5272_p5 }
0x164e   :  { %5280 = shalt.err (!%p5277_p7)
}
0x164f   :  { %4425 = dma.vmem_to_hbm [thread:$0]  %s4423_s30, 32, %s6177_s26, [#allocation4]   ;;  %v4554_v57 = vld [vmem:[%s6176_s25] ss:$0 sm:$0xff] }
0x171a   :  { %v4411_v7 = vpop.f32.mrb[38].mxu0 }
0x171b   :  { %v4412_v8 = vadd.f32 %v4554_v57, %v4411_v7  ;;  %v5027_v9 = vpop.f32.mrb[39].mxu0 }
0x171d   :  { %4415 = vst.msk [vmem:[%s6178_s27] sm:$0x3f] %vm4291_vm13, %v4412_v8 }
0x171e   :  { %5281 = dma.done.wait [#allocation4], 32  }
0x171f   :  { %5282 = vsyncadd [#allocation4], 4294967264 }
0x1720   :  { %4433 = vsyncpa [#allocation4], 1 }

</bundles_post_ra>
